<compile_context>
chip_gen: v6e
topology: v6e:2x2x1
jax: 0.10.0
libtpu: 0.0.40
codegen_flags: <defaults>
</compile_context>

<pallas_src>
import jax
import jax.numpy as jnp
from jax.experimental import pallas as pl
from jax.experimental.pallas import tpu as pltpu


def _round_up(x, m):
    return ((x + m - 1) // m) * m


# ----------------------------------------------------------------------------
# Fused Pallas kernel: Conv1d + ReLU -> stacked LSTM -> Linear(hidden, 4).
# ----------------------------------------------------------------------------
def convlstm_kernel(x_ref, lens_ref, wconv_ref, bconv_ref, wih_ref, whh_ref,
                    bias_ref, wout_ref, bout_ref, out_ref, seq_ref, gi_ref):
    # x_ref    : ((T+2p)*Bp, Cin)  conv input, time-padded halo, time-major flat
    # lens_ref : (Bp, 1) int32     valid lengths (packed-sequence mask)
    # wconv_ref: (K, Cin, P)       per-tap transposed conv weights (padded)
    # bconv_ref: (1, P)
    # wih_ref  : (L, P, 4P)        input weights, gate slabs [i,f,g,o] 128-wide
    # whh_ref  : (L, P, 4P)        hidden weights
    # bias_ref : (L, 1, 4P)        b_ih + b_hh folded together
    # wout_ref : (P, OP)           output Linear (padded to 128 lanes)
    # bout_ref : (1, OP)
    # out_ref  : (L, Bp, OP)       predictions (padded; wrapper slices)
    # seq_ref  : (T*Bp, P) scratch current layer's per-timestep activations
    # gi_ref   : (T*Bp, 4P) scratch hoisted input-projection gates
    TB, P = seq_ref.shape
    Bp = lens_ref.shape[0]
    T = TB // Bp
    K = wconv_ref.shape[0]
    L = wih_ref.shape[0]

    lens = lens_ref[...]                                    # (Bp, 1)

    # ---- Conv1d + ReLU: K shifted (T*Bp, Cin) x (Cin, P) matmuls, bias hoisted.
    acc = jnp.zeros((TB, P), jnp.float32) + bconv_ref[...]
    for j in range(K):                                      # K small & static
        acc = acc + jnp.dot(x_ref[pl.ds(j * Bp, TB), :], wconv_ref[j],
                            preferred_element_type=jnp.float32)
    seq_ref[...] = jnp.maximum(acc, 0.0)
    # TODO(synk): nn.Dropout is identity in eval mode; intentionally omitted.

    # ---- Stacked LSTM with packed-sequence masking.
    for l in range(L):                                      # static layer loop
        # Hoisted input projection: ONE (T*Bp, P) x (P, 4P) matmul, biases folded.
        gi_ref[...] = (jnp.dot(seq_ref[...], wih_ref[l],
                               preferred_element_type=jnp.float32)
                       + bias_ref[l])

        h = jnp.zeros((Bp, P), jnp.float32)
        c = jnp.zeros((Bp, P), jnp.float32)
        # Time recurrence, fully unrolled (T static). Slice starts are static
        # multiples of Bp=8; gate slabs are 128-lane aligned.
        for t in range(T):
            gates = gi_ref[pl.ds(t * Bp, Bp), :] + jnp.dot(
                h, whh_ref[l], preferred_element_type=jnp.float32)
            i_g = jax.nn.sigmoid(gates[:, 0 * P:1 * P])
            f_g = jax.nn.sigmoid(gates[:, 1 * P:2 * P])
            g_g = jnp.tanh(gates[:, 2 * P:3 * P])
            o_g = jax.nn.sigmoid(gates[:, 3 * P:4 * P])
            c_new = f_g * c + i_g * g_g
            h_new = o_g * jnp.tanh(c_new)
            valid = lens > t                                # freeze past length
            h = jnp.where(valid, h_new, h)
            c = jnp.where(valid, c_new, c)
            if l + 1 < L:                                   # next layer's input
                seq_ref[pl.ds(t * Bp, Bp), :] = h

        # ---- output Linear fused as each layer's epilogue (acts on hn[l]).
        out_ref[l] = (jnp.dot(h, wout_ref[...],
                              preferred_element_type=jnp.float32)
                      + bout_ref[...])


# ----------------------------------------------------------------------------
# Parameter preparation (padding / transposition, host-side glue).
# ----------------------------------------------------------------------------
def prepare_params(raw):
    conv_w, conv_b = raw["conv_w"], raw["conv_b"]           # (I, Cin, K), (I,)
    I, Cin, K = conv_w.shape
    H = raw["hidden_size"]
    L = raw["num_layers"]
    O = raw["out_w"].shape[0]
    P = _round_up(max(I, H), 128)
    OP = _round_up(O, 128)

    wconv = jnp.zeros((K, Cin, P), jnp.float32)
    wconv = wconv.at[:, :, :I].set(jnp.transpose(conv_w, (2, 1, 0)))
    bconv = jnp.zeros((1, P), jnp.float32).at[0, :I].set(conv_b)

    wih = jnp.zeros((L, P, 4 * P), jnp.float32)
    whh = jnp.zeros((L, P, 4 * P), jnp.float32)
    bias = jnp.zeros((L, 1, 4 * P), jnp.float32)
    for l in range(L):
        d_in = raw["w_ih"][l].shape[1]
        for g in range(4):                                  # gate order i,f,g,o
            wih = wih.at[l, :d_in, g * P:g * P + H].set(
                raw["w_ih"][l][g * H:(g + 1) * H, :].T)
            whh = whh.at[l, :H, g * P:g * P + H].set(
                raw["w_hh"][l][g * H:(g + 1) * H, :].T)
            bias = bias.at[l, 0, g * P:g * P + H].set(
                raw["b_ih"][l][g * H:(g + 1) * H]
                + raw["b_hh"][l][g * H:(g + 1) * H])

    wout = jnp.zeros((P, OP), jnp.float32).at[:H, :O].set(raw["out_w"].T)
    bout = jnp.zeros((1, OP), jnp.float32).at[0, :O].set(raw["out_b"])

    return dict(wconv=wconv, bconv=bconv, wih=wih, whh=whh, bias=bias,
                wout=wout, bout=bout, P=P, OP=OP, K=K, L=L, O=O)


# ----------------------------------------------------------------------------
# Forward wrapper (plain-JAX glue: batch/time padding, single pallas_call).
# ----------------------------------------------------------------------------
def forward(prep, padded, lengths):
    T, B, Cin = padded.shape
    K, L, P, OP = prep["K"], prep["L"], prep["P"], prep["OP"]
    p = (K - 1) // 2
    Bp = _round_up(B, 8)

    # Zero time-halo for the conv + pad batch to a sublane multiple.
    xpad = jnp.zeros((T + 2 * p, Bp, Cin), jnp.float32)
    xpad = xpad.at[p:p + T, :B, :].set(padded.astype(jnp.float32))
    x_flat = xpad.reshape((T + 2 * p) * Bp, Cin)

    lens = jnp.zeros((Bp, 1), jnp.int32).at[:B, 0].set(lengths.astype(jnp.int32))

    vmem = pl.BlockSpec(memory_space=pltpu.MemorySpace.VMEM)
    out = pl.pallas_call(
        convlstm_kernel,
        out_shape=jax.ShapeDtypeStruct((L, Bp, OP), jnp.float32),
        in_specs=[vmem] * 9,
        out_specs=vmem,
        scratch_shapes=[pltpu.VMEM((T * Bp, P), jnp.float32),      # seq
                        pltpu.VMEM((T * Bp, 4 * P), jnp.float32)],  # gates
    )(x_flat, lens, prep["wconv"], prep["bconv"], prep["wih"], prep["whh"],
      prep["bias"], prep["wout"], prep["bout"])
    return out[:, :B, :prep["O"]]


# ----------------------------------------------------------------------------
# Pure-JAX reference (PyTorch-layout weights) for the correctness check.
# ----------------------------------------------------------------------------
def forward_ref(raw, padded, lengths):
    conv_w, conv_b = raw["conv_w"], raw["conv_b"]
    I, Cin, K = conv_w.shape
    H, L = raw["hidden_size"], raw["num_layers"]
    T, B, _ = padded.shape
    p = (K - 1) // 2

    xp = jnp.pad(padded.astype(jnp.float32), ((p, p), (0, 0), (0, 0)))
    conv = jnp.zeros((T, B, I), jnp.float32)
    for j in range(K):
        conv = conv + jnp.einsum("tbc,oc->tbo", xp[j:j + T], conv_w[:, :, j])
    x = jax.nn.relu(conv + conv_b)                          # dropout: identity

    h_finals = []
    for l in range(L):
        w_ih, w_hh = raw["w_ih"][l], raw["w_hh"][l]
        b = raw["b_ih"][l] + raw["b_hh"][l]
        h = jnp.zeros((B, H), jnp.float32)
        c = jnp.zeros((B, H), jnp.float32)
        ys = []
        for t in range(T):
            g = x[t] @ w_ih.T + h @ w_hh.T + b
            i_g = jax.nn.sigmoid(g[:, 0 * H:1 * H])
            f_g = jax.nn.sigmoid(g[:, 1 * H:2 * H])
            g_g = jnp.tanh(g[:, 2 * H:3 * H])
            o_g = jax.nn.sigmoid(g[:, 3 * H:4 * H])
            c_new = f_g * c + i_g * g_g
            h_new = o_g * jnp.tanh(c_new)
            valid = (lengths > t)[:, None]
            h = jnp.where(valid, h_new, h)
            c = jnp.where(valid, c_new, c)
            ys.append(h)
        x = jnp.stack(ys, axis=0)
        h_finals.append(h)
    hn = jnp.stack(h_finals, axis=0)                        # (L, B, H)
    return jnp.einsum("lbh,oh->lbo", hn, raw["out_w"]) + raw["out_b"]


# ----------------------------------------------------------------------------
def make_raw_params(key, input_size, intermediate_size, hidden_size,
                    num_layers, kernel_size):
    H, L = hidden_size, num_layers
    keys = jax.random.split(key, 4 * L + 6)
    ki = iter(keys)
    s = 1.0 / jnp.sqrt(jnp.float32(H))

    conv_w = jax.random.normal(next(ki), (intermediate_size, input_size,
                                          kernel_size), jnp.float32) * 0.2
    conv_b = jax.random.normal(next(ki), (intermediate_size,), jnp.float32) * 0.1

    w_ih, w_hh, b_ih, b_hh = [], [], [], []
    for l in range(L):
        d = intermediate_size if l == 0 else H
        w_ih.append(jax.random.uniform(next(ki), (4 * H, d), jnp.float32, -s, s))
        w_hh.append(jax.random.uniform(next(ki), (4 * H, H), jnp.float32, -s, s))
        b_ih.append(jax.random.uniform(next(ki), (4 * H,), jnp.float32, -s, s))
        b_hh.append(jax.random.uniform(next(ki), (4 * H,), jnp.float32, -s, s))

    out_w = jax.random.uniform(next(ki), (4, H), jnp.float32, -s, s)
    out_b = jax.random.uniform(next(ki), (4,), jnp.float32, -s, s)

    return dict(conv_w=conv_w, conv_b=conv_b, w_ih=w_ih, w_hh=w_hh,
                b_ih=b_ih, b_hh=b_hh, out_w=out_w, out_b=out_b,
                hidden_size=H, num_layers=L)


if __name__ == "__main__":
    T, B = 8, 2
    INPUT, INTER, HIDDEN, LAYERS, KSIZE = 16, 32, 32, 2, 3

    key = jax.random.PRNGKey(0)
    kp, kx = jax.random.split(key)
    raw = make_raw_params(kp, INPUT, INTER, HIDDEN, LAYERS, KSIZE)
    prep = prepare_params(raw)

    padded = jax.random.normal(kx, (T, B, INPUT), jnp.float32)    # (T, B, Cin)
    lengths = jnp.array([8, 5], dtype=jnp.int32)  # sorted desc, like pack_padded_sequence

    preds = forward(prep, padded, lengths)                        # (L, B, 4)
    preds = jax.block_until_ready(preds)

    ref = forward_ref(raw, padded, lengths)
    assert preds.shape == (LAYERS, B, 4)
    assert jnp.allclose(preds, ref, atol=1e-4, rtol=1e-4), (preds, ref)

    print("KERNEL_OK")
</pallas_src>

<mosaic_0001>
module attributes {stable_mosaic.version = 11 : i64} {
  func.func @convlstm_kernel(%arg0: memref<80x16xf32, #tpu.memory_space<vmem>>, %arg1: memref<8x1xi32, #tpu.memory_space<vmem>>, %arg2: memref<3x16x128xf32, #tpu.memory_space<vmem>>, %arg3: memref<1x128xf32, #tpu.memory_space<vmem>>, %arg4: memref<2x128x512xf32, #tpu.memory_space<vmem>>, %arg5: memref<2x128x512xf32, #tpu.memory_space<vmem>>, %arg6: memref<2x1x512xf32, #tpu.memory_space<vmem>>, %arg7: memref<128x128xf32, #tpu.memory_space<vmem>>, %arg8: memref<1x128xf32, #tpu.memory_space<vmem>>, %arg9: memref<2x8x128xf32, #tpu.memory_space<vmem>>, %arg10: memref<64x128xf32, #tpu.memory_space<vmem>>, %arg11: memref<64x512xf32, #tpu.memory_space<vmem>>) attributes {dimension_semantics = [], scalar_prefetch = 0 : i64, scratch_operands = 2 : i64, tpu.core_type = #tpu.core_type<tc>} {
    %c0 = arith.constant 0 : index
    %c0_0 = arith.constant 0 : index
    %0 = vector.load %arg1[%c0, %c0_0] : memref<8x1xi32, #tpu.memory_space<vmem>>, vector<8x1xi32>
    %cst = arith.constant 0.000000e+00 : f32
    %1 = vector.broadcast %cst : f32 to vector<64x128xf32>
    %c0_1 = arith.constant 0 : index
    %c0_2 = arith.constant 0 : index
    %2 = vector.load %arg3[%c0_1, %c0_2] : memref<1x128xf32, #tpu.memory_space<vmem>>, vector<1x128xf32>
    %3 = vector.broadcast %2 : vector<1x128xf32> to vector<64x128xf32>
    %4 = arith.addf %1, %3 : vector<64x128xf32>
    %c0_3 = arith.constant 0 : index
    %c0_4 = arith.constant 0 : index
    %5 = vector.load %arg0[%c0_3, %c0_4] : memref<80x16xf32, #tpu.memory_space<vmem>>, vector<64x16xf32>
    %c0_5 = arith.constant 0 : index
    %c0_6 = arith.constant 0 : index
    %c0_7 = arith.constant 0 : index
    %6 = vector.load %arg2[%c0_5, %c0_6, %c0_7] : memref<3x16x128xf32, #tpu.memory_space<vmem>>, vector<1x16x128xf32>
    %7 = vector.shape_cast %6 : vector<1x16x128xf32> to vector<16x128xf32>
    %cst_8 = arith.constant dense<0.000000e+00> : vector<64x128xf32>
    %8 = tpu.matmul %5, %7, %cst_8 {dimension_numbers = #tpu.dot_dimension_numbers<[1], [0], [0], [1], [0, 0, 1, 1], [], []>} : vector<64x16xf32>, vector<16x128xf32>, vector<64x128xf32> -> vector<64x128xf32>
    %9 = arith.addf %4, %8 : vector<64x128xf32>
    %c8 = arith.constant 8 : index
    %c0_9 = arith.constant 0 : index
    %10 = vector.load %arg0[%c8, %c0_9] : memref<80x16xf32, #tpu.memory_space<vmem>>, vector<64x16xf32>
    %c1 = arith.constant 1 : index
    %c0_10 = arith.constant 0 : index
    %c0_11 = arith.constant 0 : index
    %11 = vector.load %arg2[%c1, %c0_10, %c0_11] : memref<3x16x128xf32, #tpu.memory_space<vmem>>, vector<1x16x128xf32>
    %12 = vector.shape_cast %11 : vector<1x16x128xf32> to vector<16x128xf32>
    %cst_12 = arith.constant dense<0.000000e+00> : vector<64x128xf32>
    %13 = tpu.matmul %10, %12, %cst_12 {dimension_numbers = #tpu.dot_dimension_numbers<[1], [0], [0], [1], [0, 0, 1, 1], [], []>} : vector<64x16xf32>, vector<16x128xf32>, vector<64x128xf32> -> vector<64x128xf32>
    %14 = arith.addf %9, %13 : vector<64x128xf32>
    %c16 = arith.constant 16 : index
    %c0_13 = arith.constant 0 : index
    %15 = vector.load %arg0[%c16, %c0_13] : memref<80x16xf32, #tpu.memory_space<vmem>>, vector<64x16xf32>
    %c2 = arith.constant 2 : index
    %c0_14 = arith.constant 0 : index
    %c0_15 = arith.constant 0 : index
    %16 = vector.load %arg2[%c2, %c0_14, %c0_15] : memref<3x16x128xf32, #tpu.memory_space<vmem>>, vector<1x16x128xf32>
    %17 = vector.shape_cast %16 : vector<1x16x128xf32> to vector<16x128xf32>
    %cst_16 = arith.constant dense<0.000000e+00> : vector<64x128xf32>
    %18 = tpu.matmul %15, %17, %cst_16 {dimension_numbers = #tpu.dot_dimension_numbers<[1], [0], [0], [1], [0, 0, 1, 1], [], []>} : vector<64x16xf32>, vector<16x128xf32>, vector<64x128xf32> -> vector<64x128xf32>
    %19 = arith.addf %14, %18 : vector<64x128xf32>
    %cst_17 = arith.constant 0.000000e+00 : f32
    %20 = vector.broadcast %cst_17 : f32 to vector<64x128xf32>
    %21 = arith.maximumf %19, %20 : vector<64x128xf32>
    %c0_18 = arith.constant 0 : index
    %c0_19 = arith.constant 0 : index
    %22 = vector.load %arg10[%c0_18, %c0_19] : memref<64x128xf32, #tpu.memory_space<vmem>>, vector<64x128xf32>
    tpu.vector_store %arg10[%c0_18, %c0_19], %21 {strides = array<i32>} : memref<64x128xf32, #tpu.memory_space<vmem>>, vector<64x128xf32>,
    %c0_20 = arith.constant 0 : index
    %c0_21 = arith.constant 0 : index
    %23 = vector.load %arg10[%c0_20, %c0_21] : memref<64x128xf32, #tpu.memory_space<vmem>>, vector<64x128xf32>
    %c0_22 = arith.constant 0 : index
    %c0_23 = arith.constant 0 : index
    %c0_24 = arith.constant 0 : index
    %24 = vector.load %arg4[%c0_22, %c0_23, %c0_24] : memref<2x128x512xf32, #tpu.memory_space<vmem>>, vector<1x128x512xf32>
    %25 = vector.shape_cast %24 : vector<1x128x512xf32> to vector<128x512xf32>
    %cst_25 = arith.constant dense<0.000000e+00> : vector<64x512xf32>
    %26 = tpu.matmul %23, %25, %cst_25 {dimension_numbers = #tpu.dot_dimension_numbers<[1], [0], [0], [1], [0, 0, 1, 1], [], []>} : vector<64x128xf32>, vector<128x512xf32>, vector<64x512xf32> -> vector<64x512xf32>
    %c0_26 = arith.constant 0 : index
    %c0_27 = arith.constant 0 : index
    %c0_28 = arith.constant 0 : index
    %27 = vector.load %arg6[%c0_26, %c0_27, %c0_28] : memref<2x1x512xf32, #tpu.memory_space<vmem>>, vector<1x1x512xf32>
    %28 = vector.shape_cast %27 : vector<1x1x512xf32> to vector<1x512xf32>
    %29 = vector.broadcast %28 : vector<1x512xf32> to vector<64x512xf32>
    %30 = arith.addf %26, %29 : vector<64x512xf32>
    %c0_29 = arith.constant 0 : index
    %c0_30 = arith.constant 0 : index
    %31 = vector.load %arg11[%c0_29, %c0_30] : memref<64x512xf32, #tpu.memory_space<vmem>>, vector<64x512xf32>
    tpu.vector_store %arg11[%c0_29, %c0_30], %30 {strides = array<i32>} : memref<64x512xf32, #tpu.memory_space<vmem>>, vector<64x512xf32>,
    %cst_31 = arith.constant 0.000000e+00 : f32
    %32 = vector.broadcast %cst_31 : f32 to vector<8x128xf32>
    %cst_32 = arith.constant 0.000000e+00 : f32
    %33 = vector.broadcast %cst_32 : f32 to vector<8x128xf32>
    %c0_33 = arith.constant 0 : index
    %c0_34 = arith.constant 0 : index
    %34 = vector.load %arg11[%c0_33, %c0_34] : memref<64x512xf32, #tpu.memory_space<vmem>>, vector<8x512xf32>
    %c0_35 = arith.constant 0 : index
    %c0_36 = arith.constant 0 : index
    %c0_37 = arith.constant 0 : index
    %35 = vector.load %arg5[%c0_35, %c0_36, %c0_37] : memref<2x128x512xf32, #tpu.memory_space<vmem>>, vector<1x128x512xf32>
    %36 = vector.shape_cast %35 : vector<1x128x512xf32> to vector<128x512xf32>
    %cst_38 = arith.constant dense<0.000000e+00> : vector<8x512xf32>
    %37 = tpu.matmul %32, %36, %cst_38 {dimension_numbers = #tpu.dot_dimension_numbers<[1], [0], [0], [1], [0, 0, 1, 1], [], []>} : vector<8x128xf32>, vector<128x512xf32>, vector<8x512xf32> -> vector<8x512xf32>
    %38 = arith.addf %34, %37 : vector<8x512xf32>
    %39 = vector.extract_strided_slice %38 {offsets = [0, 0], sizes = [8, 128], strides = [1, 1]} : vector<8x512xf32> to vector<8x128xf32>
    %40 = arith.negf %39 : vector<8x128xf32>
    %41 = math.exp %40 : vector<8x128xf32>
    %cst_39 = arith.constant 1.000000e+00 : f32
    %42 = vector.broadcast %cst_39 : f32 to vector<8x128xf32>
    %43 = arith.addf %42, %41 : vector<8x128xf32>
    %44 = arith.divf %42, %43 : vector<8x128xf32>
    %45 = vector.extract_strided_slice %38 {offsets = [0, 128], sizes = [8, 128], strides = [1, 1]} : vector<8x512xf32> to vector<8x128xf32>
    %46 = arith.negf %45 : vector<8x128xf32>
    %47 = math.exp %46 : vector<8x128xf32>
    %cst_40 = arith.constant 1.000000e+00 : f32
    %48 = vector.broadcast %cst_40 : f32 to vector<8x128xf32>
    %49 = arith.addf %48, %47 : vector<8x128xf32>
    %50 = arith.divf %48, %49 : vector<8x128xf32>
    %51 = vector.extract_strided_slice %38 {offsets = [0, 256], sizes = [8, 128], strides = [1, 1]} : vector<8x512xf32> to vector<8x128xf32>
    %52 = math.tanh %51 : vector<8x128xf32>
    %53 = vector.extract_strided_slice %38 {offsets = [0, 384], sizes = [8, 128], strides = [1, 1]} : vector<8x512xf32> to vector<8x128xf32>
    %54 = arith.negf %53 : vector<8x128xf32>
    %55 = math.exp %54 : vector<8x128xf32>
    %cst_41 = arith.constant 1.000000e+00 : f32
    %56 = vector.broadcast %cst_41 : f32 to vector<8x128xf32>
    %57 = arith.addf %56, %55 : vector<8x128xf32>
    %58 = arith.divf %56, %57 : vector<8x128xf32>
    %59 = arith.mulf %50, %33 : vector<8x128xf32>
    %60 = arith.mulf %44, %52 : vector<8x128xf32>
    %61 = arith.addf %59, %60 : vector<8x128xf32>
    %62 = math.tanh %61 : vector<8x128xf32>
    %63 = arith.mulf %58, %62 : vector<8x128xf32>
    %c0_i32 = arith.constant 0 : i32
    %64 = vector.broadcast %c0_i32 : i32 to vector<8x1xi32>
    %65 = arith.cmpi sgt, %0, %64 : vector<8x1xi32>
    %66 = vector.shape_cast %65 : vector<8x1xi1> to vector<8x1xi1>
    %67 = vector.broadcast %66 : vector<8x1xi1> to vector<8x128xi1>
    %68 = arith.select %67, %63, %32 : vector<8x128xi1>, vector<8x128xf32>
    %69 = vector.shape_cast %65 : vector<8x1xi1> to vector<8x1xi1>
    %70 = vector.broadcast %69 : vector<8x1xi1> to vector<8x128xi1>
    %71 = arith.select %70, %61, %33 : vector<8x128xi1>, vector<8x128xf32>
    %c0_42 = arith.constant 0 : index
    %c0_43 = arith.constant 0 : index
    %72 = vector.load %arg10[%c0_42, %c0_43] : memref<64x128xf32, #tpu.memory_space<vmem>>, vector<8x128xf32>
    tpu.vector_store %arg10[%c0_42, %c0_43], %68 {strides = array<i32>} : memref<64x128xf32, #tpu.memory_space<vmem>>, vector<8x128xf32>,
    %c8_44 = arith.constant 8 : index
    %c0_45 = arith.constant 0 : index
    %73 = vector.load %arg11[%c8_44, %c0_45] : memref<64x512xf32, #tpu.memory_space<vmem>>, vector<8x512xf32>
    %c0_46 = arith.constant 0 : index
    %c0_47 = arith.constant 0 : index
    %c0_48 = arith.constant 0 : index
    %74 = vector.load %arg5[%c0_46, %c0_47, %c0_48] : memref<2x128x512xf32, #tpu.memory_space<vmem>>, vector<1x128x512xf32>
    %75 = vector.shape_cast %74 : vector<1x128x512xf32> to vector<128x512xf32>
    %cst_49 = arith.constant dense<0.000000e+00> : vector<8x512xf32>
    %76 = tpu.matmul %68, %75, %cst_49 {dimension_numbers = #tpu.dot_dimension_numbers<[1], [0], [0], [1], [0, 0, 1, 1], [], []>} : vector<8x128xf32>, vector<128x512xf32>, vector<8x512xf32> -> vector<8x512xf32>
    %77 = arith.addf %73, %76 : vector<8x512xf32>
    %78 = vector.extract_strided_slice %77 {offsets = [0, 0], sizes = [8, 128], strides = [1, 1]} : vector<8x512xf32> to vector<8x128xf32>
    %79 = arith.negf %78 : vector<8x128xf32>
    %80 = math.exp %79 : vector<8x128xf32>
    %cst_50 = arith.constant 1.000000e+00 : f32
    %81 = vector.broadcast %cst_50 : f32 to vector<8x128xf32>
    %82 = arith.addf %81, %80 : vector<8x128xf32>
    %83 = arith.divf %81, %82 : vector<8x128xf32>
    %84 = vector.extract_strided_slice %77 {offsets = [0, 128], sizes = [8, 128], strides = [1, 1]} : vector<8x512xf32> to vector<8x128xf32>
    %85 = arith.negf %84 : vector<8x128xf32>
    %86 = math.exp %85 : vector<8x128xf32>
    %cst_51 = arith.constant 1.000000e+00 : f32
    %87 = vector.broadcast %cst_51 : f32 to vector<8x128xf32>
    %88 = arith.addf %87, %86 : vector<8x128xf32>
    %89 = arith.divf %87, %88 : vector<8x128xf32>
    %90 = vector.extract_strided_slice %77 {offsets = [0, 256], sizes = [8, 128], strides = [1, 1]} : vector<8x512xf32> to vector<8x128xf32>
    %91 = math.tanh %90 : vector<8x128xf32>
    %92 = vector.extract_strided_slice %77 {offsets = [0, 384], sizes = [8, 128], strides = [1, 1]} : vector<8x512xf32> to vector<8x128xf32>
    %93 = arith.negf %92 : vector<8x128xf32>
    %94 = math.exp %93 : vector<8x128xf32>
    %cst_52 = arith.constant 1.000000e+00 : f32
    %95 = vector.broadcast %cst_52 : f32 to vector<8x128xf32>
    %96 = arith.addf %95, %94 : vector<8x128xf32>
    %97 = arith.divf %95, %96 : vector<8x128xf32>
    %98 = arith.mulf %89, %71 : vector<8x128xf32>
    %99 = arith.mulf %83, %91 : vector<8x128xf32>
    %100 = arith.addf %98, %99 : vector<8x128xf32>
    %101 = math.tanh %100 : vector<8x128xf32>
    %102 = arith.mulf %97, %101 : vector<8x128xf32>
    %c1_i32 = arith.constant 1 : i32
    %103 = vector.broadcast %c1_i32 : i32 to vector<8x1xi32>
    %104 = arith.cmpi sgt, %0, %103 : vector<8x1xi32>
    %105 = vector.shape_cast %104 : vector<8x1xi1> to vector<8x1xi1>
    %106 = vector.broadcast %105 : vector<8x1xi1> to vector<8x128xi1>
    %107 = arith.select %106, %102, %68 : vector<8x128xi1>, vector<8x128xf32>
    %108 = vector.shape_cast %104 : vector<8x1xi1> to vector<8x1xi1>
    %109 = vector.broadcast %108 : vector<8x1xi1> to vector<8x128xi1>
    %110 = arith.select %109, %100, %71 : vector<8x128xi1>, vector<8x128xf32>
    %c8_53 = arith.constant 8 : index
    %c0_54 = arith.constant 0 : index
    %111 = vector.load %arg10[%c8_53, %c0_54] : memref<64x128xf32, #tpu.memory_space<vmem>>, vector<8x128xf32>
    tpu.vector_store %arg10[%c8_53, %c0_54], %107 {strides = array<i32>} : memref<64x128xf32, #tpu.memory_space<vmem>>, vector<8x128xf32>,
    %c16_55 = arith.constant 16 : index
    %c0_56 = arith.constant 0 : index
    %112 = vector.load %arg11[%c16_55, %c0_56] : memref<64x512xf32, #tpu.memory_space<vmem>>, vector<8x512xf32>
    %c0_57 = arith.constant 0 : index
    %c0_58 = arith.constant 0 : index
    %c0_59 = arith.constant 0 : index
    %113 = vector.load %arg5[%c0_57, %c0_58, %c0_59] : memref<2x128x512xf32, #tpu.memory_space<vmem>>, vector<1x128x512xf32>
    %114 = vector.shape_cast %113 : vector<1x128x512xf32> to vector<128x512xf32>
    %cst_60 = arith.constant dense<0.000000e+00> : vector<8x512xf32>
    %115 = tpu.matmul %107, %114, %cst_60 {dimension_numbers = #tpu.dot_dimension_numbers<[1], [0], [0], [1], [0, 0, 1, 1], [], []>} : vector<8x128xf32>, vector<128x512xf32>, vector<8x512xf32> -> vector<8x512xf32>
    %116 = arith.addf %112, %115 : vector<8x512xf32>
    %117 = vector.extract_strided_slice %116 {offsets = [0, 0], sizes = [8, 128], strides = [1, 1]} : vector<8x512xf32> to vector<8x128xf32>
    %118 = arith.negf %117 : vector<8x128xf32>
    %119 = math.exp %118 : vector<8x128xf32>
    %cst_61 = arith.constant 1.000000e+00 : f32
    %120 = vector.broadcast %cst_61 : f32 to vector<8x128xf32>
    %121 = arith.addf %120, %119 : vector<8x128xf32>
    %122 = arith.divf %120, %121 : vector<8x128xf32>
    %123 = vector.extract_strided_slice %116 {offsets = [0, 128], sizes = [8, 128], strides = [1, 1]} : vector<8x512xf32> to vector<8x128xf32>
    %124 = arith.negf %123 : vector<8x128xf32>
    %125 = math.exp %124 : vector<8x128xf32>
    %cst_62 = arith.constant 1.000000e+00 : f32
    %126 = vector.broadcast %cst_62 : f32 to vector<8x128xf32>
    %127 = arith.addf %126, %125 : vector<8x128xf32>
    %128 = arith.divf %126, %127 : vector<8x128xf32>
    %129 = vector.extract_strided_slice %116 {offsets = [0, 256], sizes = [8, 128], strides = [1, 1]} : vector<8x512xf32> to vector<8x128xf32>
    %130 = math.tanh %129 : vector<8x128xf32>
    %131 = vector.extract_strided_slice %116 {offsets = [0, 384], sizes = [8, 128], strides = [1, 1]} : vector<8x512xf32> to vector<8x128xf32>
    %132 = arith.negf %131 : vector<8x128xf32>
    %133 = math.exp %132 : vector<8x128xf32>
    %cst_63 = arith.constant 1.000000e+00 : f32
    %134 = vector.broadcast %cst_63 : f32 to vector<8x128xf32>
    %135 = arith.addf %134, %133 : vector<8x128xf32>
    %136 = arith.divf %134, %135 : vector<8x128xf32>
    %137 = arith.mulf %128, %110 : vector<8x128xf32>
    %138 = arith.mulf %122, %130 : vector<8x128xf32>
    %139 = arith.addf %137, %138 : vector<8x128xf32>
    %140 = math.tanh %139 : vector<8x128xf32>
    %141 = arith.mulf %136, %140 : vector<8x128xf32>
    %c2_i32 = arith.constant 2 : i32
    %142 = vector.broadcast %c2_i32 : i32 to vector<8x1xi32>
    %143 = arith.cmpi sgt, %0, %142 : vector<8x1xi32>
    %144 = vector.shape_cast %143 : vector<8x1xi1> to vector<8x1xi1>
    %145 = vector.broadcast %144 : vector<8x1xi1> to vector<8x128xi1>
    %146 = arith.select %145, %141, %107 : vector<8x128xi1>, vector<8x128xf32>
    %147 = vector.shape_cast %143 : vector<8x1xi1> to vector<8x1xi1>
    %148 = vector.broadcast %147 : vector<8x1xi1> to vector<8x128xi1>
    %149 = arith.select %148, %139, %110 : vector<8x128xi1>, vector<8x128xf32>
    %c16_64 = arith.constant 16 : index
    %c0_65 = arith.constant 0 : index
    %150 = vector.load %arg10[%c16_64, %c0_65] : memref<64x128xf32, #tpu.memory_space<vmem>>, vector<8x128xf32>
    tpu.vector_store %arg10[%c16_64, %c0_65], %146 {strides = array<i32>} : memref<64x128xf32, #tpu.memory_space<vmem>>, vector<8x128xf32>,
    %c24 = arith.constant 24 : index
    %c0_66 = arith.constant 0 : index
    %151 = vector.load %arg11[%c24, %c0_66] : memref<64x512xf32, #tpu.memory_space<vmem>>, vector<8x512xf32>
    %c0_67 = arith.constant 0 : index
    %c0_68 = arith.constant 0 : index
    %c0_69 = arith.constant 0 : index
    %152 = vector.load %arg5[%c0_67, %c0_68, %c0_69] : memref<2x128x512xf32, #tpu.memory_space<vmem>>, vector<1x128x512xf32>
    %153 = vector.shape_cast %152 : vector<1x128x512xf32> to vector<128x512xf32>
    %cst_70 = arith.constant dense<0.000000e+00> : vector<8x512xf32>
    %154 = tpu.matmul %146, %153, %cst_70 {dimension_numbers = #tpu.dot_dimension_numbers<[1], [0], [0], [1], [0, 0, 1, 1], [], []>} : vector<8x128xf32>, vector<128x512xf32>, vector<8x512xf32> -> vector<8x512xf32>
    %155 = arith.addf %151, %154 : vector<8x512xf32>
    %156 = vector.extract_strided_slice %155 {offsets = [0, 0], sizes = [8, 128], strides = [1, 1]} : vector<8x512xf32> to vector<8x128xf32>
    %157 = arith.negf %156 : vector<8x128xf32>
    %158 = math.exp %157 : vector<8x128xf32>
    %cst_71 = arith.constant 1.000000e+00 : f32
    %159 = vector.broadcast %cst_71 : f32 to vector<8x128xf32>
    %160 = arith.addf %159, %158 : vector<8x128xf32>
    %161 = arith.divf %159, %160 : vector<8x128xf32>
    %162 = vector.extract_strided_slice %155 {offsets = [0, 128], sizes = [8, 128], strides = [1, 1]} : vector<8x512xf32> to vector<8x128xf32>
    %163 = arith.negf %162 : vector<8x128xf32>
    %164 = math.exp %163 : vector<8x128xf32>
    %cst_72 = arith.constant 1.000000e+00 : f32
    %165 = vector.broadcast %cst_72 : f32 to vector<8x128xf32>
    %166 = arith.addf %165, %164 : vector<8x128xf32>
    %167 = arith.divf %165, %166 : vector<8x128xf32>
    %168 = vector.extract_strided_slice %155 {offsets = [0, 256], sizes = [8, 128], strides = [1, 1]} : vector<8x512xf32> to vector<8x128xf32>
    %169 = math.tanh %168 : vector<8x128xf32>
    %170 = vector.extract_strided_slice %155 {offsets = [0, 384], sizes = [8, 128], strides = [1, 1]} : vector<8x512xf32> to vector<8x128xf32>
    %171 = arith.negf %170 : vector<8x128xf32>
    %172 = math.exp %171 : vector<8x128xf32>
    %cst_73 = arith.constant 1.000000e+00 : f32
    %173 = vector.broadcast %cst_73 : f32 to vector<8x128xf32>
    %174 = arith.addf %173, %172 : vector<8x128xf32>
    %175 = arith.divf %173, %174 : vector<8x128xf32>
    %176 = arith.mulf %167, %149 : vector<8x128xf32>
    %177 = arith.mulf %161, %169 : vector<8x128xf32>
    %178 = arith.addf %176, %177 : vector<8x128xf32>
    %179 = math.tanh %178 : vector<8x128xf32>
    %180 = arith.mulf %175, %179 : vector<8x128xf32>
    %c3_i32 = arith.constant 3 : i32
    %181 = vector.broadcast %c3_i32 : i32 to vector<8x1xi32>
    %182 = arith.cmpi sgt, %0, %181 : vector<8x1xi32>
    %183 = vector.shape_cast %182 : vector<8x1xi1> to vector<8x1xi1>
    %184 = vector.broadcast %183 : vector<8x1xi1> to vector<8x128xi1>
    %185 = arith.select %184, %180, %146 : vector<8x128xi1>, vector<8x128xf32>
    %186 = vector.shape_cast %182 : vector<8x1xi1> to vector<8x1xi1>
    %187 = vector.broadcast %186 : vector<8x1xi1> to vector<8x128xi1>
    %188 = arith.select %187, %178, %149 : vector<8x128xi1>, vector<8x128xf32>
    %c24_74 = arith.constant 24 : index
    %c0_75 = arith.constant 0 : index
    %189 = vector.load %arg10[%c24_74, %c0_75] : memref<64x128xf32, #tpu.memory_space<vmem>>, vector<8x128xf32>
    tpu.vector_store %arg10[%c24_74, %c0_75], %185 {strides = array<i32>} : memref<64x128xf32, #tpu.memory_space<vmem>>, vector<8x128xf32>,
    %c32 = arith.constant 32 : index
    %c0_76 = arith.constant 0 : index
    %190 = vector.load %arg11[%c32, %c0_76] : memref<64x512xf32, #tpu.memory_space<vmem>>, vector<8x512xf32>
    %c0_77 = arith.constant 0 : index
    %c0_78 = arith.constant 0 : index
    %c0_79 = arith.constant 0 : index
    %191 = vector.load %arg5[%c0_77, %c0_78, %c0_79] : memref<2x128x512xf32, #tpu.memory_space<vmem>>, vector<1x128x512xf32>
    %192 = vector.shape_cast %191 : vector<1x128x512xf32> to vector<128x512xf32>
    %cst_80 = arith.constant dense<0.000000e+00> : vector<8x512xf32>
    %193 = tpu.matmul %185, %192, %cst_80 {dimension_numbers = #tpu.dot_dimension_numbers<[1], [0], [0], [1], [0, 0, 1, 1], [], []>} : vector<8x128xf32>, vector<128x512xf32>, vector<8x512xf32> -> vector<8x512xf32>
    %194 = arith.addf %190, %193 : vector<8x512xf32>
    %195 = vector.extract_strided_slice %194 {offsets = [0, 0], sizes = [8, 128], strides = [1, 1]} : vector<8x512xf32> to vector<8x128xf32>
    %196 = arith.negf %195 : vector<8x128xf32>
    %197 = math.exp %196 : vector<8x128xf32>
    %cst_81 = arith.constant 1.000000e+00 : f32
    %198 = vector.broadcast %cst_81 : f32 to vector<8x128xf32>
    %199 = arith.addf %198, %197 : vector<8x128xf32>
    %200 = arith.divf %198, %199 : vector<8x128xf32>
    %201 = vector.extract_strided_slice %194 {offsets = [0, 128], sizes = [8, 128], strides = [1, 1]} : vector<8x512xf32> to vector<8x128xf32>
    %202 = arith.negf %201 : vector<8x128xf32>
    %203 = math.exp %202 : vector<8x128xf32>
    %cst_82 = arith.constant 1.000000e+00 : f32
    %204 = vector.broadcast %cst_82 : f32 to vector<8x128xf32>
    %205 = arith.addf %204, %203 : vector<8x128xf32>
    %206 = arith.divf %204, %205 : vector<8x128xf32>
    %207 = vector.extract_strided_slice %194 {offsets = [0, 256], sizes = [8, 128], strides = [1, 1]} : vector<8x512xf32> to vector<8x128xf32>
    %208 = math.tanh %207 : vector<8x128xf32>
    %209 = vector.extract_strided_slice %194 {offsets = [0, 384], sizes = [8, 128], strides = [1, 1]} : vector<8x512xf32> to vector<8x128xf32>
    %210 = arith.negf %209 : vector<8x128xf32>
    %211 = math.exp %210 : vector<8x128xf32>
    %cst_83 = arith.constant 1.000000e+00 : f32
    %212 = vector.broadcast %cst_83 : f32 to vector<8x128xf32>
    %213 = arith.addf %212, %211 : vector<8x128xf32>
    %214 = arith.divf %212, %213 : vector<8x128xf32>
    %215 = arith.mulf %206, %188 : vector<8x128xf32>
    %216 = arith.mulf %200, %208 : vector<8x128xf32>
    %217 = arith.addf %215, %216 : vector<8x128xf32>
    %218 = math.tanh %217 : vector<8x128xf32>
    %219 = arith.mulf %214, %218 : vector<8x128xf32>
    %c4_i32 = arith.constant 4 : i32
    %220 = vector.broadcast %c4_i32 : i32 to vector<8x1xi32>
    %221 = arith.cmpi sgt, %0, %220 : vector<8x1xi32>
    %222 = vector.shape_cast %221 : vector<8x1xi1> to vector<8x1xi1>
    %223 = vector.broadcast %222 : vector<8x1xi1> to vector<8x128xi1>
    %224 = arith.select %223, %219, %185 : vector<8x128xi1>, vector<8x128xf32>
    %225 = vector.shape_cast %221 : vector<8x1xi1> to vector<8x1xi1>
    %226 = vector.broadcast %225 : vector<8x1xi1> to vector<8x128xi1>
    %227 = arith.select %226, %217, %188 : vector<8x128xi1>, vector<8x128xf32>
    %c32_84 = arith.constant 32 : index
    %c0_85 = arith.constant 0 : index
    %228 = vector.load %arg10[%c32_84, %c0_85] : memref<64x128xf32, #tpu.memory_space<vmem>>, vector<8x128xf32>
    tpu.vector_store %arg10[%c32_84, %c0_85], %224 {strides = array<i32>} : memref<64x128xf32, #tpu.memory_space<vmem>>, vector<8x128xf32>,
    %c40 = arith.constant 40 : index
    %c0_86 = arith.constant 0 : index
    %229 = vector.load %arg11[%c40, %c0_86] : memref<64x512xf32, #tpu.memory_space<vmem>>, vector<8x512xf32>
    %c0_87 = arith.constant 0 : index
    %c0_88 = arith.constant 0 : index
    %c0_89 = arith.constant 0 : index
    %230 = vector.load %arg5[%c0_87, %c0_88, %c0_89] : memref<2x128x512xf32, #tpu.memory_space<vmem>>, vector<1x128x512xf32>
    %231 = vector.shape_cast %230 : vector<1x128x512xf32> to vector<128x512xf32>
    %cst_90 = arith.constant dense<0.000000e+00> : vector<8x512xf32>
    %232 = tpu.matmul %224, %231, %cst_90 {dimension_numbers = #tpu.dot_dimension_numbers<[1], [0], [0], [1], [0, 0, 1, 1], [], []>} : vector<8x128xf32>, vector<128x512xf32>, vector<8x512xf32> -> vector<8x512xf32>
    %233 = arith.addf %229, %232 : vector<8x512xf32>
    %234 = vector.extract_strided_slice %233 {offsets = [0, 0], sizes = [8, 128], strides = [1, 1]} : vector<8x512xf32> to vector<8x128xf32>
    %235 = arith.negf %234 : vector<8x128xf32>
    %236 = math.exp %235 : vector<8x128xf32>
    %cst_91 = arith.constant 1.000000e+00 : f32
    %237 = vector.broadcast %cst_91 : f32 to vector<8x128xf32>
    %238 = arith.addf %237, %236 : vector<8x128xf32>
    %239 = arith.divf %237, %238 : vector<8x128xf32>
    %240 = vector.extract_strided_slice %233 {offsets = [0, 128], sizes = [8, 128], strides = [1, 1]} : vector<8x512xf32> to vector<8x128xf32>
    %241 = arith.negf %240 : vector<8x128xf32>
    %242 = math.exp %241 : vector<8x128xf32>
    %cst_92 = arith.constant 1.000000e+00 : f32
    %243 = vector.broadcast %cst_92 : f32 to vector<8x128xf32>
    %244 = arith.addf %243, %242 : vector<8x128xf32>
    %245 = arith.divf %243, %244 : vector<8x128xf32>
    %246 = vector.extract_strided_slice %233 {offsets = [0, 256], sizes = [8, 128], strides = [1, 1]} : vector<8x512xf32> to vector<8x128xf32>
    %247 = math.tanh %246 : vector<8x128xf32>
    %248 = vector.extract_strided_slice %233 {offsets = [0, 384], sizes = [8, 128], strides = [1, 1]} : vector<8x512xf32> to vector<8x128xf32>
    %249 = arith.negf %248 : vector<8x128xf32>
    %250 = math.exp %249 : vector<8x128xf32>
    %cst_93 = arith.constant 1.000000e+00 : f32
    %251 = vector.broadcast %cst_93 : f32 to vector<8x128xf32>
    %252 = arith.addf %251, %250 : vector<8x128xf32>
    %253 = arith.divf %251, %252 : vector<8x128xf32>
    %254 = arith.mulf %245, %227 : vector<8x128xf32>
    %255 = arith.mulf %239, %247 : vector<8x128xf32>
    %256 = arith.addf %254, %255 : vector<8x128xf32>
    %257 = math.tanh %256 : vector<8x128xf32>
    %258 = arith.mulf %253, %257 : vector<8x128xf32>
    %c5_i32 = arith.constant 5 : i32
    %259 = vector.broadcast %c5_i32 : i32 to vector<8x1xi32>
    %260 = arith.cmpi sgt, %0, %259 : vector<8x1xi32>
    %261 = vector.shape_cast %260 : vector<8x1xi1> to vector<8x1xi1>
    %262 = vector.broadcast %261 : vector<8x1xi1> to vector<8x128xi1>
    %263 = arith.select %262, %258, %224 : vector<8x128xi1>, vector<8x128xf32>
    %264 = vector.shape_cast %260 : vector<8x1xi1> to vector<8x1xi1>
    %265 = vector.broadcast %264 : vector<8x1xi1> to vector<8x128xi1>
    %266 = arith.select %265, %256, %227 : vector<8x128xi1>, vector<8x128xf32>
    %c40_94 = arith.constant 40 : index
    %c0_95 = arith.constant 0 : index
    %267 = vector.load %arg10[%c40_94, %c0_95] : memref<64x128xf32, #tpu.memory_space<vmem>>, vector<8x128xf32>
    tpu.vector_store %arg10[%c40_94, %c0_95], %263 {strides = array<i32>} : memref<64x128xf32, #tpu.memory_space<vmem>>, vector<8x128xf32>,
    %c48 = arith.constant 48 : index
    %c0_96 = arith.constant 0 : index
    %268 = vector.load %arg11[%c48, %c0_96] : memref<64x512xf32, #tpu.memory_space<vmem>>, vector<8x512xf32>
    %c0_97 = arith.constant 0 : index
    %c0_98 = arith.constant 0 : index
    %c0_99 = arith.constant 0 : index
    %269 = vector.load %arg5[%c0_97, %c0_98, %c0_99] : memref<2x128x512xf32, #tpu.memory_space<vmem>>, vector<1x128x512xf32>
    %270 = vector.shape_cast %269 : vector<1x128x512xf32> to vector<128x512xf32>
    %cst_100 = arith.constant dense<0.000000e+00> : vector<8x512xf32>
    %271 = tpu.matmul %263, %270, %cst_100 {dimension_numbers = #tpu.dot_dimension_numbers<[1], [0], [0], [1], [0, 0, 1, 1], [], []>} : vector<8x128xf32>, vector<128x512xf32>, vector<8x512xf32> -> vector<8x512xf32>
    %272 = arith.addf %268, %271 : vector<8x512xf32>
    %273 = vector.extract_strided_slice %272 {offsets = [0, 0], sizes = [8, 128], strides = [1, 1]} : vector<8x512xf32> to vector<8x128xf32>
    %274 = arith.negf %273 : vector<8x128xf32>
    %275 = math.exp %274 : vector<8x128xf32>
    %cst_101 = arith.constant 1.000000e+00 : f32
    %276 = vector.broadcast %cst_101 : f32 to vector<8x128xf32>
    %277 = arith.addf %276, %275 : vector<8x128xf32>
    %278 = arith.divf %276, %277 : vector<8x128xf32>
    %279 = vector.extract_strided_slice %272 {offsets = [0, 128], sizes = [8, 128], strides = [1, 1]} : vector<8x512xf32> to vector<8x128xf32>
    %280 = arith.negf %279 : vector<8x128xf32>
    %281 = math.exp %280 : vector<8x128xf32>
    %cst_102 = arith.constant 1.000000e+00 : f32
    %282 = vector.broadcast %cst_102 : f32 to vector<8x128xf32>
    %283 = arith.addf %282, %281 : vector<8x128xf32>
    %284 = arith.divf %282, %283 : vector<8x128xf32>
    %285 = vector.extract_strided_slice %272 {offsets = [0, 256], sizes = [8, 128], strides = [1, 1]} : vector<8x512xf32> to vector<8x128xf32>
    %286 = math.tanh %285 : vector<8x128xf32>
    %287 = vector.extract_strided_slice %272 {offsets = [0, 384], sizes = [8, 128], strides = [1, 1]} : vector<8x512xf32> to vector<8x128xf32>
    %288 = arith.negf %287 : vector<8x128xf32>
    %289 = math.exp %288 : vector<8x128xf32>
    %cst_103 = arith.constant 1.000000e+00 : f32
    %290 = vector.broadcast %cst_103 : f32 to vector<8x128xf32>
    %291 = arith.addf %290, %289 : vector<8x128xf32>
    %292 = arith.divf %290, %291 : vector<8x128xf32>
    %293 = arith.mulf %284, %266 : vector<8x128xf32>
    %294 = arith.mulf %278, %286 : vector<8x128xf32>
    %295 = arith.addf %293, %294 : vector<8x128xf32>
    %296 = math.tanh %295 : vector<8x128xf32>
    %297 = arith.mulf %292, %296 : vector<8x128xf32>
    %c6_i32 = arith.constant 6 : i32
    %298 = vector.broadcast %c6_i32 : i32 to vector<8x1xi32>
    %299 = arith.cmpi sgt, %0, %298 : vector<8x1xi32>
    %300 = vector.shape_cast %299 : vector<8x1xi1> to vector<8x1xi1>
    %301 = vector.broadcast %300 : vector<8x1xi1> to vector<8x128xi1>
    %302 = arith.select %301, %297, %263 : vector<8x128xi1>, vector<8x128xf32>
    %303 = vector.shape_cast %299 : vector<8x1xi1> to vector<8x1xi1>
    %304 = vector.broadcast %303 : vector<8x1xi1> to vector<8x128xi1>
    %305 = arith.select %304, %295, %266 : vector<8x128xi1>, vector<8x128xf32>
    %c48_104 = arith.constant 48 : index
    %c0_105 = arith.constant 0 : index
    %306 = vector.load %arg10[%c48_104, %c0_105] : memref<64x128xf32, #tpu.memory_space<vmem>>, vector<8x128xf32>
    tpu.vector_store %arg10[%c48_104, %c0_105], %302 {strides = array<i32>} : memref<64x128xf32, #tpu.memory_space<vmem>>, vector<8x128xf32>,
    %c56 = arith.constant 56 : index
    %c0_106 = arith.constant 0 : index
    %307 = vector.load %arg11[%c56, %c0_106] : memref<64x512xf32, #tpu.memory_space<vmem>>, vector<8x512xf32>
    %c0_107 = arith.constant 0 : index
    %c0_108 = arith.constant 0 : index
    %c0_109 = arith.constant 0 : index
    %308 = vector.load %arg5[%c0_107, %c0_108, %c0_109] : memref<2x128x512xf32, #tpu.memory_space<vmem>>, vector<1x128x512xf32>
    %309 = vector.shape_cast %308 : vector<1x128x512xf32> to vector<128x512xf32>
    %cst_110 = arith.constant dense<0.000000e+00> : vector<8x512xf32>
    %310 = tpu.matmul %302, %309, %cst_110 {dimension_numbers = #tpu.dot_dimension_numbers<[1], [0], [0], [1], [0, 0, 1, 1], [], []>} : vector<8x128xf32>, vector<128x512xf32>, vector<8x512xf32> -> vector<8x512xf32>
    %311 = arith.addf %307, %310 : vector<8x512xf32>
    %312 = vector.extract_strided_slice %311 {offsets = [0, 0], sizes = [8, 128], strides = [1, 1]} : vector<8x512xf32> to vector<8x128xf32>
    %313 = arith.negf %312 : vector<8x128xf32>
    %314 = math.exp %313 : vector<8x128xf32>
    %cst_111 = arith.constant 1.000000e+00 : f32
    %315 = vector.broadcast %cst_111 : f32 to vector<8x128xf32>
    %316 = arith.addf %315, %314 : vector<8x128xf32>
    %317 = arith.divf %315, %316 : vector<8x128xf32>
    %318 = vector.extract_strided_slice %311 {offsets = [0, 128], sizes = [8, 128], strides = [1, 1]} : vector<8x512xf32> to vector<8x128xf32>
    %319 = arith.negf %318 : vector<8x128xf32>
    %320 = math.exp %319 : vector<8x128xf32>
    %cst_112 = arith.constant 1.000000e+00 : f32
    %321 = vector.broadcast %cst_112 : f32 to vector<8x128xf32>
    %322 = arith.addf %321, %320 : vector<8x128xf32>
    %323 = arith.divf %321, %322 : vector<8x128xf32>
    %324 = vector.extract_strided_slice %311 {offsets = [0, 256], sizes = [8, 128], strides = [1, 1]} : vector<8x512xf32> to vector<8x128xf32>
    %325 = math.tanh %324 : vector<8x128xf32>
    %326 = vector.extract_strided_slice %311 {offsets = [0, 384], sizes = [8, 128], strides = [1, 1]} : vector<8x512xf32> to vector<8x128xf32>
    %327 = arith.negf %326 : vector<8x128xf32>
    %328 = math.exp %327 : vector<8x128xf32>
    %cst_113 = arith.constant 1.000000e+00 : f32
    %329 = vector.broadcast %cst_113 : f32 to vector<8x128xf32>
    %330 = arith.addf %329, %328 : vector<8x128xf32>
    %331 = arith.divf %329, %330 : vector<8x128xf32>
    %332 = arith.mulf %323, %305 : vector<8x128xf32>
    %333 = arith.mulf %317, %325 : vector<8x128xf32>
    %334 = arith.addf %332, %333 : vector<8x128xf32>
    %335 = math.tanh %334 : vector<8x128xf32>
    %336 = arith.mulf %331, %335 : vector<8x128xf32>
    %c7_i32 = arith.constant 7 : i32
    %337 = vector.broadcast %c7_i32 : i32 to vector<8x1xi32>
    %338 = arith.cmpi sgt, %0, %337 : vector<8x1xi32>
    %339 = vector.shape_cast %338 : vector<8x1xi1> to vector<8x1xi1>
    %340 = vector.broadcast %339 : vector<8x1xi1> to vector<8x128xi1>
    %341 = arith.select %340, %336, %302 : vector<8x128xi1>, vector<8x128xf32>
    %c56_114 = arith.constant 56 : index
    %c0_115 = arith.constant 0 : index
    %342 = vector.load %arg10[%c56_114, %c0_115] : memref<64x128xf32, #tpu.memory_space<vmem>>, vector<8x128xf32>
    tpu.vector_store %arg10[%c56_114, %c0_115], %341 {strides = array<i32>} : memref<64x128xf32, #tpu.memory_space<vmem>>, vector<8x128xf32>,
    %c0_116 = arith.constant 0 : index
    %c0_117 = arith.constant 0 : index
    %343 = vector.load %arg7[%c0_116, %c0_117] : memref<128x128xf32, #tpu.memory_space<vmem>>, vector<128x128xf32>
    %cst_118 = arith.constant dense<0.000000e+00> : vector<8x128xf32>
    %344 = tpu.matmul %341, %343, %cst_118 {dimension_numbers = #tpu.dot_dimension_numbers<[1], [0], [0], [1], [0, 0, 1, 1], [], []>} : vector<8x128xf32>, vector<128x128xf32>, vector<8x128xf32> -> vector<8x128xf32>
    %c0_119 = arith.constant 0 : index
    %c0_120 = arith.constant 0 : index
    %345 = vector.load %arg8[%c0_119, %c0_120] : memref<1x128xf32, #tpu.memory_space<vmem>>, vector<1x128xf32>
    %346 = vector.broadcast %345 : vector<1x128xf32> to vector<8x128xf32>
    %347 = arith.addf %344, %346 : vector<8x128xf32>
    %c0_121 = arith.constant 0 : index
    %c0_122 = arith.constant 0 : index
    %c0_123 = arith.constant 0 : index
    %348 = vector.load %arg9[%c0_121, %c0_122, %c0_123] : memref<2x8x128xf32, #tpu.memory_space<vmem>>, vector<1x8x128xf32>
    %349 = vector.shape_cast %348 : vector<1x8x128xf32> to vector<8x128xf32>
    %350 = vector.shape_cast %347 : vector<8x128xf32> to vector<1x8x128xf32>
    tpu.vector_store %arg9[%c0_121, %c0_122, %c0_123], %350 {strides = array<i32>} : memref<2x8x128xf32, #tpu.memory_space<vmem>>, vector<1x8x128xf32>,
    %c0_124 = arith.constant 0 : index
    %c0_125 = arith.constant 0 : index
    %351 = vector.load %arg10[%c0_124, %c0_125] : memref<64x128xf32, #tpu.memory_space<vmem>>, vector<64x128xf32>
    %c1_126 = arith.constant 1 : index
    %c0_127 = arith.constant 0 : index
    %c0_128 = arith.constant 0 : index
    %352 = vector.load %arg4[%c1_126, %c0_127, %c0_128] : memref<2x128x512xf32, #tpu.memory_space<vmem>>, vector<1x128x512xf32>
    %353 = vector.shape_cast %352 : vector<1x128x512xf32> to vector<128x512xf32>
    %cst_129 = arith.constant dense<0.000000e+00> : vector<64x512xf32>
    %354 = tpu.matmul %351, %353, %cst_129 {dimension_numbers = #tpu.dot_dimension_numbers<[1], [0], [0], [1], [0, 0, 1, 1], [], []>} : vector<64x128xf32>, vector<128x512xf32>, vector<64x512xf32> -> vector<64x512xf32>
    %c1_130 = arith.constant 1 : index
    %c0_131 = arith.constant 0 : index
    %c0_132 = arith.constant 0 : index
    %355 = vector.load %arg6[%c1_130, %c0_131, %c0_132] : memref<2x1x512xf32, #tpu.memory_space<vmem>>, vector<1x1x512xf32>
    %356 = vector.shape_cast %355 : vector<1x1x512xf32> to vector<1x512xf32>
    %357 = vector.broadcast %356 : vector<1x512xf32> to vector<64x512xf32>
    %358 = arith.addf %354, %357 : vector<64x512xf32>
    %c0_133 = arith.constant 0 : index
    %c0_134 = arith.constant 0 : index
    %359 = vector.load %arg11[%c0_133, %c0_134] : memref<64x512xf32, #tpu.memory_space<vmem>>, vector<64x512xf32>
    tpu.vector_store %arg11[%c0_133, %c0_134], %358 {strides = array<i32>} : memref<64x512xf32, #tpu.memory_space<vmem>>, vector<64x512xf32>,
    %cst_135 = arith.constant 0.000000e+00 : f32
    %360 = vector.broadcast %cst_135 : f32 to vector<8x128xf32>
    %cst_136 = arith.constant 0.000000e+00 : f32
    %361 = vector.broadcast %cst_136 : f32 to vector<8x128xf32>
    %c0_137 = arith.constant 0 : index
    %c0_138 = arith.constant 0 : index
    %362 = vector.load %arg11[%c0_137, %c0_138] : memref<64x512xf32, #tpu.memory_space<vmem>>, vector<8x512xf32>
    %c1_139 = arith.constant 1 : index
    %c0_140 = arith.constant 0 : index
    %c0_141 = arith.constant 0 : index
    %363 = vector.load %arg5[%c1_139, %c0_140, %c0_141] : memref<2x128x512xf32, #tpu.memory_space<vmem>>, vector<1x128x512xf32>
    %364 = vector.shape_cast %363 : vector<1x128x512xf32> to vector<128x512xf32>
    %cst_142 = arith.constant dense<0.000000e+00> : vector<8x512xf32>
    %365 = tpu.matmul %360, %364, %cst_142 {dimension_numbers = #tpu.dot_dimension_numbers<[1], [0], [0], [1], [0, 0, 1, 1], [], []>} : vector<8x128xf32>, vector<128x512xf32>, vector<8x512xf32> -> vector<8x512xf32>
    %366 = arith.addf %362, %365 : vector<8x512xf32>
    %367 = vector.extract_strided_slice %366 {offsets = [0, 0], sizes = [8, 128], strides = [1, 1]} : vector<8x512xf32> to vector<8x128xf32>
    %368 = arith.negf %367 : vector<8x128xf32>
    %369 = math.exp %368 : vector<8x128xf32>
    %cst_143 = arith.constant 1.000000e+00 : f32
    %370 = vector.broadcast %cst_143 : f32 to vector<8x128xf32>
    %371 = arith.addf %370, %369 : vector<8x128xf32>
    %372 = arith.divf %370, %371 : vector<8x128xf32>
    %373 = vector.extract_strided_slice %366 {offsets = [0, 128], sizes = [8, 128], strides = [1, 1]} : vector<8x512xf32> to vector<8x128xf32>
    %374 = arith.negf %373 : vector<8x128xf32>
    %375 = math.exp %374 : vector<8x128xf32>
    %cst_144 = arith.constant 1.000000e+00 : f32
    %376 = vector.broadcast %cst_144 : f32 to vector<8x128xf32>
    %377 = arith.addf %376, %375 : vector<8x128xf32>
    %378 = arith.divf %376, %377 : vector<8x128xf32>
    %379 = vector.extract_strided_slice %366 {offsets = [0, 256], sizes = [8, 128], strides = [1, 1]} : vector<8x512xf32> to vector<8x128xf32>
    %380 = math.tanh %379 : vector<8x128xf32>
    %381 = vector.extract_strided_slice %366 {offsets = [0, 384], sizes = [8, 128], strides = [1, 1]} : vector<8x512xf32> to vector<8x128xf32>
    %382 = arith.negf %381 : vector<8x128xf32>
    %383 = math.exp %382 : vector<8x128xf32>
    %cst_145 = arith.constant 1.000000e+00 : f32
    %384 = vector.broadcast %cst_145 : f32 to vector<8x128xf32>
    %385 = arith.addf %384, %383 : vector<8x128xf32>
    %386 = arith.divf %384, %385 : vector<8x128xf32>
    %387 = arith.mulf %378, %361 : vector<8x128xf32>
    %388 = arith.mulf %372, %380 : vector<8x128xf32>
    %389 = arith.addf %387, %388 : vector<8x128xf32>
    %390 = math.tanh %389 : vector<8x128xf32>
    %391 = arith.mulf %386, %390 : vector<8x128xf32>
    %c0_i32_146 = arith.constant 0 : i32
    %392 = vector.broadcast %c0_i32_146 : i32 to vector<8x1xi32>
    %393 = arith.cmpi sgt, %0, %392 : vector<8x1xi32>
    %394 = vector.shape_cast %393 : vector<8x1xi1> to vector<8x1xi1>
    %395 = vector.broadcast %394 : vector<8x1xi1> to vector<8x128xi1>
    %396 = arith.select %395, %391, %360 : vector<8x128xi1>, vector<8x128xf32>
    %397 = vector.shape_cast %393 : vector<8x1xi1> to vector<8x1xi1>
    %398 = vector.broadcast %397 : vector<8x1xi1> to vector<8x128xi1>
    %399 = arith.select %398, %389, %361 : vector<8x128xi1>, vector<8x128xf32>
    %c8_147 = arith.constant 8 : index
    %c0_148 = arith.constant 0 : index
    %400 = vector.load %arg11[%c8_147, %c0_148] : memref<64x512xf32, #tpu.memory_space<vmem>>, vector<8x512xf32>
    %c1_149 = arith.constant 1 : index
    %c0_150 = arith.constant 0 : index
    %c0_151 = arith.constant 0 : index
    %401 = vector.load %arg5[%c1_149, %c0_150, %c0_151] : memref<2x128x512xf32, #tpu.memory_space<vmem>>, vector<1x128x512xf32>
    %402 = vector.shape_cast %401 : vector<1x128x512xf32> to vector<128x512xf32>
    %cst_152 = arith.constant dense<0.000000e+00> : vector<8x512xf32>
    %403 = tpu.matmul %396, %402, %cst_152 {dimension_numbers = #tpu.dot_dimension_numbers<[1], [0], [0], [1], [0, 0, 1, 1], [], []>} : vector<8x128xf32>, vector<128x512xf32>, vector<8x512xf32> -> vector<8x512xf32>
    %404 = arith.addf %400, %403 : vector<8x512xf32>
    %405 = vector.extract_strided_slice %404 {offsets = [0, 0], sizes = [8, 128], strides = [1, 1]} : vector<8x512xf32> to vector<8x128xf32>
    %406 = arith.negf %405 : vector<8x128xf32>
    %407 = math.exp %406 : vector<8x128xf32>
    %cst_153 = arith.constant 1.000000e+00 : f32
    %408 = vector.broadcast %cst_153 : f32 to vector<8x128xf32>
    %409 = arith.addf %408, %407 : vector<8x128xf32>
    %410 = arith.divf %408, %409 : vector<8x128xf32>
    %411 = vector.extract_strided_slice %404 {offsets = [0, 128], sizes = [8, 128], strides = [1, 1]} : vector<8x512xf32> to vector<8x128xf32>
    %412 = arith.negf %411 : vector<8x128xf32>
    %413 = math.exp %412 : vector<8x128xf32>
    %cst_154 = arith.constant 1.000000e+00 : f32
    %414 = vector.broadcast %cst_154 : f32 to vector<8x128xf32>
    %415 = arith.addf %414, %413 : vector<8x128xf32>
    %416 = arith.divf %414, %415 : vector<8x128xf32>
    %417 = vector.extract_strided_slice %404 {offsets = [0, 256], sizes = [8, 128], strides = [1, 1]} : vector<8x512xf32> to vector<8x128xf32>
    %418 = math.tanh %417 : vector<8x128xf32>
    %419 = vector.extract_strided_slice %404 {offsets = [0, 384], sizes = [8, 128], strides = [1, 1]} : vector<8x512xf32> to vector<8x128xf32>
    %420 = arith.negf %419 : vector<8x128xf32>
    %421 = math.exp %420 : vector<8x128xf32>
    %cst_155 = arith.constant 1.000000e+00 : f32
    %422 = vector.broadcast %cst_155 : f32 to vector<8x128xf32>
    %423 = arith.addf %422, %421 : vector<8x128xf32>
    %424 = arith.divf %422, %423 : vector<8x128xf32>
    %425 = arith.mulf %416, %399 : vector<8x128xf32>
    %426 = arith.mulf %410, %418 : vector<8x128xf32>
    %427 = arith.addf %425, %426 : vector<8x128xf32>
    %428 = math.tanh %427 : vector<8x128xf32>
    %429 = arith.mulf %424, %428 : vector<8x128xf32>
    %c1_i32_156 = arith.constant 1 : i32
    %430 = vector.broadcast %c1_i32_156 : i32 to vector<8x1xi32>
    %431 = arith.cmpi sgt, %0, %430 : vector<8x1xi32>
    %432 = vector.shape_cast %431 : vector<8x1xi1> to vector<8x1xi1>
    %433 = vector.broadcast %432 : vector<8x1xi1> to vector<8x128xi1>
    %434 = arith.select %433, %429, %396 : vector<8x128xi1>, vector<8x128xf32>
    %435 = vector.shape_cast %431 : vector<8x1xi1> to vector<8x1xi1>
    %436 = vector.broadcast %435 : vector<8x1xi1> to vector<8x128xi1>
    %437 = arith.select %436, %427, %399 : vector<8x128xi1>, vector<8x128xf32>
    %c16_157 = arith.constant 16 : index
    %c0_158 = arith.constant 0 : index
    %438 = vector.load %arg11[%c16_157, %c0_158] : memref<64x512xf32, #tpu.memory_space<vmem>>, vector<8x512xf32>
    %c1_159 = arith.constant 1 : index
    %c0_160 = arith.constant 0 : index
    %c0_161 = arith.constant 0 : index
    %439 = vector.load %arg5[%c1_159, %c0_160, %c0_161] : memref<2x128x512xf32, #tpu.memory_space<vmem>>, vector<1x128x512xf32>
    %440 = vector.shape_cast %439 : vector<1x128x512xf32> to vector<128x512xf32>
    %cst_162 = arith.constant dense<0.000000e+00> : vector<8x512xf32>
    %441 = tpu.matmul %434, %440, %cst_162 {dimension_numbers = #tpu.dot_dimension_numbers<[1], [0], [0], [1], [0, 0, 1, 1], [], []>} : vector<8x128xf32>, vector<128x512xf32>, vector<8x512xf32> -> vector<8x512xf32>
    %442 = arith.addf %438, %441 : vector<8x512xf32>
    %443 = vector.extract_strided_slice %442 {offsets = [0, 0], sizes = [8, 128], strides = [1, 1]} : vector<8x512xf32> to vector<8x128xf32>
    %444 = arith.negf %443 : vector<8x128xf32>
    %445 = math.exp %444 : vector<8x128xf32>
    %cst_163 = arith.constant 1.000000e+00 : f32
    %446 = vector.broadcast %cst_163 : f32 to vector<8x128xf32>
    %447 = arith.addf %446, %445 : vector<8x128xf32>
    %448 = arith.divf %446, %447 : vector<8x128xf32>
    %449 = vector.extract_strided_slice %442 {offsets = [0, 128], sizes = [8, 128], strides = [1, 1]} : vector<8x512xf32> to vector<8x128xf32>
    %450 = arith.negf %449 : vector<8x128xf32>
    %451 = math.exp %450 : vector<8x128xf32>
    %cst_164 = arith.constant 1.000000e+00 : f32
    %452 = vector.broadcast %cst_164 : f32 to vector<8x128xf32>
    %453 = arith.addf %452, %451 : vector<8x128xf32>
    %454 = arith.divf %452, %453 : vector<8x128xf32>
    %455 = vector.extract_strided_slice %442 {offsets = [0, 256], sizes = [8, 128], strides = [1, 1]} : vector<8x512xf32> to vector<8x128xf32>
    %456 = math.tanh %455 : vector<8x128xf32>
    %457 = vector.extract_strided_slice %442 {offsets = [0, 384], sizes = [8, 128], strides = [1, 1]} : vector<8x512xf32> to vector<8x128xf32>
    %458 = arith.negf %457 : vector<8x128xf32>
    %459 = math.exp %458 : vector<8x128xf32>
    %cst_165 = arith.constant 1.000000e+00 : f32
    %460 = vector.broadcast %cst_165 : f32 to vector<8x128xf32>
    %461 = arith.addf %460, %459 : vector<8x128xf32>
    %462 = arith.divf %460, %461 : vector<8x128xf32>
    %463 = arith.mulf %454, %437 : vector<8x128xf32>
    %464 = arith.mulf %448, %456 : vector<8x128xf32>
    %465 = arith.addf %463, %464 : vector<8x128xf32>
    %466 = math.tanh %465 : vector<8x128xf32>
    %467 = arith.mulf %462, %466 : vector<8x128xf32>
    %c2_i32_166 = arith.constant 2 : i32
    %468 = vector.broadcast %c2_i32_166 : i32 to vector<8x1xi32>
    %469 = arith.cmpi sgt, %0, %468 : vector<8x1xi32>
    %470 = vector.shape_cast %469 : vector<8x1xi1> to vector<8x1xi1>
    %471 = vector.broadcast %470 : vector<8x1xi1> to vector<8x128xi1>
    %472 = arith.select %471, %467, %434 : vector<8x128xi1>, vector<8x128xf32>
    %473 = vector.shape_cast %469 : vector<8x1xi1> to vector<8x1xi1>
    %474 = vector.broadcast %473 : vector<8x1xi1> to vector<8x128xi1>
    %475 = arith.select %474, %465, %437 : vector<8x128xi1>, vector<8x128xf32>
    %c24_167 = arith.constant 24 : index
    %c0_168 = arith.constant 0 : index
    %476 = vector.load %arg11[%c24_167, %c0_168] : memref<64x512xf32, #tpu.memory_space<vmem>>, vector<8x512xf32>
    %c1_169 = arith.constant 1 : index
    %c0_170 = arith.constant 0 : index
    %c0_171 = arith.constant 0 : index
    %477 = vector.load %arg5[%c1_169, %c0_170, %c0_171] : memref<2x128x512xf32, #tpu.memory_space<vmem>>, vector<1x128x512xf32>
    %478 = vector.shape_cast %477 : vector<1x128x512xf32> to vector<128x512xf32>
    %cst_172 = arith.constant dense<0.000000e+00> : vector<8x512xf32>
    %479 = tpu.matmul %472, %478, %cst_172 {dimension_numbers = #tpu.dot_dimension_numbers<[1], [0], [0], [1], [0, 0, 1, 1], [], []>} : vector<8x128xf32>, vector<128x512xf32>, vector<8x512xf32> -> vector<8x512xf32>
    %480 = arith.addf %476, %479 : vector<8x512xf32>
    %481 = vector.extract_strided_slice %480 {offsets = [0, 0], sizes = [8, 128], strides = [1, 1]} : vector<8x512xf32> to vector<8x128xf32>
    %482 = arith.negf %481 : vector<8x128xf32>
    %483 = math.exp %482 : vector<8x128xf32>
    %cst_173 = arith.constant 1.000000e+00 : f32
    %484 = vector.broadcast %cst_173 : f32 to vector<8x128xf32>
    %485 = arith.addf %484, %483 : vector<8x128xf32>
    %486 = arith.divf %484, %485 : vector<8x128xf32>
    %487 = vector.extract_strided_slice %480 {offsets = [0, 128], sizes = [8, 128], strides = [1, 1]} : vector<8x512xf32> to vector<8x128xf32>
    %488 = arith.negf %487 : vector<8x128xf32>
    %489 = math.exp %488 : vector<8x128xf32>
    %cst_174 = arith.constant 1.000000e+00 : f32
    %490 = vector.broadcast %cst_174 : f32 to vector<8x128xf32>
    %491 = arith.addf %490, %489 : vector<8x128xf32>
    %492 = arith.divf %490, %491 : vector<8x128xf32>
    %493 = vector.extract_strided_slice %480 {offsets = [0, 256], sizes = [8, 128], strides = [1, 1]} : vector<8x512xf32> to vector<8x128xf32>
    %494 = math.tanh %493 : vector<8x128xf32>
    %495 = vector.extract_strided_slice %480 {offsets = [0, 384], sizes = [8, 128], strides = [1, 1]} : vector<8x512xf32> to vector<8x128xf32>
    %496 = arith.negf %495 : vector<8x128xf32>
    %497 = math.exp %496 : vector<8x128xf32>
    %cst_175 = arith.constant 1.000000e+00 : f32
    %498 = vector.broadcast %cst_175 : f32 to vector<8x128xf32>
    %499 = arith.addf %498, %497 : vector<8x128xf32>
    %500 = arith.divf %498, %499 : vector<8x128xf32>
    %501 = arith.mulf %492, %475 : vector<8x128xf32>
    %502 = arith.mulf %486, %494 : vector<8x128xf32>
    %503 = arith.addf %501, %502 : vector<8x128xf32>
    %504 = math.tanh %503 : vector<8x128xf32>
    %505 = arith.mulf %500, %504 : vector<8x128xf32>
    %c3_i32_176 = arith.constant 3 : i32
    %506 = vector.broadcast %c3_i32_176 : i32 to vector<8x1xi32>
    %507 = arith.cmpi sgt, %0, %506 : vector<8x1xi32>
    %508 = vector.shape_cast %507 : vector<8x1xi1> to vector<8x1xi1>
    %509 = vector.broadcast %508 : vector<8x1xi1> to vector<8x128xi1>
    %510 = arith.select %509, %505, %472 : vector<8x128xi1>, vector<8x128xf32>
    %511 = vector.shape_cast %507 : vector<8x1xi1> to vector<8x1xi1>
    %512 = vector.broadcast %511 : vector<8x1xi1> to vector<8x128xi1>
    %513 = arith.select %512, %503, %475 : vector<8x128xi1>, vector<8x128xf32>
    %c32_177 = arith.constant 32 : index
    %c0_178 = arith.constant 0 : index
    %514 = vector.load %arg11[%c32_177, %c0_178] : memref<64x512xf32, #tpu.memory_space<vmem>>, vector<8x512xf32>
    %c1_179 = arith.constant 1 : index
    %c0_180 = arith.constant 0 : index
    %c0_181 = arith.constant 0 : index
    %515 = vector.load %arg5[%c1_179, %c0_180, %c0_181] : memref<2x128x512xf32, #tpu.memory_space<vmem>>, vector<1x128x512xf32>
    %516 = vector.shape_cast %515 : vector<1x128x512xf32> to vector<128x512xf32>
    %cst_182 = arith.constant dense<0.000000e+00> : vector<8x512xf32>
    %517 = tpu.matmul %510, %516, %cst_182 {dimension_numbers = #tpu.dot_dimension_numbers<[1], [0], [0], [1], [0, 0, 1, 1], [], []>} : vector<8x128xf32>, vector<128x512xf32>, vector<8x512xf32> -> vector<8x512xf32>
    %518 = arith.addf %514, %517 : vector<8x512xf32>
    %519 = vector.extract_strided_slice %518 {offsets = [0, 0], sizes = [8, 128], strides = [1, 1]} : vector<8x512xf32> to vector<8x128xf32>
    %520 = arith.negf %519 : vector<8x128xf32>
    %521 = math.exp %520 : vector<8x128xf32>
    %cst_183 = arith.constant 1.000000e+00 : f32
    %522 = vector.broadcast %cst_183 : f32 to vector<8x128xf32>
    %523 = arith.addf %522, %521 : vector<8x128xf32>
    %524 = arith.divf %522, %523 : vector<8x128xf32>
    %525 = vector.extract_strided_slice %518 {offsets = [0, 128], sizes = [8, 128], strides = [1, 1]} : vector<8x512xf32> to vector<8x128xf32>
    %526 = arith.negf %525 : vector<8x128xf32>
    %527 = math.exp %526 : vector<8x128xf32>
    %cst_184 = arith.constant 1.000000e+00 : f32
    %528 = vector.broadcast %cst_184 : f32 to vector<8x128xf32>
    %529 = arith.addf %528, %527 : vector<8x128xf32>
    %530 = arith.divf %528, %529 : vector<8x128xf32>
    %531 = vector.extract_strided_slice %518 {offsets = [0, 256], sizes = [8, 128], strides = [1, 1]} : vector<8x512xf32> to vector<8x128xf32>
    %532 = math.tanh %531 : vector<8x128xf32>
    %533 = vector.extract_strided_slice %518 {offsets = [0, 384], sizes = [8, 128], strides = [1, 1]} : vector<8x512xf32> to vector<8x128xf32>
    %534 = arith.negf %533 : vector<8x128xf32>
    %535 = math.exp %534 : vector<8x128xf32>
    %cst_185 = arith.constant 1.000000e+00 : f32
    %536 = vector.broadcast %cst_185 : f32 to vector<8x128xf32>
    %537 = arith.addf %536, %535 : vector<8x128xf32>
    %538 = arith.divf %536, %537 : vector<8x128xf32>
    %539 = arith.mulf %530, %513 : vector<8x128xf32>
    %540 = arith.mulf %524, %532 : vector<8x128xf32>
    %541 = arith.addf %539, %540 : vector<8x128xf32>
    %542 = math.tanh %541 : vector<8x128xf32>
    %543 = arith.mulf %538, %542 : vector<8x128xf32>
    %c4_i32_186 = arith.constant 4 : i32
    %544 = vector.broadcast %c4_i32_186 : i32 to vector<8x1xi32>
    %545 = arith.cmpi sgt, %0, %544 : vector<8x1xi32>
    %546 = vector.shape_cast %545 : vector<8x1xi1> to vector<8x1xi1>
    %547 = vector.broadcast %546 : vector<8x1xi1> to vector<8x128xi1>
    %548 = arith.select %547, %543, %510 : vector<8x128xi1>, vector<8x128xf32>
    %549 = vector.shape_cast %545 : vector<8x1xi1> to vector<8x1xi1>
    %550 = vector.broadcast %549 : vector<8x1xi1> to vector<8x128xi1>
    %551 = arith.select %550, %541, %513 : vector<8x128xi1>, vector<8x128xf32>
    %c40_187 = arith.constant 40 : index
    %c0_188 = arith.constant 0 : index
    %552 = vector.load %arg11[%c40_187, %c0_188] : memref<64x512xf32, #tpu.memory_space<vmem>>, vector<8x512xf32>
    %c1_189 = arith.constant 1 : index
    %c0_190 = arith.constant 0 : index
    %c0_191 = arith.constant 0 : index
    %553 = vector.load %arg5[%c1_189, %c0_190, %c0_191] : memref<2x128x512xf32, #tpu.memory_space<vmem>>, vector<1x128x512xf32>
    %554 = vector.shape_cast %553 : vector<1x128x512xf32> to vector<128x512xf32>
    %cst_192 = arith.constant dense<0.000000e+00> : vector<8x512xf32>
    %555 = tpu.matmul %548, %554, %cst_192 {dimension_numbers = #tpu.dot_dimension_numbers<[1], [0], [0], [1], [0, 0, 1, 1], [], []>} : vector<8x128xf32>, vector<128x512xf32>, vector<8x512xf32> -> vector<8x512xf32>
    %556 = arith.addf %552, %555 : vector<8x512xf32>
    %557 = vector.extract_strided_slice %556 {offsets = [0, 0], sizes = [8, 128], strides = [1, 1]} : vector<8x512xf32> to vector<8x128xf32>
    %558 = arith.negf %557 : vector<8x128xf32>
    %559 = math.exp %558 : vector<8x128xf32>
    %cst_193 = arith.constant 1.000000e+00 : f32
    %560 = vector.broadcast %cst_193 : f32 to vector<8x128xf32>
    %561 = arith.addf %560, %559 : vector<8x128xf32>
    %562 = arith.divf %560, %561 : vector<8x128xf32>
    %563 = vector.extract_strided_slice %556 {offsets = [0, 128], sizes = [8, 128], strides = [1, 1]} : vector<8x512xf32> to vector<8x128xf32>
    %564 = arith.negf %563 : vector<8x128xf32>
    %565 = math.exp %564 : vector<8x128xf32>
    %cst_194 = arith.constant 1.000000e+00 : f32
    %566 = vector.broadcast %cst_194 : f32 to vector<8x128xf32>
    %567 = arith.addf %566, %565 : vector<8x128xf32>
    %568 = arith.divf %566, %567 : vector<8x128xf32>
    %569 = vector.extract_strided_slice %556 {offsets = [0, 256], sizes = [8, 128], strides = [1, 1]} : vector<8x512xf32> to vector<8x128xf32>
    %570 = math.tanh %569 : vector<8x128xf32>
    %571 = vector.extract_strided_slice %556 {offsets = [0, 384], sizes = [8, 128], strides = [1, 1]} : vector<8x512xf32> to vector<8x128xf32>
    %572 = arith.negf %571 : vector<8x128xf32>
    %573 = math.exp %572 : vector<8x128xf32>
    %cst_195 = arith.constant 1.000000e+00 : f32
    %574 = vector.broadcast %cst_195 : f32 to vector<8x128xf32>
    %575 = arith.addf %574, %573 : vector<8x128xf32>
    %576 = arith.divf %574, %575 : vector<8x128xf32>
    %577 = arith.mulf %568, %551 : vector<8x128xf32>
    %578 = arith.mulf %562, %570 : vector<8x128xf32>
    %579 = arith.addf %577, %578 : vector<8x128xf32>
    %580 = math.tanh %579 : vector<8x128xf32>
    %581 = arith.mulf %576, %580 : vector<8x128xf32>
    %c5_i32_196 = arith.constant 5 : i32
    %582 = vector.broadcast %c5_i32_196 : i32 to vector<8x1xi32>
    %583 = arith.cmpi sgt, %0, %582 : vector<8x1xi32>
    %584 = vector.shape_cast %583 : vector<8x1xi1> to vector<8x1xi1>
    %585 = vector.broadcast %584 : vector<8x1xi1> to vector<8x128xi1>
    %586 = arith.select %585, %581, %548 : vector<8x128xi1>, vector<8x128xf32>
    %587 = vector.shape_cast %583 : vector<8x1xi1> to vector<8x1xi1>
    %588 = vector.broadcast %587 : vector<8x1xi1> to vector<8x128xi1>
    %589 = arith.select %588, %579, %551 : vector<8x128xi1>, vector<8x128xf32>
    %c48_197 = arith.constant 48 : index
    %c0_198 = arith.constant 0 : index
    %590 = vector.load %arg11[%c48_197, %c0_198] : memref<64x512xf32, #tpu.memory_space<vmem>>, vector<8x512xf32>
    %c1_199 = arith.constant 1 : index
    %c0_200 = arith.constant 0 : index
    %c0_201 = arith.constant 0 : index
    %591 = vector.load %arg5[%c1_199, %c0_200, %c0_201] : memref<2x128x512xf32, #tpu.memory_space<vmem>>, vector<1x128x512xf32>
    %592 = vector.shape_cast %591 : vector<1x128x512xf32> to vector<128x512xf32>
    %cst_202 = arith.constant dense<0.000000e+00> : vector<8x512xf32>
    %593 = tpu.matmul %586, %592, %cst_202 {dimension_numbers = #tpu.dot_dimension_numbers<[1], [0], [0], [1], [0, 0, 1, 1], [], []>} : vector<8x128xf32>, vector<128x512xf32>, vector<8x512xf32> -> vector<8x512xf32>
    %594 = arith.addf %590, %593 : vector<8x512xf32>
    %595 = vector.extract_strided_slice %594 {offsets = [0, 0], sizes = [8, 128], strides = [1, 1]} : vector<8x512xf32> to vector<8x128xf32>
    %596 = arith.negf %595 : vector<8x128xf32>
    %597 = math.exp %596 : vector<8x128xf32>
    %cst_203 = arith.constant 1.000000e+00 : f32
    %598 = vector.broadcast %cst_203 : f32 to vector<8x128xf32>
    %599 = arith.addf %598, %597 : vector<8x128xf32>
    %600 = arith.divf %598, %599 : vector<8x128xf32>
    %601 = vector.extract_strided_slice %594 {offsets = [0, 128], sizes = [8, 128], strides = [1, 1]} : vector<8x512xf32> to vector<8x128xf32>
    %602 = arith.negf %601 : vector<8x128xf32>
    %603 = math.exp %602 : vector<8x128xf32>
    %cst_204 = arith.constant 1.000000e+00 : f32
    %604 = vector.broadcast %cst_204 : f32 to vector<8x128xf32>
    %605 = arith.addf %604, %603 : vector<8x128xf32>
    %606 = arith.divf %604, %605 : vector<8x128xf32>
    %607 = vector.extract_strided_slice %594 {offsets = [0, 256], sizes = [8, 128], strides = [1, 1]} : vector<8x512xf32> to vector<8x128xf32>
    %608 = math.tanh %607 : vector<8x128xf32>
    %609 = vector.extract_strided_slice %594 {offsets = [0, 384], sizes = [8, 128], strides = [1, 1]} : vector<8x512xf32> to vector<8x128xf32>
    %610 = arith.negf %609 : vector<8x128xf32>
    %611 = math.exp %610 : vector<8x128xf32>
    %cst_205 = arith.constant 1.000000e+00 : f32
    %612 = vector.broadcast %cst_205 : f32 to vector<8x128xf32>
    %613 = arith.addf %612, %611 : vector<8x128xf32>
    %614 = arith.divf %612, %613 : vector<8x128xf32>
    %615 = arith.mulf %606, %589 : vector<8x128xf32>
    %616 = arith.mulf %600, %608 : vector<8x128xf32>
    %617 = arith.addf %615, %616 : vector<8x128xf32>
    %618 = math.tanh %617 : vector<8x128xf32>
    %619 = arith.mulf %614, %618 : vector<8x128xf32>
    %c6_i32_206 = arith.constant 6 : i32
    %620 = vector.broadcast %c6_i32_206 : i32 to vector<8x1xi32>
    %621 = arith.cmpi sgt, %0, %620 : vector<8x1xi32>
    %622 = vector.shape_cast %621 : vector<8x1xi1> to vector<8x1xi1>
    %623 = vector.broadcast %622 : vector<8x1xi1> to vector<8x128xi1>
    %624 = arith.select %623, %619, %586 : vector<8x128xi1>, vector<8x128xf32>
    %625 = vector.shape_cast %621 : vector<8x1xi1> to vector<8x1xi1>
    %626 = vector.broadcast %625 : vector<8x1xi1> to vector<8x128xi1>
    %627 = arith.select %626, %617, %589 : vector<8x128xi1>, vector<8x128xf32>
    %c56_207 = arith.constant 56 : index
    %c0_208 = arith.constant 0 : index
    %628 = vector.load %arg11[%c56_207, %c0_208] : memref<64x512xf32, #tpu.memory_space<vmem>>, vector<8x512xf32>
    %c1_209 = arith.constant 1 : index
    %c0_210 = arith.constant 0 : index
    %c0_211 = arith.constant 0 : index
    %629 = vector.load %arg5[%c1_209, %c0_210, %c0_211] : memref<2x128x512xf32, #tpu.memory_space<vmem>>, vector<1x128x512xf32>
    %630 = vector.shape_cast %629 : vector<1x128x512xf32> to vector<128x512xf32>
    %cst_212 = arith.constant dense<0.000000e+00> : vector<8x512xf32>
    %631 = tpu.matmul %624, %630, %cst_212 {dimension_numbers = #tpu.dot_dimension_numbers<[1], [0], [0], [1], [0, 0, 1, 1], [], []>} : vector<8x128xf32>, vector<128x512xf32>, vector<8x512xf32> -> vector<8x512xf32>
    %632 = arith.addf %628, %631 : vector<8x512xf32>
    %633 = vector.extract_strided_slice %632 {offsets = [0, 0], sizes = [8, 128], strides = [1, 1]} : vector<8x512xf32> to vector<8x128xf32>
    %634 = arith.negf %633 : vector<8x128xf32>
    %635 = math.exp %634 : vector<8x128xf32>
    %cst_213 = arith.constant 1.000000e+00 : f32
    %636 = vector.broadcast %cst_213 : f32 to vector<8x128xf32>
    %637 = arith.addf %636, %635 : vector<8x128xf32>
    %638 = arith.divf %636, %637 : vector<8x128xf32>
    %639 = vector.extract_strided_slice %632 {offsets = [0, 128], sizes = [8, 128], strides = [1, 1]} : vector<8x512xf32> to vector<8x128xf32>
    %640 = arith.negf %639 : vector<8x128xf32>
    %641 = math.exp %640 : vector<8x128xf32>
    %cst_214 = arith.constant 1.000000e+00 : f32
    %642 = vector.broadcast %cst_214 : f32 to vector<8x128xf32>
    %643 = arith.addf %642, %641 : vector<8x128xf32>
    %644 = arith.divf %642, %643 : vector<8x128xf32>
    %645 = vector.extract_strided_slice %632 {offsets = [0, 256], sizes = [8, 128], strides = [1, 1]} : vector<8x512xf32> to vector<8x128xf32>
    %646 = math.tanh %645 : vector<8x128xf32>
    %647 = vector.extract_strided_slice %632 {offsets = [0, 384], sizes = [8, 128], strides = [1, 1]} : vector<8x512xf32> to vector<8x128xf32>
    %648 = arith.negf %647 : vector<8x128xf32>
    %649 = math.exp %648 : vector<8x128xf32>
    %cst_215 = arith.constant 1.000000e+00 : f32
    %650 = vector.broadcast %cst_215 : f32 to vector<8x128xf32>
    %651 = arith.addf %650, %649 : vector<8x128xf32>
    %652 = arith.divf %650, %651 : vector<8x128xf32>
    %653 = arith.mulf %644, %627 : vector<8x128xf32>
    %654 = arith.mulf %638, %646 : vector<8x128xf32>
    %655 = arith.addf %653, %654 : vector<8x128xf32>
    %656 = math.tanh %655 : vector<8x128xf32>
    %657 = arith.mulf %652, %656 : vector<8x128xf32>
    %c7_i32_216 = arith.constant 7 : i32
    %658 = vector.broadcast %c7_i32_216 : i32 to vector<8x1xi32>
    %659 = arith.cmpi sgt, %0, %658 : vector<8x1xi32>
    %660 = vector.shape_cast %659 : vector<8x1xi1> to vector<8x1xi1>
    %661 = vector.broadcast %660 : vector<8x1xi1> to vector<8x128xi1>
    %662 = arith.select %661, %657, %624 : vector<8x128xi1>, vector<8x128xf32>
    %c0_217 = arith.constant 0 : index
    %c0_218 = arith.constant 0 : index
    %663 = vector.load %arg7[%c0_217, %c0_218] : memref<128x128xf32, #tpu.memory_space<vmem>>, vector<128x128xf32>
    %cst_219 = arith.constant dense<0.000000e+00> : vector<8x128xf32>
    %664 = tpu.matmul %662, %663, %cst_219 {dimension_numbers = #tpu.dot_dimension_numbers<[1], [0], [0], [1], [0, 0, 1, 1], [], []>} : vector<8x128xf32>, vector<128x128xf32>, vector<8x128xf32> -> vector<8x128xf32>
    %c0_220 = arith.constant 0 : index
    %c0_221 = arith.constant 0 : index
    %665 = vector.load %arg8[%c0_220, %c0_221] : memref<1x128xf32, #tpu.memory_space<vmem>>, vector<1x128xf32>
    %666 = vector.broadcast %665 : vector<1x128xf32> to vector<8x128xf32>
    %667 = arith.addf %664, %666 : vector<8x128xf32>
    %c1_222 = arith.constant 1 : index
    %c0_223 = arith.constant 0 : index
    %c0_224 = arith.constant 0 : index
    %668 = vector.load %arg9[%c1_222, %c0_223, %c0_224] : memref<2x8x128xf32, #tpu.memory_space<vmem>>, vector<1x8x128xf32>
    %669 = vector.shape_cast %668 : vector<1x8x128xf32> to vector<8x128xf32>
    %670 = vector.shape_cast %667 : vector<8x128xf32> to vector<1x8x128xf32>
    tpu.vector_store %arg9[%c1_222, %c0_223, %c0_224], %670 {strides = array<i32>} : memref<2x8x128xf32, #tpu.memory_space<vmem>>, vector<1x8x128xf32>,
    return
  }
}

</mosaic_0001>

<bundles_post_ra>
// kernel: tpu_custom_call.1
= control target key start
LH: loop header
LB: loop body
LE: loop exit
PB: predicated region body
PF: predicated region fallthrough
CT: control target
= control target key end

     0   :  { %14 = vsyncpa [#allocation5], 0  ;;  %s7862_s0 = inlined_call_operand.vmem [shape: f32[80,16], index: 0, kind: input, shape index: {}]   ;;  %s7863_s1 = inlined_call_operand.vmem [shape: s32[8,1], index: 1, kind: input, shape index: {}]   ;;  %s7864_s2 = inlined_call_operand.vmem [shape: f32[3,16,128], index: 2, kind: input, shape index: {}]   ;;  %s7865_s3 = inlined_call_operand.vmem [shape: f32[1,128], index: 3, kind: input, shape index: {}]   ;;  %s7866_s4 = inlined_call_operand.hbm [shape: f32[2,128,512], index: 4, kind: input, shape index: {}]   ;;  %s7867_s5 = inlined_call_operand.hbm [shape: f32[2,128,512], index: 5, kind: input, shape index: {}]   ;;  %s7868_s6 = inlined_call_operand.vmem [shape: f32[2,1,512], index: 6, kind: input, shape index: {}]   ;;  %s7869_s7 = inlined_call_operand.hbm [shape: f32[128,128], index: 7, kind: input, shape index: {}]   ;;  %s7870_s8 = inlined_call_operand.vmem [shape: f32[1,128], index: 8, kind: input, shape index: {}]   ;;  %s7871_s9 = inlined_call_operand.hbm [shape: f32[2,8,128], index: 9, kind: output, shape index: {}]  }
   0x1   :  { %15 = vsyncpa [#allocation8], 0 }
   0x2   :  { %16 = vsyncpa [#allocation6], 0  ;;  %s5594_s30 = smov [#allocation7]   ;;  %s5595_s11 = smov [#allocation4]  }
   0x3   :  { %s42_s10 = sshll.u32 %s5594_s30, 4  ;;  %s30_s12 = sshll.u32 %s5595_s11, 4  ;;  %s43_s10 = int_to_ptr.vmem [resolvable:$true] %s42_s10  ;;  %s31_s12 = int_to_ptr.vmem [resolvable:$true] %s30_s12 }
   0x4   :  { %s5516_s13 = scalar_lea.vmem %s43_s10, 16384  ;;  %p5521_p1 = scmp.lt.s32.totalorder %s43_s10, %s43_s10 }
   0x5   :  { %p5517_p0 = scmp.ne.s32.totalorder %s43_s10, %s5516_s13  ;;  %p5522_p2 = scmp.lt.s32.totalorder %s5516_s13, %s5516_s13 }
   0x7   :  { %p5523_p3 = por %p5522_p2, %p5521_p1 }
   0x9   :  { %p5524_p4 = pnand %p5523_p3, %p5517_p0 }
   0xb   :  { %5527 = shalt.err (!%p5524_p4)
}
   0xc   :  { %s5596_s14 = smov 512   ;;  %s5597_s15 = smov 32  }
   0xd   :  { %48 = dma.hbm_to_vmem [thread:$0]  %s7867_s5, 16384, %s43_s10, [#allocation8], %s5596_s14, %s5596_s14, %s5597_s15  }
   0xe   :  { %s5536_s18 = scalar_lea.vmem %s31_s12, 16384  ;;  %p5541_p6 = scmp.lt.s32.totalorder %s31_s12, %s31_s12 }
   0xf   :  { %p5537_p5 = scmp.ne.s32.totalorder %s31_s12, %s5536_s18  ;;  %p5542_p7 = scmp.lt.s32.totalorder %s5536_s18, %s5536_s18 }
  0x11   :  { %p5543_p8 = por %p5542_p7, %p5541_p6 }
  0x13   :  { %p5544_p9 = pnand %p5543_p8, %p5537_p5 }
  0x15   :  { %5547 = shalt.err (!%p5544_p9)
}
  0x16   :  { %36 = dma.hbm_to_vmem [thread:$0]  %s7866_s4, 16384, %s31_s12, [#allocation5], %s5596_s14, %s5596_s14, %s5597_s15  }
  0x17   :  { %s5598_s21 = smov [#allocation9]  }
  0x18   :  { %s56_s22 = sshll.u32 %s5598_s21, 4  ;;  %s57_s22 = int_to_ptr.vmem [resolvable:$true] %s56_s22 }
  0x19   :  { %s5556_s23 = scalar_lea.vmem %s57_s22, 2048  ;;  %p5561_p11 = scmp.lt.s32.totalorder %s57_s22, %s57_s22 }
  0x1a   :  { %p5557_p10 = scmp.ne.s32.totalorder %s57_s22, %s5556_s23  ;;  %p5562_p12 = scmp.lt.s32.totalorder %s5556_s23, %s5556_s23 }
  0x1c   :  { %p5563_p13 = por %p5562_p12, %p5561_p11 }
  0x1e   :  { %p5564_p0 = pnand %p5563_p13, %p5557_p10 }
  0x20   :  { %5567 = shalt.err (!%p5564_p0)
}
  0x21   :  { %s5599_s5 = smov 128   ;;  %s5600_s24 = smov 8  }
  0x22   :  { %62 = dma.hbm_to_vmem [thread:$0]  %s7869_s7, 2048, %s57_s22, [#allocation8], %s5599_s5, %s5599_s5, %s5600_s24  }
  0x23   :  { %5588 = dma.done.wait [#allocation5], 16384  }
  0x24   :  { %5589 = vsyncadd [#allocation5], 4294950912 }
  0x25   :  { %5590 = dma.done.wait [#allocation8], 18432  }
  0x26   :  { %5591 = vsyncadd [#allocation8], 4294948864  ;;  %v92_v0 = vld [vmem:[%s7864_s2 + $0x8] sm:$0xff]  ;;  %v91_v1 = vld [vmem:[%s7864_s2] sm:$0xff]  ;;  %vm93_vm0 = vcmask 130048   ;;  %s5604_s21 = smov [#allocation10]  }
  0x27   :  { %5053 = vmatprep.subr.mxu0 %v92_v0  ;;  %5171 = vmatprep.subr.mxu1 %v92_v0  ;;  %v83_v2 = vld [vmem:[%s7862_s0] sm:$0xff]  ;;  %v84_v4 = vld [vmem:[%s7862_s0 + $0x8] sm:$0xff]  ;;  %v4913_v6 = vld [vmem:[%s7864_s2 + $0x18] sm:$0xff]  ;;  %s4890_s22 = sshll.u32 %s5604_s21, 4  ;;  %s4891_s22 = int_to_ptr.vmem [resolvable:$true] %s4890_s22 }
  0x28   :  { %5054 = vmatpush3.msra.mxu0 %v92_v0  ;;  %5173 = vmatpush3.msra.mxu1 %v92_v0  ;;  %v87_v3 = vld [vmem:[%s7862_s0 + $0x20] sm:$0xff]  ;;  %v88_v5 = vld [vmem:[%s7862_s0 + $0x28] sm:$0xff]  ;;  %v85_v8 = vld [vmem:[%s7862_s0 + $0x10] sm:$0xff]  ;;  %s5568_s23 = scalar_lea.vmem %s4891_s22, 256  ;;  %p5573_p2 = scmp.lt.s32.totalorder %s4891_s22, %s4891_s22 }
  0x29   :  { %5055 = vmatprep.subr.mxu0 %v91_v1  ;;  %5172 = vmatprep.subr.mxu1 %v91_v1  ;;  %v4923_v7 = vld [vmem:[%s7864_s2 + $0x28] sm:$0xff]  ;;  %v89_v9 = vld [vmem:[%s7862_s0 + $0x30] sm:$0xff]  ;;  %v86_v10 = vld [vmem:[%s7862_s0 + $0x18] sm:$0xff]  ;;  %p5569_p1 = scmp.ne.s32.totalorder %s4891_s22, %s5568_s23  ;;  %p5574_p3 = scmp.lt.s32.totalorder %s5568_s23, %s5568_s23 }
  0x2a   :  { %5056 = vmatpush3.msra.mxu0 %v91_v1  ;;  %5174 = vmatpush3.msra.mxu1 %v91_v1  ;;  %v90_v11 = vld [vmem:[%s7862_s0 + $0x38] sm:$0xff]  ;;  %v4912_v12 = vld [vmem:[%s7864_s2 + $0x10] sm:$0xff]  ;;  %v4922_v13 = vld [vmem:[%s7864_s2 + $0x20] sm:$0xff] }
  0x2b   :  { %5057 = vmatprep.mubr.msk.f32.mxu0 %vm93_vm0, %v83_v2  ;;  %5063 = vmatprep.mubr.msk.f32.mxu1 %vm93_vm0, %v87_v3  ;;  %v612_v14 = vld [vmem:[#allocation4 + $0x1e8] sm:$0xff]  ;;  %v614_v15 = vld [vmem:[#allocation4 + $0x1f8] sm:$0xff]  ;;  %v611_v16 = vld [vmem:[#allocation4 + $0x1e0] sm:$0xff]  ;;  %p5575_p4 = por %p5574_p3, %p5573_p2 }
  0x2c   :  { %5058 = vmatmul.mubr.msk.f32.vlgmr.msra.gmra.mxu0 %vm93_vm0, %v84_v4  ;;  %5064 = vmatmul.mubr.msk.f32.vlgmr.msra.gmra.mxu1 %vm93_vm0, %v88_v5  ;;  %v613_v17 = vld [vmem:[#allocation4 + $0x1f0] sm:$0xff]  ;;  %v608_v18 = vld [vmem:[#allocation4 + $0x1c8] sm:$0xff]  ;;  %v610_v19 = vld [vmem:[#allocation4 + $0x1d8] sm:$0xff] }
  0x2d   :  { %5069 = vmatprep.subr.mxu1 %v4913_v6  ;;  %5085 = vmatprep.subr.mxu0 %v4923_v7  ;;  %v607_v20 = vld [vmem:[#allocation4 + $0x1c0] sm:$0xff]  ;;  %v609_v21 = vld [vmem:[#allocation4 + $0x1d0] sm:$0xff]  ;;  %v604_v23 = vld [vmem:[#allocation4 + $0x1a8] sm:$0xff]  ;;  %p5576_p5 = pnand %p5575_p4, %p5569_p1 }
  0x2e   :  { %5070 = vmatpush3.msra.mxu1 %v4913_v6  ;;  %5060 = vmatprep.mubr.msk.f32.mxu0 %vm93_vm0, %v85_v8  ;;  %v238_v22 = vld [vmem:[%s7862_s0 + $0x40] sm:$0xff]  ;;  %v606_v24 = vld [vmem:[#allocation4 + $0x1b8] sm:$0xff]  ;;  %v605_v26 = vld [vmem:[#allocation4 + $0x1b0] sm:$0xff] }
  0x2f   :  { %5066 = vmatprep.mubr.msk.f32.mxu1 %vm93_vm0, %v89_v9  ;;  %5086 = vmatpush3.msra.mxu0 %v4923_v7  ;;  %v603_v25 = vld [vmem:[#allocation4 + $0x1a0] sm:$0xff]  ;;  %v386_v27 = vld [vmem:[%s7862_s0 + $0x48] sm:$0xff]  ;;  %v602_v29 = vld [vmem:[#allocation4 + $0x198] sm:$0xff] }
  0x30   :  { %5061 = vmatmul.mubr.msk.f32.gmra.mxu0 %vm93_vm0, %v86_v10  ;;  %5067 = vmatmul.mubr.msk.f32.gmra.mxu1 %vm93_vm0, %v90_v11  ;;  %v600_v28 = vld [vmem:[#allocation4 + $0x188] sm:$0xff]  ;;  %v599_v30 = vld [vmem:[#allocation4 + $0x180] sm:$0xff]  ;;  %v601_v31 = vld [vmem:[#allocation4 + $0x190] sm:$0xff] }
  0x31   :  { %5071 = vmatprep.subr.mxu1 %v4912_v12  ;;  %5087 = vmatprep.subr.mxu0 %v4922_v13  ;;  %v596_v32 = vld [vmem:[#allocation4 + $0x168] sm:$0xff]  ;;  %v598_v33 = vld [vmem:[#allocation4 + $0x178] sm:$0xff]  ;;  %v595_v34 = vld [vmem:[#allocation4 + $0x160] sm:$0xff] }
  0x32   :  { %5072 = vmatpush3.msra.mxu1 %v4912_v12  ;;  %5073 = vmatprep.mubr.msk.f32.mxu1 %vm93_vm0, %v84_v4  ;;  %v597_v35 = vld [vmem:[#allocation4 + $0x170] sm:$0xff]  ;;  %v592_v36 = vld [vmem:[#allocation4 + $0x148] sm:$0xff]  ;;  %v594_v37 = vld [vmem:[#allocation4 + $0x158] sm:$0xff] }
  0x33   :  { %5088 = vmatpush3.msra.mxu0 %v4922_v13  ;;  %5089 = vmatprep.mubr.msk.f32.mxu0 %vm93_vm0, %v85_v8  ;;  %v591_v38 = vld [vmem:[#allocation4 + $0x140] sm:$0xff]  ;;  %v593_v39 = vld [vmem:[#allocation4 + $0x150] sm:$0xff]  ;;  %v588_v40 = vld [vmem:[#allocation4 + $0x128] sm:$0xff] }
  0x34   :  { %5074 = vmatmul.mubr.msk.f32.vlgmr.msra.gmra.mxu1 %vm93_vm0, %v85_v8  ;;  %5090 = vmatmul.mubr.msk.f32.vlgmr.msra.gmra.mxu0 %vm93_vm0, %v86_v10  ;;  %v590_v41 = vld [vmem:[#allocation4 + $0x138] sm:$0xff]  ;;  %v587_v42 = vld [vmem:[#allocation4 + $0x120] sm:$0xff]  ;;  %v589_v43 = vld [vmem:[#allocation4 + $0x130] sm:$0xff] }
  0x35   :  { %5076 = vmatprep.mubr.msk.f32.mxu1 %vm93_vm0, %v86_v10  ;;  %5092 = vmatprep.mubr.msk.f32.mxu0 %vm93_vm0, %v87_v3  ;;  %v584_v44 = vld [vmem:[#allocation4 + $0x108] sm:$0xff]  ;;  %v586_v45 = vld [vmem:[#allocation4 + $0x118] sm:$0xff]  ;;  %v583_v46 = vld [vmem:[#allocation4 + $0x100] sm:$0xff] }
  0x36   :  { %637 = vmatprep.subr.mxu1 %v612_v14  ;;  %750 = vmatprep.subr.mxu0 %v614_v15  ;;  %v585_v47 = vld [vmem:[#allocation4 + $0x110] sm:$0xff]  ;;  %v580_v48 = vld [vmem:[#allocation4 + $0xe8] sm:$0xff]  ;;  %v582_v49 = vld [vmem:[#allocation4 + $0xf8] sm:$0xff] }
  0x37   :  { %638 = vmatpush1.msra.mxu1 %v611_v16  ;;  %751 = vmatpush1.msra.mxu0 %v613_v17  ;;  %v579_v50 = vld [vmem:[#allocation4 + $0xe0] sm:$0xff]  ;;  %v581_v51 = vld [vmem:[#allocation4 + $0xf0] sm:$0xff]  ;;  %v576_v52 = vld [vmem:[#allocation4 + $0xc8] sm:$0xff]  ;;  %v7876_v16 = vmov 0.0  }
  0x38   :  { %5077 = vmatmul.mubr.msk.f32.gmra.mxu1 %vm93_vm0, %v87_v3  ;;  %5093 = vmatmul.mubr.msk.f32.gmra.mxu0 %vm93_vm0, %v88_v5  ;;  %v578_v53 = vld [vmem:[#allocation4 + $0xd8] sm:$0xff]  ;;  %v575_v54 = vld [vmem:[#allocation4 + $0xc0] sm:$0xff]  ;;  %v577_v55 = vld [vmem:[#allocation4 + $0xd0] sm:$0xff] }
  0x39   :  { %5079 = vmatprep.mubr.msk.f32.mxu1 %vm93_vm0, %v88_v5  ;;  %5095 = vmatprep.mubr.msk.f32.mxu0 %vm93_vm0, %v89_v9  ;;  %v572_v56 = vld [vmem:[#allocation4 + $0xa8] sm:$0xff]  ;;  %v574_v57 = vld [vmem:[#allocation4 + $0xb8] sm:$0xff]  ;;  %v571_v58 = vld [vmem:[#allocation4 + $0xa0] sm:$0xff] }
  0x3a   :  { %639 = vmatprep.subr.mxu1 %v608_v18  ;;  %752 = vmatprep.subr.mxu0 %v610_v19  ;;  %v573_v59 = vld [vmem:[#allocation4 + $0xb0] sm:$0xff]  ;;  %v568_v60 = vld [vmem:[#allocation4 + $0x88] sm:$0xff]  ;;  %v570_v61 = vld [vmem:[#allocation4 + $0x98] sm:$0xff] }
  0x3b   :  { %640 = vmatpush1.msra.mxu1 %v607_v20  ;;  %753 = vmatpush1.msra.mxu0 %v609_v21  ;;  %v567_v62 = vld [vmem:[#allocation4 + $0x80] sm:$0xff]  ;;  %v569_v63 = vld [vmem:[#allocation4 + $0x90] sm:$0xff]  ;;  %v564_v0 = vld [vmem:[#allocation4 + $0x68] sm:$0xff]  ;;  %v7872_v20 = vmov 0  }
  0x3c   :  { %5080 = vmatmul.mubr.msk.f32.gmra.mxu1 %vm93_vm0, %v89_v9  ;;  %5096 = vmatmul.mubr.msk.f32.gmra.mxu0 %vm93_vm0, %v90_v11  ;;  %v566_v1 = vld [vmem:[#allocation4 + $0x78] sm:$0xff]  ;;  %v563_v2 = vld [vmem:[#allocation4 + $0x60] sm:$0xff]  ;;  %v565_v3 = vld [vmem:[#allocation4 + $0x70] sm:$0xff] }
  0x3d   :  { %5082 = vmatprep.mubr.msk.f32.mxu1 %vm93_vm0, %v90_v11  ;;  %5098 = vmatprep.mubr.msk.f32.mxu0 %vm93_vm0, %v238_v22  ;;  %v560_v4 = vld [vmem:[#allocation4 + $0x48] sm:$0xff]  ;;  %v562_v5 = vld [vmem:[#allocation4 + $0x58] sm:$0xff]  ;;  %v559_v6 = vld [vmem:[#allocation4 + $0x40] sm:$0xff] }
  0x3e   :  { %641 = vmatprep.subr.mxu1 %v604_v23  ;;  %754 = vmatprep.subr.mxu0 %v606_v24  ;;  %v561_v7 = vld [vmem:[#allocation4 + $0x50] sm:$0xff]  ;;  %v556_v8 = vld [vmem:[#allocation4 + $0x28] sm:$0xff]  ;;  %v558_v9 = vld [vmem:[#allocation4 + $0x38] sm:$0xff] }
  0x3f   :  { %642 = vmatpush1.msra.mxu1 %v603_v25  ;;  %755 = vmatpush1.msra.mxu0 %v605_v26  ;;  %v555_v10 = vld [vmem:[#allocation4 + $0x20] sm:$0xff]  ;;  %v557_v11 = vld [vmem:[#allocation4 + $0x30] sm:$0xff]  ;;  %v552_v12 = vld [vmem:[#allocation4 + $0x8] sm:$0xff] }
  0x40   :  { %5083 = vmatmul.mubr.msk.f32.gmra.mxu1 %vm93_vm0, %v238_v22  ;;  %5099 = vmatmul.mubr.msk.f32.gmra.mxu0 %vm93_vm0, %v386_v27  ;;  %v554_v13 = vld [vmem:[#allocation4 + $0x18] sm:$0xff]  ;;  %v551_v14 = vld [vmem:[#allocation4] sm:$0xff]  ;;  %v553_v15 = vld [vmem:[#allocation4 + $0x10] sm:$0xff]  ;;  %vm5603_vm0 = vmmov 0  }
  0x41   :  { %643 = vmatprep.subr.mxu1 %v600_v28  ;;  %756 = vmatprep.subr.mxu0 %v602_v29  ;;  %v5740_v17 = vld [vmem:[#allocation7 + $0x1e8] sm:$0xff]  ;;  %v5742_v18 = vld [vmem:[#allocation7 + $0x1f8] sm:$0xff]  ;;  %v5750_v19 = vld [vmem:[%s7863_s1] sm:$0xff] }
  0x42   :  { %644 = vmatpush1.msra.mxu1 %v599_v30  ;;  %757 = vmatpush1.msra.mxu0 %v601_v31  ;;  %8083 = vst [vmem:[#allocation14_spill] sm:$0xff] %v5750_v19  ;;  %vm1133_vm1 = vcmp.gt.s32.totalorder %v5750_v19, 0  ;;  %vm1380_vm2 = vcmp.gt.s32.totalorder %v5750_v19, 1  ;;  %vm2121_vm3 = vcmp.gt.s32.totalorder %v5750_v19, 4  ;;  %vm2615_vm4 = vcmp.gt.s32.totalorder %v5750_v19, 6  ;;  %v5971_v19 = vld [vmem:[#allocation7 + $0x8] sm:$0xff] }
  0x43   :  { %645 = vmatprep.subr.mxu1 %v596_v32  ;;  %758 = vmatprep.subr.mxu0 %v598_v33  ;;  %v1134_v21 = vsel %vm1133_vm1, 1, %v7872_v20  ;;  %v1381_v22 = vsel %vm1380_vm2, 1, %v7872_v20  ;;  %v2122_v23 = vsel %vm2121_vm3, 1, %v7872_v20  ;;  %v2616_v24 = vsel %vm2615_vm4, 1, %v7872_v20  ;;  %v5773_v33 = vld [vmem:[%s7865_s3] ss:$0 sm:$0xff] }
  0x44   :  { %646 = vmatpush1.msra.mxu1 %v595_v34  ;;  %759 = vmatpush1.msra.mxu0 %v597_v35  ;;  %8101 = vst [vmem:[#allocation32_spill] sm:$0xff] %v5971_v19 }
  0x45   :  { %647 = vmatprep.subr.mxu1 %v592_v36  ;;  %760 = vmatprep.subr.mxu0 %v594_v37 }
  0x46   :  { %648 = vmatpush1.msra.mxu1 %v591_v38  ;;  %761 = vmatpush1.msra.mxu0 %v593_v39 }
  0x47   :  { %649 = vmatprep.subr.mxu1 %v588_v40  ;;  %762 = vmatprep.subr.mxu0 %v590_v41 }
  0x48   :  { %650 = vmatpush1.msra.mxu1 %v587_v42  ;;  %763 = vmatpush1.msra.mxu0 %v589_v43 }
  0x49   :  { %651 = vmatprep.subr.mxu1 %v584_v44  ;;  %764 = vmatprep.subr.mxu0 %v586_v45 }
  0x4a   :  { %652 = vmatpush1.msra.mxu1 %v583_v46  ;;  %765 = vmatpush1.msra.mxu0 %v585_v47  ;;  %v5777_v47 = vld [vmem:[#allocation7 + $0x1e0] sm:$0xff] }
  0x4b   :  { %653 = vmatprep.subr.mxu1 %v580_v48  ;;  %766 = vmatprep.subr.mxu0 %v582_v49  ;;  %v5779_v48 = vld [vmem:[#allocation7 + $0x1f0] sm:$0xff] }
  0x4c   :  { %654 = vmatpush1.msra.mxu1 %v579_v50  ;;  %767 = vmatpush1.msra.mxu0 %v581_v51  ;;  %v5782_v51 = vld [vmem:[#allocation7 + $0x1c8] sm:$0xff] }
  0x4d   :  { %655 = vmatprep.subr.mxu1 %v576_v52  ;;  %768 = vmatprep.subr.mxu0 %v578_v53  ;;  %v5784_v52 = vld [vmem:[#allocation7 + $0x1d8] sm:$0xff] }
  0x4e   :  { %656 = vmatpush1.msra.mxu1 %v575_v54  ;;  %769 = vmatpush1.msra.mxu0 %v577_v55  ;;  %v5788_v54 = vld [vmem:[#allocation7 + $0x1c0] sm:$0xff]  ;;  %v5790_v55 = vld [vmem:[#allocation7 + $0x1d0] sm:$0xff] }
  0x4f   :  { %657 = vmatprep.subr.mxu1 %v572_v56  ;;  %770 = vmatprep.subr.mxu0 %v574_v57 }
  0x50   :  { %658 = vmatpush1.msra.mxu1 %v571_v58  ;;  %771 = vmatpush1.msra.mxu0 %v573_v59  ;;  %v5796_v58 = vld [vmem:[#allocation7 + $0x1a8] sm:$0xff]  ;;  %v5798_v59 = vld [vmem:[#allocation7 + $0x1b8] sm:$0xff] }
  0x51   :  { %659 = vmatprep.subr.mxu1 %v568_v60  ;;  %772 = vmatprep.subr.mxu0 %v570_v61  ;;  %v5802_v60 = vld [vmem:[#allocation7 + $0x1a0] sm:$0xff]  ;;  %v5804_v61 = vld [vmem:[#allocation7 + $0x1b0] sm:$0xff] }
  0x52   :  { %660 = vmatpush1.msra.mxu1 %v567_v62  ;;  %773 = vmatpush1.msra.mxu0 %v569_v63 }
  0x53   :  { %661 = vmatprep.subr.mxu1 %v564_v0  ;;  %774 = vmatprep.subr.mxu0 %v566_v1  ;;  %v5807_v0 = vld [vmem:[#allocation7 + $0x188] sm:$0xff]  ;;  %v5809_v1 = vld [vmem:[#allocation7 + $0x198] sm:$0xff] }
  0x54   :  { %662 = vmatpush1.msra.mxu1 %v563_v2  ;;  %775 = vmatpush1.msra.mxu0 %v565_v3 }
  0x55   :  { %663 = vmatprep.subr.mxu1 %v560_v4  ;;  %776 = vmatprep.subr.mxu0 %v562_v5  ;;  %v5815_v4 = vld [vmem:[#allocation7 + $0x180] sm:$0xff]  ;;  %v5817_v5 = vld [vmem:[#allocation7 + $0x190] sm:$0xff] }
  0x56   :  { %664 = vmatpush1.msra.mxu1 %v559_v6  ;;  %777 = vmatpush1.msra.mxu0 %v561_v7  ;;  %v5823_v7 = vld [vmem:[#allocation7 + $0x168] sm:$0xff] }
  0x57   :  { %665 = vmatprep.subr.mxu1 %v556_v8  ;;  %778 = vmatprep.subr.mxu0 %v558_v9  ;;  %v5825_v8 = vld [vmem:[#allocation7 + $0x178] sm:$0xff] }
  0x58   :  { %666 = vmatpush1.msra.mxu1 %v555_v10  ;;  %779 = vmatpush1.msra.mxu0 %v557_v11  ;;  %v5829_v11 = vld [vmem:[#allocation7 + $0x160] sm:$0xff] }
  0x59   :  { %667 = vmatprep.subr.mxu1 %v552_v12  ;;  %780 = vmatprep.subr.mxu0 %v554_v13  ;;  %v5831_v12 = vld [vmem:[#allocation7 + $0x170] sm:$0xff] }
  0x5a   :  { %668 = vmatpush1.msra.mxu1 %v551_v14  ;;  %701 = vmatprep.mubr.f32.mxu1 %v7876_v16 }
  0x5b   :  { %781 = vmatpush1.msra.mxu0 %v553_v15  ;;  %814 = vmatprep.mubr.f32.mxu0 %v7876_v16  ;;  %v5835_v15 = vld [vmem:[#allocation7 + $0x148] sm:$0xff] }
  0x5c   :  { %963 = vmatprep.subr.mxu1 %v5740_v17  ;;  %1034 = vmatprep.subr.mxu0 %v5742_v18 }
  0x5d   :  { %5186 = vset.pattern.permute.xlu0 %v7872_v20  ;;  %5187 = vset.pattern.permute.xlu1 %v7872_v20  ;;  %v5969_v20 = vld [vmem:[#allocation7 + $0x30] sm:$0xff] }
  0x5e   :  { %1136 = vperm.xlu0 %5186, %v1134_v21   ;;  %v5837_v21 = vld [vmem:[#allocation7 + $0x158] sm:$0xff]  ;;  %8100 = vst [vmem:[#allocation31_spill] sm:$0xff] %v5969_v20 }
  0x62   :  { %1383 = vperm.xlu0 %5186, %v1381_v22  }
  0x66   :  { %2124 = vperm.xlu0 %5186, %v2122_v23   ;;  %v5843_v23 = vld [vmem:[#allocation7 + $0x140] sm:$0xff] }
  0x6a   :  { %2618 = vperm.xlu0 %5186, %v2616_v24   ;;  %v5845_v24 = vld [vmem:[#allocation7 + $0x150] sm:$0xff] }
  0xec   :  { %v5059_v25 = vpop.f32.mrf.mxu0  ;;  %v5762_v26 = vpop.f32.mrf.mxu1 }
  0xed   :  { %v224_v37 = vadd.f32 %v5059_v25, %v5773_v33 }
  0xee   :  { %v184_v27 = vpop.f32.mrf.mxu0  ;;  %v5764_v28 = vpop.f32.mrf.mxu1 }
  0xef   :  { %v223_v36 = vadd.f32 %v5773_v33, %v184_v27  ;;  %v227_v13 = vadd.f32 %v5773_v33, %v5764_v28  ;;  %v5851_v28 = vld [vmem:[#allocation7 + $0x128] sm:$0xff] }
  0xf0   :  { %v5062_v29 = vpop.f32.mrf.mxu0  ;;  %v5766_v30 = vpop.f32.mrf.mxu1 }
  0xf1   :  { %v226_v62 = vadd.f32 %v5062_v29, %v5773_v33  ;;  %v5853_v29 = vld [vmem:[#allocation7 + $0x138] sm:$0xff] }
  0xf2   :  { %v194_v31 = vpop.f32.mrf.mxu0  ;;  %v5768_v32 = vpop.f32.mrf.mxu1 }
  0xf3   :  { %v225_v49 = vadd.f32 %v5773_v33, %v194_v31  ;;  %v5857_v31 = vld [vmem:[#allocation7 + $0x120] sm:$0xff] }
  0xf4   :  { %v5075_v34 = vpop.f32.mrf.mxu1  ;;  %v5091_v35 = vpop.f32.mrf.mxu0 }
  0xf5   :  { %v372_v40 = vadd.f32 %v5075_v34, %v224_v37  ;;  %v5859_v34 = vld [vmem:[#allocation7 + $0x130] sm:$0xff]  ;;  %v5863_v37 = vld [vmem:[#allocation7 + $0x108] sm:$0xff] }
  0xf6   :  { %v332_v38 = vpop.f32.mrf.mxu1  ;;  %v480_v41 = vpop.f32.mrf.mxu0 }
  0xf7   :  { %v371_v39 = vadd.f32 %v332_v38, %v223_v36  ;;  %v520_v50 = vadd.f32 %v5091_v35, %v372_v40  ;;  %v228_v35 = vadd.f32 %v5762_v26, %v5773_v33  ;;  %v5865_v38 = vld [vmem:[#allocation7 + $0x118] sm:$0xff]  ;;  %v5873_v26 = vld [vmem:[#allocation7 + $0x110] sm:$0xff] }
  0xf8   :  { %v5078_v42 = vpop.f32.mrf.mxu1  ;;  %v5094_v46 = vpop.f32.mrf.mxu0 }
  0xf9   :  { %v519_v43 = vadd.f32 %v480_v41, %v371_v39  ;;  %v528_v57 = vmax.f32 %v520_v50, 0.0  ;;  %v374_v3 = vadd.f32 %v5078_v42, %v226_v62  ;;  %v5871_v41 = vld [vmem:[#allocation7 + $0x100] sm:$0xff]  ;;  %v5887_v50 = vld [vmem:[#allocation7 + $0xf0] sm:$0xff]  ;;  %v5893_v62 = vld [vmem:[#allocation7 + $0xd8] sm:$0xff] }
  0xfa   :  { %v342_v45 = vpop.f32.mrf.mxu1  ;;  %v490_v56 = vpop.f32.mrf.mxu0 }
  0xfb   :  { %v527_v44 = vmax.f32 %v519_v43, 0.0  ;;  %v373_v53 = vadd.f32 %v342_v45, %v225_v49  ;;  %v522_v14 = vadd.f32 %v5094_v46, %v374_v3  ;;  %v5879_v43 = vld [vmem:[#allocation7 + $0xe8] sm:$0xff]  ;;  %v5885_v49 = vld [vmem:[#allocation7 + $0xe0] sm:$0xff]  ;;  %v5901_v3 = vld [vmem:[#allocation7 + $0xd0] sm:$0xff] }
  0xfc   :  { %v5081_v2 = vpop.f32.mrf.mxu1  ;;  %v5097_v10 = vpop.f32.mrf.mxu0 }
  0xfd   :  { %702 = vmatmul.mubr.f32.vlgmr.msra.gmra.mxu1 %v527_v44  ;;  %815 = vmatmul.mubr.f32.vlgmr.msra.gmra.mxu0 %v527_v44  ;;  %v521_v63 = vadd.f32 %v490_v56, %v373_v53  ;;  %v530_v27 = vmax.f32 %v522_v14, 0.0  ;;  %v376_v40 = vadd.f32 %v5081_v2, %v228_v35  ;;  %v5881_v44 = vld [vmem:[#allocation7 + $0xf8] sm:$0xff]  ;;  %v229_v53 = vadd.f32 %v5773_v33, %v5768_v32  ;;  %v5899_v2 = vld [vmem:[#allocation7 + $0xc0] sm:$0xff]  ;;  %v5915_v14 = vld [vmem:[#allocation7 + $0xb0] sm:$0xff] }
  0xfe   :  { %964 = vmatpush1.msra.mxu1 %v5777_v47  ;;  %1035 = vmatpush1.msra.mxu0 %v5779_v48  ;;  %v352_v9 = vpop.f32.mrf.mxu1  ;;  %v500_v25 = vpop.f32.mrf.mxu0  ;;  %8084 = vst [vmem:[#allocation15_spill] sm:$0xff] %v5915_v14  ;;  %v5921_v35 = vld [vmem:[#allocation7 + $0x98] sm:$0xff] }
  0xff   :  { %965 = vmatprep.subr.mxu1 %v5782_v51  ;;  %1036 = vmatprep.subr.mxu0 %v5784_v52  ;;  %v529_v6 = vmax.f32 %v521_v63, 0.0  ;;  %v375_v22 = vadd.f32 %v352_v9, %v227_v13  ;;  %v524_v56 = vadd.f32 %v5097_v10, %v376_v40  ;;  %v5907_v9 = vld [vmem:[#allocation7 + $0xa8] sm:$0xff]  ;;  %v5909_v10 = vld [vmem:[#allocation7 + $0xb8] sm:$0xff]  ;;  %v5913_v13 = vld [vmem:[#allocation7 + $0xa0] sm:$0xff]  ;;  %8086 = vst [vmem:[#allocation17_spill] sm:$0xff] %v5921_v35 }
 0x100   :  { %707 = vmatprep.mubr.f32.mxu1 %v7876_v16  ;;  %820 = vmatprep.mubr.f32.mxu0 %v7876_v16  ;;  %v5084_v39 = vpop.f32.mrf.mxu1  ;;  %v5100_v46 = vpop.f32.mrf.mxu0  ;;  %v5927_v40 = vld [vmem:[#allocation7 + $0x80] sm:$0xff] }
 0x101   :  { %966 = vmatpush1.msra.mxu1 %v5788_v54  ;;  %1037 = vmatpush1.msra.mxu0 %v5790_v55  ;;  %v523_v36 = vadd.f32 %v500_v25, %v375_v22  ;;  %v230_v22 = vadd.f32 %v5766_v30, %v5773_v33  ;;  %8087 = vst [vmem:[#allocation18_spill] sm:$0xff] %v5927_v40  ;;  %v5935_v33 = vld [vmem:[#allocation7 + $0x68] sm:$0xff] }
 0x102   :  { %708 = vmatmul.mubr.f32.gmra.mxu1 %v528_v57  ;;  %821 = vmatmul.mubr.f32.gmra.mxu0 %v528_v57  ;;  %v362_v45 = vpop.f32.mrf.mxu1  ;;  %v5891_v57 = vld [vmem:[#allocation7 + $0xc8] sm:$0xff]  ;;  %v510_v32 = vpop.f32.mrf.mxu0  ;;  %8089 = vst [vmem:[#allocation20_spill] sm:$0xff] %v5935_v33 }
 0x103   :  { %967 = vmatprep.subr.mxu1 %v5796_v58  ;;  %1038 = vmatprep.subr.mxu0 %v5798_v59  ;;  %v531_v42 = vmax.f32 %v523_v36, 0.0  ;;  %v377_v63 = vadd.f32 %v362_v45, %v229_v53  ;;  %v378_v36 = vadd.f32 %v5084_v39, %v230_v22  ;;  %v5937_v39 = vld [vmem:[#allocation7 + $0x78] sm:$0xff]  ;;  %v5941_v45 = vld [vmem:[#allocation7 + $0x60] sm:$0xff]  ;;  %v5943_v53 = vld [vmem:[#allocation7 + $0x70] sm:$0xff] }
 0x104   :  { %968 = vmatpush1.msra.mxu1 %v5802_v60  ;;  %1039 = vmatpush1.msra.mxu0 %v5804_v61  ;;  %8090 = vst [vmem:[#allocation21_spill] sm:$0xff] %v5937_v39  ;;  %8091 = vst [vmem:[#allocation22_spill] sm:$0xff] %v5941_v45  ;;  %v5955_v22 = vld [vmem:[#allocation7 + $0x50] sm:$0xff] }
 0x105   :  { %969 = vmatprep.subr.mxu1 %v5807_v0  ;;  %1040 = vmatprep.subr.mxu0 %v5809_v1  ;;  %v525_v25 = vadd.f32 %v510_v32, %v377_v63  ;;  %8092 = vst [vmem:[#allocation23_spill] sm:$0xff] %v5943_v53  ;;  %v5945_v63 = vld [vmem:[#allocation7 + $0x48] sm:$0xff]  ;;  %v5947_v32 = vld [vmem:[#allocation7 + $0x58] sm:$0xff]  ;;  %8096 = vst [vmem:[#allocation27_spill] sm:$0xff] %v5955_v22 }
 0x106   :  { %713 = vmatprep.mubr.f32.mxu1 %v7876_v16  ;;  %826 = vmatprep.mubr.f32.mxu0 %v7876_v16  ;;  %8093 = vst [vmem:[#allocation24_spill] sm:$0xff] %v5945_v63  ;;  %8094 = vst [vmem:[#allocation25_spill] sm:$0xff] %v5947_v32 }
 0x107   :  { %970 = vmatpush1.msra.mxu1 %v5815_v4  ;;  %1041 = vmatpush1.msra.mxu0 %v5817_v5  ;;  %v533_v30 = vmax.f32 %v525_v25, 0.0  ;;  %v5961_v25 = vld [vmem:[#allocation7 + $0x28] sm:$0xff] }
 0x108   :  { %714 = vmatmul.mubr.f32.gmra.mxu1 %v529_v6  ;;  %827 = vmatmul.mubr.f32.gmra.mxu0 %v529_v6  ;;  %v532_v6 = vmax.f32 %v524_v56, 0.0  ;;  %v526_v56 = vadd.f32 %v5100_v46, %v378_v36  ;;  %8097 = vst [vmem:[#allocation28_spill] sm:$0xff] %v5961_v25  ;;  %v5963_v36 = vld [vmem:[#allocation7 + $0x38] sm:$0xff] }
 0x109   :  { %971 = vmatprep.subr.mxu1 %v5823_v7  ;;  %1042 = vmatprep.subr.mxu0 %v5825_v8  ;;  %8098 = vst [vmem:[#allocation29_spill] sm:$0xff] %v5963_v36 }
 0x10a   :  { %972 = vmatpush1.msra.mxu1 %v5829_v11  ;;  %1043 = vmatpush1.msra.mxu0 %v5831_v12  ;;  %v534_v46 = vmax.f32 %v526_v56, 0.0  ;;  %v5973_v56 = vld [vmem:[#allocation7 + $0x18] sm:$0xff] }
 0x10b   :  { %973 = vmatprep.subr.mxu1 %v5835_v15  ;;  %1044 = vmatprep.subr.mxu0 %v5837_v21  ;;  %8102 = vst [vmem:[#allocation33_spill] sm:$0xff] %v5973_v56 }
 0x10c   :  { %719 = vmatprep.mubr.f32.mxu1 %v7876_v16  ;;  %832 = vmatprep.mubr.f32.mxu0 %v7876_v16 }
 0x10d   :  { %974 = vmatpush1.msra.mxu1 %v5843_v23  ;;  %1045 = vmatpush1.msra.mxu0 %v5845_v24 }
 0x10e   :  { %720 = vmatmul.mubr.f32.gmra.mxu1 %v530_v27  ;;  %833 = vmatmul.mubr.f32.gmra.mxu0 %v530_v27  ;;  %v5919_v27 = vld [vmem:[#allocation7 + $0x88] sm:$0xff] }
 0x10f   :  { %975 = vmatprep.subr.mxu1 %v5851_v28  ;;  %1046 = vmatprep.subr.mxu0 %v5853_v29  ;;  %8085 = vst [vmem:[#allocation16_spill] sm:$0xff] %v5919_v27 }
 0x110   :  { %976 = vmatpush1.msra.mxu1 %v5857_v31  ;;  %1047 = vmatpush1.msra.mxu0 %v5859_v34 }
 0x111   :  { %977 = vmatprep.subr.mxu1 %v5863_v37  ;;  %1048 = vmatprep.subr.mxu0 %v5865_v38 }
 0x112   :  { %725 = vmatprep.mubr.f32.mxu1 %v7876_v16  ;;  %838 = vmatprep.mubr.f32.mxu0 %v7876_v16 }
 0x113   :  { %978 = vmatpush1.msra.mxu1 %v5871_v41  ;;  %1049 = vmatpush1.msra.mxu0 %v5873_v26 }
 0x114   :  { %726 = vmatmul.mubr.f32.gmra.mxu1 %v531_v42  ;;  %839 = vmatmul.mubr.f32.gmra.mxu0 %v531_v42  ;;  %v5929_v42 = vld [vmem:[#allocation7 + $0x90] sm:$0xff] }
 0x115   :  { %979 = vmatprep.subr.mxu1 %v5879_v43  ;;  %1050 = vmatprep.subr.mxu0 %v5881_v44  ;;  %8088 = vst [vmem:[#allocation19_spill] sm:$0xff] %v5929_v42 }
 0x116   :  { %980 = vmatpush1.msra.mxu1 %v5885_v49  ;;  %1051 = vmatpush1.msra.mxu0 %v5887_v50 }
 0x117   :  { %981 = vmatprep.subr.mxu1 %v5891_v57  ;;  %1052 = vmatprep.subr.mxu0 %v5893_v62 }
 0x118   :  { %731 = vmatprep.mubr.f32.mxu1 %v7876_v16  ;;  %844 = vmatprep.mubr.f32.mxu0 %v7876_v16 }
 0x119   :  { %982 = vmatpush1.msra.mxu1 %v5899_v2  ;;  %1053 = vmatpush1.msra.mxu0 %v5901_v3 }
 0x11a   :  { %732 = vmatmul.mubr.f32.gmra.mxu1 %v532_v6  ;;  %845 = vmatmul.mubr.f32.gmra.mxu0 %v532_v6  ;;  %v5953_v6 = vld [vmem:[#allocation7 + $0x40] sm:$0xff] }
 0x11b   :  { %983 = vmatprep.subr.mxu1 %v5907_v9  ;;  %1054 = vmatprep.subr.mxu0 %v5909_v10  ;;  %8095 = vst [vmem:[#allocation26_spill] sm:$0xff] %v5953_v6 }
 0x11c   :  { %984 = vmatpush1.msra.mxu1 %v5913_v13  ;;  %1055 = vmatpush1.msra.mxu0 %v5915_v14 }
 0x11d   :  { %985 = vmatprep.subr.mxu1 %v5919_v27  ;;  %1056 = vmatprep.subr.mxu0 %v5921_v35 }
 0x11e   :  { %737 = vmatprep.mubr.f32.mxu1 %v7876_v16  ;;  %850 = vmatprep.mubr.f32.mxu0 %v7876_v16 }
 0x11f   :  { %986 = vmatpush1.msra.mxu1 %v5927_v40  ;;  %1057 = vmatpush1.msra.mxu0 %v5929_v42 }
 0x120   :  { %738 = vmatmul.mubr.f32.gmra.mxu1 %v533_v30  ;;  %851 = vmatmul.mubr.f32.gmra.mxu0 %v533_v30  ;;  %v5967_v30 = vld [vmem:[#allocation7 + $0x20] sm:$0xff] }
 0x121   :  { %987 = vmatprep.subr.mxu1 %v5935_v33  ;;  %1058 = vmatprep.subr.mxu0 %v5937_v39  ;;  %8099 = vst [vmem:[#allocation30_spill] sm:$0xff] %v5967_v30 }
 0x122   :  { %988 = vmatpush1.msra.mxu1 %v5941_v45  ;;  %1059 = vmatpush1.msra.mxu0 %v5943_v53 }
 0x123   :  { %989 = vmatprep.subr.mxu1 %v5945_v63  ;;  %1060 = vmatprep.subr.mxu0 %v5947_v32 }
 0x124   :  { %743 = vmatprep.mubr.f32.mxu1 %v7876_v16  ;;  %856 = vmatprep.mubr.f32.mxu0 %v7876_v16  ;;  %v5977_v16 = vld [vmem:[#allocation7] sm:$0xff] }
 0x125   :  { %990 = vmatpush1.msra.mxu1 %v5953_v6  ;;  %1061 = vmatpush1.msra.mxu0 %v5955_v22  ;;  %8103 = vst [vmem:[#allocation34_spill] sm:$0xff] %v5977_v16  ;;  %v5981_v22 = vld [vmem:[#allocation7 + $0x10] sm:$0xff] }
 0x126   :  { %744 = vmatmul.mubr.f32.gmra.mxu1 %v534_v46  ;;  %857 = vmatmul.mubr.f32.gmra.mxu0 %v534_v46  ;;  %8104 = vst [vmem:[#allocation35_spill] sm:$0xff] %v5981_v22  ;;  %v8105_v46 = vmov 0.0  }
 0x127   :  { %991 = vmatprep.subr.mxu1 %v5961_v25  ;;  %1062 = vmatprep.subr.mxu0 %v5963_v36 }
 0x128   :  { %992 = vmatpush1.msra.mxu1 %v5967_v30  ;;  %1063 = vmatpush1.msra.mxu0 %v5969_v20 }
 0x129   :  { %993 = vmatprep.subr.mxu1 %v5971_v19  ;;  %1064 = vmatprep.subr.mxu0 %v5973_v56 }
 0x12a   :  { %994 = vmatpush1.msra.mxu1 %v5977_v16  ;;  %1027 = vmatprep.mubr.f32.mxu1 %v8105_v46 }
 0x12b   :  { %1065 = vmatpush1.msra.mxu0 %v5981_v22  ;;  %1098 = vmatprep.mubr.f32.mxu0 %v8105_v46 }
 0x12c   :  { %1028 = vmatmul.mubr.f32.vlgmr.msra.gmra.mxu1 %v8105_v46  ;;  %1099 = vmatmul.mubr.f32.vlgmr.msra.gmra.mxu0 %v8105_v46 }
 0x12d   :  { %1210 = vmatprep.subr.mxu1 %v5740_v17  ;;  %1281 = vmatprep.subr.mxu0 %v5742_v18 }
 0x12e   :  { %1211 = vmatpush1.msra.mxu1 %v5777_v47  ;;  %1282 = vmatpush1.msra.mxu0 %v5779_v48 }
 0x12f   :  { %1212 = vmatprep.subr.mxu1 %v5782_v51  ;;  %1283 = vmatprep.subr.mxu0 %v5784_v52 }
 0x130   :  { %1213 = vmatpush1.msra.mxu1 %v5788_v54  ;;  %1284 = vmatpush1.msra.mxu0 %v5790_v55 }
 0x131   :  { %1214 = vmatprep.subr.mxu1 %v5796_v58  ;;  %1285 = vmatprep.subr.mxu0 %v5798_v59 }
 0x132   :  { %1215 = vmatpush1.msra.mxu1 %v5802_v60  ;;  %1286 = vmatpush1.msra.mxu0 %v5804_v61 }
 0x133   :  { %1216 = vmatprep.subr.mxu1 %v5807_v0  ;;  %1287 = vmatprep.subr.mxu0 %v5809_v1 }
 0x134   :  { %1217 = vmatpush1.msra.mxu1 %v5815_v4  ;;  %1288 = vmatpush1.msra.mxu0 %v5817_v5 }
 0x135   :  { %1218 = vmatprep.subr.mxu1 %v5823_v7  ;;  %1289 = vmatprep.subr.mxu0 %v5825_v8 }
 0x136   :  { %1219 = vmatpush1.msra.mxu1 %v5829_v11  ;;  %1290 = vmatpush1.msra.mxu0 %v5831_v12 }
 0x137   :  { %1220 = vmatprep.subr.mxu1 %v5835_v15  ;;  %1291 = vmatprep.subr.mxu0 %v5837_v21 }
 0x138   :  { %1221 = vmatpush1.msra.mxu1 %v5843_v23  ;;  %1292 = vmatpush1.msra.mxu0 %v5845_v24 }
 0x139   :  { %1222 = vmatprep.subr.mxu1 %v5851_v28  ;;  %1293 = vmatprep.subr.mxu0 %v5853_v29 }
 0x13a   :  { %1223 = vmatpush1.msra.mxu1 %v5857_v31  ;;  %1294 = vmatpush1.msra.mxu0 %v5859_v34 }
 0x13b   :  { %1224 = vmatprep.subr.mxu1 %v5863_v37  ;;  %1295 = vmatprep.subr.mxu0 %v5865_v38 }
 0x13c   :  { %1225 = vmatpush1.msra.mxu1 %v5871_v41  ;;  %1296 = vmatpush1.msra.mxu0 %v5873_v26 }
 0x13d   :  { %1226 = vmatprep.subr.mxu1 %v5879_v43  ;;  %1297 = vmatprep.subr.mxu0 %v5881_v44 }
 0x13e   :  { %1227 = vmatpush1.msra.mxu1 %v5885_v49  ;;  %1298 = vmatpush1.msra.mxu0 %v5887_v50 }
 0x13f   :  { %1228 = vmatprep.subr.mxu1 %v5891_v57  ;;  %1299 = vmatprep.subr.mxu0 %v5893_v62 }
 0x140   :  { %1229 = vmatpush1.msra.mxu1 %v5899_v2  ;;  %1300 = vmatpush1.msra.mxu0 %v5901_v3 }
 0x141   :  { %1230 = vmatprep.subr.mxu1 %v5907_v9  ;;  %1301 = vmatprep.subr.mxu0 %v5909_v10 }
 0x142   :  { %1231 = vmatpush1.msra.mxu1 %v5913_v13  ;;  %1302 = vmatpush1.msra.mxu0 %v5915_v14 }
 0x143   :  { %1232 = vmatprep.subr.mxu1 %v5919_v27  ;;  %1303 = vmatprep.subr.mxu0 %v5921_v35  ;;  %v8106_v27 = vld [vmem:[#allocation27_spill] sm:$0xff] }
 0x144   :  { %1233 = vmatpush1.msra.mxu1 %v5927_v40  ;;  %1304 = vmatpush1.msra.mxu0 %v5929_v42 }
 0x145   :  { %1234 = vmatprep.subr.mxu1 %v5935_v33  ;;  %1305 = vmatprep.subr.mxu0 %v5937_v39 }
 0x146   :  { %1235 = vmatpush1.msra.mxu1 %v5941_v45  ;;  %1306 = vmatpush1.msra.mxu0 %v5943_v53 }
 0x147   :  { %1236 = vmatprep.subr.mxu1 %v5945_v63  ;;  %1307 = vmatprep.subr.mxu0 %v5947_v32 }
 0x148   :  { %1237 = vmatpush1.msra.mxu1 %v5953_v6  ;;  %1308 = vmatpush1.msra.mxu0 %v8106_v27 }
 0x149   :  { %1238 = vmatprep.subr.mxu1 %v5961_v25  ;;  %1309 = vmatprep.subr.mxu0 %v5963_v36  ;;  %v617_v36 = vlaneseq }
 0x14a   :  { %1239 = vmatpush1.msra.mxu1 %v5967_v30  ;;  %1310 = vmatpush1.msra.mxu0 %v5969_v20 }
 0x14b   :  { %1240 = vmatprep.subr.mxu1 %v5971_v19  ;;  %1311 = vmatprep.subr.mxu0 %v5973_v56  ;;  %v6059_v30 = vshrl.u32 %v617_v36, 7 }
 0x14c   :  { %1241 = vmatpush1.msra.mxu1 %v5977_v16  ;;  %1274 = vmatprep.mubr.f32.mxu1 %v8105_v46 }
 0x14d   :  { %1312 = vmatpush1.msra.mxu0 %v5981_v22  ;;  %1345 = vmatprep.mubr.f32.mxu0 %v8105_v46  ;;  %8107 = vst [vmem:[#allocation36_spill] sm:$0xff] %v6059_v30  ;;  %v7897_v20 = vsub.s32 0, %v6059_v30  ;;  %v7899_v56 = vsub.s32 2, %v6059_v30  ;;  %v615_v22 = vld [vmem:[%s7868_s6] sm:$0xf]  ;;  %v7903_v46 = vsub.s32 1, %v6059_v30 }
 0x14e   :  { %1457 = vmatprep.subr.mxu1 %v5740_v17  ;;  %1528 = vmatprep.subr.mxu0 %v5742_v18  ;;  %v7904_v18 = vsub.s32 3, %v6059_v30 }
 0x14f   :  { %v620_v25 = vrot.slane %v615_v22, %v7897_v20  ;;  %v6080_v27 = vrot.slane %v615_v22, %v7899_v56  ;;  %v624_v63 = vrot.slane %v615_v22, %v7903_v46 }
 0x150   :  { %v6086_v53 = vrot.slane %v615_v22, %v7904_v18 }
 0x1bd   :  { %v6062_v19 = vpop.f32.mrf.mxu1  ;;  %v6065_v16 = vpop.f32.mrf.mxu0 }
 0x1bf   :  { %v6071_v17 = vpop.f32.mrf.mxu1  ;;  %v6074_v36 = vpop.f32.mrf.mxu0 }
 0x1c2   :  { %v709_v6 = vpop.f32.mrf.mxu1  ;;  %v822_v32 = vpop.f32.mrf.mxu0 }
 0x1c3   :  { %v6088_v45 = vadd.f32 %v709_v6, %v620_v25  ;;  %v6091_v39 = vadd.f32 %v822_v32, %v6080_v27 }
 0x1c4   :  { %v711_v33 = vpop.f32.mrf.mxu1  ;;  %v824_v20 = vpop.f32.mrf.mxu0 }
 0x1c5   :  { %8108 = vst [vmem:[#allocation37_spill] sm:$0xff] %v6091_v39  ;;  %v6093_v42 = vadd.f32 %v711_v33, %v624_v63  ;;  %v6096_v56 = vadd.f32 %v824_v20, %v6086_v53 }
 0x1c7   :  { %8109 = vst [vmem:[#allocation38_spill] sm:$0xff] %v6093_v42  ;;  %8110 = vst [vmem:[#allocation39_spill] sm:$0xff] %v6096_v56 }
 0x1c8   :  { %v715_v40 = vpop.f32.mrf.mxu1  ;;  %v828_v35 = vpop.f32.mrf.mxu0 }
 0x1c9   :  { %v6098_v14 = vadd.f32 %v715_v40, %v620_v25  ;;  %v6101_v46 = vadd.f32 %v828_v35, %v6080_v27 }
 0x1ca   :  { %v717_v22 = vpop.f32.mrf.mxu1  ;;  %v830_v6 = vpop.f32.mrf.mxu0 }
 0x1cb   :  { %8111 = vst [vmem:[#allocation40_spill] sm:$0xff] %v6098_v14  ;;  %8112 = vst [vmem:[#allocation41_spill] sm:$0xff] %v6101_v46  ;;  %v6103_v18 = vadd.f32 %v717_v22, %v624_v63  ;;  %v6106_v32 = vadd.f32 %v830_v6, %v6086_v53 }
 0x1cd   :  { %8113 = vst [vmem:[#allocation42_spill] sm:$0xff] %v6103_v18  ;;  %8114 = vst [vmem:[#allocation43_spill] sm:$0xff] %v6106_v32 }
 0x1ce   :  { %v721_v30 = vpop.f32.mrf.mxu1  ;;  %v834_v33 = vpop.f32.mrf.mxu0 }
 0x1cf   :  { %v6108_v39 = vadd.f32 %v721_v30, %v620_v25  ;;  %v6111_v20 = vadd.f32 %v834_v33, %v6080_v27 }
 0x1d0   :  { %v723_v56 = vpop.f32.mrf.mxu1  ;;  %v836_v40 = vpop.f32.mrf.mxu0 }
 0x1d1   :  { %8115 = vst [vmem:[#allocation44_spill] sm:$0xff] %v6108_v39  ;;  %8116 = vst [vmem:[#allocation45_spill] sm:$0xff] %v6111_v20  ;;  %v6113_v14 = vadd.f32 %v723_v56, %v624_v63  ;;  %v6116_v35 = vadd.f32 %v836_v40, %v6086_v53 }
 0x1d3   :  { %8117 = vst [vmem:[#allocation46_spill] sm:$0xff] %v6113_v14  ;;  %8118 = vst [vmem:[#allocation47_spill] sm:$0xff] %v6116_v35 }
 0x1d4   :  { %v727_v46 = vpop.f32.mrf.mxu1  ;;  %v840_v22 = vpop.f32.mrf.mxu0 }
 0x1d5   :  { %v6118_v18 = vadd.f32 %v727_v46, %v620_v25  ;;  %v6121_v6 = vadd.f32 %v840_v22, %v6080_v27 }
 0x1d6   :  { %v729_v32 = vpop.f32.mrf.mxu1  ;;  %v842_v30 = vpop.f32.mrf.mxu0 }
 0x1d7   :  { %8119 = vst [vmem:[#allocation48_spill] sm:$0xff] %v6118_v18  ;;  %8120 = vst [vmem:[#allocation49_spill] sm:$0xff] %v6121_v6  ;;  %v6123_v39 = vadd.f32 %v729_v32, %v624_v63  ;;  %v6126_v33 = vadd.f32 %v842_v30, %v6086_v53 }
 0x1d9   :  { %8121 = vst [vmem:[#allocation50_spill] sm:$0xff] %v6123_v39  ;;  %8122 = vst [vmem:[#allocation51_spill] sm:$0xff] %v6126_v33 }
 0x1da   :  { %v733_v20 = vpop.f32.mrf.mxu1  ;;  %v846_v56 = vpop.f32.mrf.mxu0 }
 0x1db   :  { %v6128_v14 = vadd.f32 %v733_v20, %v620_v25  ;;  %v6131_v40 = vadd.f32 %v846_v56, %v6080_v27 }
 0x1dc   :  { %v735_v35 = vpop.f32.mrf.mxu1  ;;  %v848_v46 = vpop.f32.mrf.mxu0 }
 0x1dd   :  { %8123 = vst [vmem:[#allocation52_spill] sm:$0xff] %v6128_v14  ;;  %8124 = vst [vmem:[#allocation53_spill] sm:$0xff] %v6131_v40  ;;  %v6133_v18 = vadd.f32 %v735_v35, %v624_v63  ;;  %v6136_v22 = vadd.f32 %v848_v46, %v6086_v53 }
 0x1df   :  { %8125 = vst [vmem:[#allocation54_spill] sm:$0xff] %v6133_v18  ;;  %8126 = vst [vmem:[#allocation55_spill] sm:$0xff] %v6136_v22 }
 0x1e0   :  { %v739_v6 = vpop.f32.mrf.mxu1  ;;  %v852_v32 = vpop.f32.mrf.mxu0 }
 0x1e1   :  { %v6138_v39 = vadd.f32 %v739_v6, %v620_v25  ;;  %v6141_v30 = vadd.f32 %v852_v32, %v6080_v27 }
 0x1e2   :  { %v741_v33 = vpop.f32.mrf.mxu1  ;;  %v854_v20 = vpop.f32.mrf.mxu0 }
 0x1e3   :  { %8127 = vst [vmem:[#allocation56_spill] sm:$0xff] %v6138_v39  ;;  %8128 = vst [vmem:[#allocation57_spill] sm:$0xff] %v6141_v30  ;;  %v6143_v14 = vadd.f32 %v741_v33, %v624_v63  ;;  %v6146_v56 = vadd.f32 %v854_v20, %v6086_v53  ;;  %v704_v33 = vadd.f32 %v6062_v19, %v620_v25 }
 0x1e4   :  { %v706_v20 = vadd.f32 %v6071_v17, %v624_v63 }
 0x1e5   :  { %8129 = vst [vmem:[#allocation58_spill] sm:$0xff] %v6143_v14  ;;  %8130 = vst [vmem:[#allocation59_spill] sm:$0xff] %v6146_v56 }
 0x1e6   :  { %v745_v40 = vpop.f32.mrf.mxu1  ;;  %v858_v35 = vpop.f32.mrf.mxu0 }
 0x1e7   :  { %v6148_v18 = vadd.f32 %v745_v40, %v620_v25  ;;  %v6151_v46 = vadd.f32 %v858_v35, %v6080_v27 }
 0x1e8   :  { %v747_v22 = vpop.f32.mrf.mxu1  ;;  %v860_v6 = vpop.f32.mrf.mxu0 }
 0x1e9   :  { %8131 = vst [vmem:[#allocation60_spill] sm:$0xff] %v6148_v18  ;;  %8132 = vst [vmem:[#allocation61_spill] sm:$0xff] %v6151_v46  ;;  %v6153_v39 = vadd.f32 %v747_v22, %v624_v63  ;;  %v6156_v32 = vadd.f32 %v860_v6, %v6086_v53  ;;  %v819_v22 = vadd.f32 %v6074_v36, %v6086_v53 }
 0x1ea   :  { %v817_v6 = vadd.f32 %v6065_v16, %v6080_v27  ;;  %v6167_v27 = vpop.permute.xlu0 %1136 }
 0x1eb   :  { %8133 = vst [vmem:[#allocation62_spill] sm:$0xff] %v6153_v39  ;;  %8134 = vst [vmem:[#allocation63_spill] sm:$0xff] %v6156_v32  ;;  %vm1138_vm5 = vcmp.eq.s32.totalorder %v6167_v27, 1 }
 0x1ec   :  { %v1029_v30 = vpop.f32.mrf.mxu1  ;;  %v1100_v18 = vpop.f32.mrf.mxu0  ;;  %8135 = vst [vmem:[#allocation64_spill] sm:$0xff] %v6167_v27  ;;  %v6451_v27 = vld [vmem:[#allocation7 + $0x30] sm:$0xff] }
 0x1ed   :  { %v1105_v56 = vadd.f32 %v1029_v30, %v704_v33  ;;  %v1107_v32 = vadd.f32 %v1100_v18, %v817_v6 }
 0x1ee   :  { %v1031_v14 = vpop.f32.mrf.mxu1  ;;  %v1102_v46 = vpop.f32.mrf.mxu0 }
 0x1ef   :  { %v4932_v42 = vmul.f32 -1.442695, %v1105_v56  ;;  %v1106_v40 = vadd.f32 %v1031_v14, %v706_v20  ;;  %v1108_v39 = vadd.f32 %v1102_v46, %v819_v22 }
 0x1f1   :  { %5188 = vpow2.f32 %v4932_v42  ;;  %v4933_v35 = vmul.f32 -1.442695, %v1106_v40  ;;  %v4934_v19 = vmul.f32 -1.442695, %v1108_v39 }
 0x1f3   :  { %5190 = vpow2.f32 %v4933_v35 }
 0x1f4   :  { %5192 = vpow2.f32 %v4934_v19 }
 0x1fe   :  { %v5189_v25 = vpop.eup %5188 }
 0x1ff   :  { %v1112_v63 = vadd.f32 1.0, %v5189_v25 }
 0x200   :  { %v5191_v17 = vpop.eup %5190 }
 0x201   :  { %5194 = vrcp.f32 %v1112_v63  ;;  %v1118_v14 = vadd.f32 1.0, %v5191_v17  ;;  %v5193_v42 = vpop.eup %5192 }
 0x202   :  { %5196 = vtanh.f32 %v1107_v32  ;;  %v1125_v20 = vadd.f32 1.0, %v5193_v42 }
 0x203   :  { %5198 = vrcp.f32 %v1118_v14 }
 0x204   :  { %5200 = vrcp.f32 %v1125_v20 }
 0x20e   :  { %v5195_v30 = vpop.eup %5194 }
 0x20f   :  { %v5197_v56 = vpop.eup %5196 }
 0x210   :  { %v5199_v33 = vpop.eup %5198  ;;  %v1129_v36 = vmul.f32 %v5197_v56, %v5195_v30  ;;  %v6257_v56 = vpop.permute.xlu0 %1383 }
 0x211   :  { %v1128_v53 = vmul.f32 0.0, %v5199_v33  ;;  %v5201_v16 = vpop.eup %5200  ;;  %vm1385_vm10 = vcmp.eq.s32.totalorder %v6257_v56, 1 }
 0x213   :  { %v6164_v46 = vadd.f32 %v1129_v36, %v1128_v53 }
 0x215   :  { %5202 = vtanh.f32 %v6164_v46  ;;  %v1140_v14 = vsel %vm1138_vm5, %v6164_v46, 0.0 }
 0x222   :  { %v5203_v39 = vpop.eup %5202 }
 0x223   :  { %v6169_v18 = vmul.f32 %v5203_v39, %v5201_v16 }
 0x225   :  { %8136 = vst [vmem:[#allocation65_spill] sm:$0xff] %v6169_v18  ;;  %4935 = vmatmul.mubr.msk.f32.vlgmr.msra.gmra.mxu1 %vm1138_vm5, %v6169_v18  ;;  %4936 = vmatmul.mubr.msk.f32.vlgmr.msra.gmra.mxu0 %vm1138_vm5, %v6169_v18  ;;  %v1139_v46 = vsel %vm1138_vm5, %v6169_v18, 0.0  ;;  %v6455_v18 = vld [vmem:[#allocation7 + $0x8] sm:$0xff] }
 0x226   :  { %1458 = vmatpush1.msra.mxu1 %v5777_v47  ;;  %1529 = vmatpush1.msra.mxu0 %v5779_v48  ;;  %v8137_v47 = vld [vmem:[#allocation15_spill] sm:$0xff]  ;;  %v8138_v48 = vld [vmem:[#allocation16_spill] sm:$0xff] }
 0x227   :  { %1459 = vmatprep.subr.mxu1 %v5782_v51  ;;  %1530 = vmatprep.subr.mxu0 %v5784_v52  ;;  %v8139_v51 = vld [vmem:[#allocation17_spill] sm:$0xff]  ;;  %v8140_v52 = vld [vmem:[#allocation18_spill] sm:$0xff]  ;;  %8164 = vst [vmem:[#allocation15_spill] sm:$0xff] %v6257_v56  ;;  %v6449_v56 = vld [vmem:[#allocation7 + $0x20] sm:$0xff] }
 0x228   :  { %1460 = vmatpush1.msra.mxu1 %v5788_v54  ;;  %1531 = vmatpush1.msra.mxu0 %v5790_v55  ;;  %v8141_v54 = vld [vmem:[#allocation19_spill] sm:$0xff]  ;;  %v8142_v55 = vld [vmem:[#allocation20_spill] sm:$0xff] }
 0x229   :  { %1461 = vmatprep.subr.mxu1 %v5796_v58  ;;  %1532 = vmatprep.subr.mxu0 %v5798_v59  ;;  %v8143_v58 = vld [vmem:[#allocation21_spill] sm:$0xff]  ;;  %v8144_v59 = vld [vmem:[#allocation22_spill] sm:$0xff] }
 0x22a   :  { %1462 = vmatpush1.msra.mxu1 %v5802_v60  ;;  %1533 = vmatpush1.msra.mxu0 %v5804_v61  ;;  %v8145_v60 = vld [vmem:[#allocation23_spill] sm:$0xff]  ;;  %v8146_v61 = vld [vmem:[#allocation24_spill] sm:$0xff] }
 0x22b   :  { %1463 = vmatprep.subr.mxu1 %v5807_v0  ;;  %1534 = vmatprep.subr.mxu0 %v5809_v1  ;;  %v8147_v0 = vld [vmem:[#allocation25_spill] sm:$0xff]  ;;  %v8148_v1 = vld [vmem:[#allocation26_spill] sm:$0xff] }
 0x22c   :  { %1464 = vmatpush1.msra.mxu1 %v5815_v4  ;;  %1535 = vmatpush1.msra.mxu0 %v5817_v5  ;;  %v8149_v4 = vld [vmem:[#allocation27_spill] sm:$0xff]  ;;  %v8150_v5 = vld [vmem:[#allocation28_spill] sm:$0xff] }
 0x22d   :  { %1465 = vmatprep.subr.mxu1 %v5823_v7  ;;  %1536 = vmatprep.subr.mxu0 %v5825_v8  ;;  %v8151_v7 = vld [vmem:[#allocation29_spill] sm:$0xff]  ;;  %v8152_v8 = vld [vmem:[#allocation30_spill] sm:$0xff] }
 0x22e   :  { %1466 = vmatpush1.msra.mxu1 %v5829_v11  ;;  %1537 = vmatpush1.msra.mxu0 %v5831_v12  ;;  %v8153_v11 = vld [vmem:[#allocation31_spill] sm:$0xff]  ;;  %v8154_v12 = vld [vmem:[#allocation32_spill] sm:$0xff] }
 0x22f   :  { %1467 = vmatprep.subr.mxu1 %v5835_v15  ;;  %1538 = vmatprep.subr.mxu0 %v5837_v21  ;;  %v8155_v15 = vld [vmem:[#allocation33_spill] sm:$0xff]  ;;  %v8156_v21 = vld [vmem:[#allocation34_spill] sm:$0xff]  ;;  %8180 = vst [vmem:[#allocation31_spill] sm:$0xff] %v6449_v56  ;;  %8181 = vst [vmem:[#allocation32_spill] sm:$0xff] %v6451_v27 }
 0x230   :  { %1468 = vmatpush1.msra.mxu1 %v5843_v23  ;;  %1539 = vmatpush1.msra.mxu0 %v5845_v24  ;;  %v8157_v23 = vmov 0.0   ;;  %v8158_v24 = vld [vmem:[#allocation35_spill] sm:$0xff]  ;;  %8182 = vst [vmem:[#allocation33_spill] sm:$0xff] %v6455_v18 }
 0x231   :  { %1469 = vmatprep.subr.mxu1 %v5851_v28  ;;  %1540 = vmatprep.subr.mxu0 %v5853_v29  ;;  %v8159_v28 = vld [vmem:[#allocation14_spill] sm:$0xff]  ;;  %v8160_v29 = vmov 0  }
 0x232   :  { %1470 = vmatpush1.msra.mxu1 %v5857_v31  ;;  %1541 = vmatpush1.msra.mxu0 %v5859_v34  ;;  %vm1627_vm6 = vcmp.gt.s32.totalorder %v8159_v28, 2  ;;  %vm1874_vm7 = vcmp.gt.s32.totalorder %v8159_v28, 3  ;;  %vm2368_vm8 = vcmp.gt.s32.totalorder %v8159_v28, 5  ;;  %vm2862_vm9 = vcmp.gt.s32.totalorder %v8159_v28, 7  ;;  %v6333_v28 = vld [vmem:[#allocation7 + $0x158] sm:$0xff] }
 0x233   :  { %1471 = vmatprep.subr.mxu1 %v5863_v37  ;;  %1542 = vmatprep.subr.mxu0 %v5865_v38  ;;  %v1628_v31 = vsel %vm1627_vm6, 1, %v8160_v29  ;;  %v1875_v34 = vsel %vm1874_vm7, 1, %v8160_v29  ;;  %v2369_v37 = vsel %vm2368_vm8, 1, %v8160_v29  ;;  %v2863_v38 = vsel %vm2862_vm9, 1, %v8160_v29  ;;  %v6337_v29 = vld [vmem:[#allocation7 + $0x140] sm:$0xff] }
 0x234   :  { %1472 = vmatpush1.msra.mxu1 %v5871_v41  ;;  %1543 = vmatpush1.msra.mxu0 %v5873_v26 }
 0x235   :  { %1473 = vmatprep.subr.mxu1 %v5879_v43  ;;  %1544 = vmatprep.subr.mxu0 %v5881_v44 }
 0x236   :  { %1474 = vmatpush1.msra.mxu1 %v5885_v49  ;;  %1545 = vmatpush1.msra.mxu0 %v5887_v50  ;;  %v8161_v49 = vld [vmem:[#allocation38_spill] sm:$0xff] }
 0x237   :  { %1475 = vmatprep.subr.mxu1 %v5891_v57  ;;  %1546 = vmatprep.subr.mxu0 %v5893_v62 }
 0x238   :  { %1476 = vmatpush1.msra.mxu1 %v5899_v2  ;;  %1547 = vmatpush1.msra.mxu0 %v5901_v3  ;;  %v8162_v3 = vld [vmem:[#allocation39_spill] sm:$0xff] }
 0x239   :  { %1477 = vmatprep.subr.mxu1 %v5907_v9  ;;  %1548 = vmatprep.subr.mxu0 %v5909_v10  ;;  %v8163_v10 = vld [vmem:[#allocation37_spill] sm:$0xff] }
 0x23a   :  { %1478 = vmatpush1.msra.mxu1 %v5913_v13  ;;  %1549 = vmatpush1.msra.mxu0 %v8137_v47  ;;  %v6275_v47 = vld [vmem:[#allocation7 + $0x1e8] sm:$0xff] }
 0x23b   :  { %1479 = vmatprep.subr.mxu1 %v8138_v48  ;;  %1550 = vmatprep.subr.mxu0 %v8139_v51  ;;  %8166 = vst [vmem:[#allocation17_spill] sm:$0xff] %v6275_v47  ;;  %v6277_v48 = vld [vmem:[#allocation7 + $0x1f8] sm:$0xff]  ;;  %v6279_v51 = vld [vmem:[#allocation7 + $0x1e0] sm:$0xff] }
 0x23c   :  { %1480 = vmatpush1.msra.mxu1 %v8140_v52  ;;  %1551 = vmatpush1.msra.mxu0 %v8141_v54  ;;  %8167 = vst [vmem:[#allocation18_spill] sm:$0xff] %v6277_v48  ;;  %v6283_v52 = vld [vmem:[#allocation7 + $0x1f0] sm:$0xff]  ;;  %v6285_v54 = vld [vmem:[#allocation7 + $0x1c8] sm:$0xff] }
 0x23d   :  { %1481 = vmatprep.subr.mxu1 %v8142_v55  ;;  %1552 = vmatprep.subr.mxu0 %v8143_v58  ;;  %v6287_v55 = vld [vmem:[#allocation7 + $0x1d8] sm:$0xff]  ;;  %v6291_v58 = vld [vmem:[#allocation7 + $0x1c0] sm:$0xff] }
 0x23e   :  { %1482 = vmatpush1.msra.mxu1 %v8144_v59  ;;  %1553 = vmatpush1.msra.mxu0 %v8145_v60  ;;  %v6293_v59 = vld [vmem:[#allocation7 + $0x1d0] sm:$0xff]  ;;  %v6295_v60 = vld [vmem:[#allocation7 + $0x1a8] sm:$0xff] }
 0x23f   :  { %1483 = vmatprep.subr.mxu1 %v8146_v61  ;;  %1554 = vmatprep.subr.mxu0 %v8147_v0  ;;  %v6299_v61 = vld [vmem:[#allocation7 + $0x1b8] sm:$0xff]  ;;  %v6301_v0 = vld [vmem:[#allocation7 + $0x1a0] sm:$0xff] }
 0x240   :  { %1484 = vmatpush1.msra.mxu1 %v8148_v1  ;;  %1555 = vmatpush1.msra.mxu0 %v8149_v4  ;;  %v6303_v1 = vld [vmem:[#allocation7 + $0x1b0] sm:$0xff]  ;;  %v6307_v4 = vld [vmem:[#allocation7 + $0x188] sm:$0xff] }
 0x241   :  { %1485 = vmatprep.subr.mxu1 %v8150_v5  ;;  %1556 = vmatprep.subr.mxu0 %v8151_v7  ;;  %v6309_v5 = vld [vmem:[#allocation7 + $0x198] sm:$0xff]  ;;  %v6313_v7 = vld [vmem:[#allocation7 + $0x180] sm:$0xff] }
 0x242   :  { %1486 = vmatpush1.msra.mxu1 %v8152_v8  ;;  %1557 = vmatpush1.msra.mxu0 %v8153_v11  ;;  %v6315_v8 = vld [vmem:[#allocation7 + $0x190] sm:$0xff]  ;;  %v6319_v11 = vld [vmem:[#allocation7 + $0x168] sm:$0xff] }
 0x243   :  { %1487 = vmatprep.subr.mxu1 %v8154_v12  ;;  %1558 = vmatprep.subr.mxu0 %v8155_v15  ;;  %v6321_v12 = vld [vmem:[#allocation7 + $0x178] sm:$0xff]  ;;  %v6325_v15 = vld [vmem:[#allocation7 + $0x160] sm:$0xff] }
 0x244   :  { %1488 = vmatpush1.msra.mxu1 %v8156_v21  ;;  %1521 = vmatprep.mubr.f32.mxu1 %v8157_v23  ;;  %v6327_v21 = vld [vmem:[#allocation7 + $0x170] sm:$0xff] }
 0x245   :  { %1559 = vmatpush1.msra.mxu0 %v8158_v24  ;;  %1592 = vmatprep.mubr.f32.mxu0 %v8157_v23  ;;  %v6331_v24 = vld [vmem:[#allocation7 + $0x148] sm:$0xff] }
 0x246   :  { %1630 = vperm.xlu1 %5187, %v1628_v31   ;;  %1704 = vmatprep.subr.mxu1 %v6275_v47  ;;  %v6339_v31 = vld [vmem:[#allocation7 + $0x150] sm:$0xff] }
 0x247   :  { %1775 = vmatprep.subr.mxu0 %v6277_v48 }
 0x24a   :  { %1877 = vperm.xlu1 %5187, %v1875_v34   ;;  %v6343_v34 = vld [vmem:[#allocation7 + $0x128] sm:$0xff] }
 0x24e   :  { %2371 = vperm.xlu1 %5187, %v2369_v37   ;;  %v6345_v37 = vld [vmem:[#allocation7 + $0x138] sm:$0xff] }
 0x252   :  { %2865 = vperm.xlu1 %5187, %v2863_v38   ;;  %v6353_v38 = vld [vmem:[#allocation7 + $0x120] sm:$0xff] }
 0x2e5   :  { %v1276_v41 = vpop.f32.mrf.mxu1  ;;  %v1347_v57 = vpop.f32.mrf.mxu0 }
 0x2e6   :  { %v1352_v26 = vadd.f32 %v1276_v41, %v6088_v45  ;;  %v1354_v13 = vadd.f32 %v1347_v57, %v8163_v10  ;;  %v6355_v41 = vld [vmem:[#allocation7 + $0x130] sm:$0xff]  ;;  %v6373_v57 = vld [vmem:[#allocation7 + $0xf8] sm:$0xff]  ;;  %v6389_v10 = vld [vmem:[#allocation7 + $0xc0] sm:$0xff] }
 0x2e7   :  { %v1278_v43 = vpop.f32.mrf.mxu1  ;;  %v1349_v2 = vpop.f32.mrf.mxu0 }
 0x2e8   :  { %v4937_v44 = vmul.f32 -1.442695, %v1352_v26  ;;  %v1353_v50 = vadd.f32 %v1278_v43, %v8161_v49  ;;  %v1355_v9 = vadd.f32 %v1349_v2, %v8162_v3  ;;  %v6359_v26 = vld [vmem:[#allocation7 + $0x108] sm:$0xff]  ;;  %v6361_v43 = vld [vmem:[#allocation7 + $0x118] sm:$0xff]  ;;  %v6367_v49 = vld [vmem:[#allocation7 + $0x110] sm:$0xff] }
 0x2e9   :  { %v6379_v2 = vld [vmem:[#allocation7 + $0xf0] sm:$0xff]  ;;  %v6383_v3 = vld [vmem:[#allocation7 + $0xc8] sm:$0xff] }
 0x2ea   :  { %5204 = vpow2.f32 %v4937_v44  ;;  %v4938_v62 = vmul.f32 -1.442695, %v1353_v50  ;;  %v4939_v32 = vmul.f32 -1.442695, %v1355_v9  ;;  %v6365_v44 = vld [vmem:[#allocation7 + $0x100] sm:$0xff]  ;;  %v6371_v50 = vld [vmem:[#allocation7 + $0xe8] sm:$0xff] }
 0x2eb   :  { %v6385_v9 = vld [vmem:[#allocation7 + $0xd8] sm:$0xff] }
 0x2ec   :  { %5206 = vpow2.f32 %v4938_v62  ;;  %v6377_v62 = vld [vmem:[#allocation7 + $0xe0] sm:$0xff] }
 0x2ed   :  { %5208 = vtanh.f32 %v1354_v13  ;;  %v6391_v13 = vld [vmem:[#allocation7 + $0xd0] sm:$0xff] }
 0x2ee   :  { %5210 = vpow2.f32 %v4939_v32  ;;  %v6395_v32 = vld [vmem:[#allocation7 + $0xa8] sm:$0xff] }
 0x2f7   :  { %v5205_v40 = vpop.eup %5204 }
 0x2f8   :  { %v1359_v35 = vadd.f32 1.0, %v5205_v40  ;;  %v6397_v40 = vld [vmem:[#allocation7 + $0xb8] sm:$0xff] }
 0x2f9   :  { %v5207_v22 = vpop.eup %5206 }
 0x2fa   :  { %5212 = vrcp.f32 %v1359_v35  ;;  %v1365_v45 = vadd.f32 1.0, %v5207_v22  ;;  %v5209_v6 = vpop.eup %5208  ;;  %v6401_v35 = vld [vmem:[#allocation7 + $0xa0] sm:$0xff]  ;;  %v6403_v22 = vld [vmem:[#allocation7 + $0xb0] sm:$0xff] }
 0x2fb   :  { %v5211_v19 = vpop.eup %5210 }
 0x2fc   :  { %5214 = vrcp.f32 %v1365_v45  ;;  %v1372_v42 = vadd.f32 1.0, %v5211_v19  ;;  %v6407_v45 = vld [vmem:[#allocation7 + $0x88] sm:$0xff]  ;;  %v6413_v19 = vld [vmem:[#allocation7 + $0x80] sm:$0xff] }
 0x2fd   :  { %8168 = vst [vmem:[#allocation19_spill] sm:$0xff] %v6413_v19 }
 0x2fe   :  { %5216 = vrcp.f32 %v1372_v42  ;;  %v6427_v42 = vld [vmem:[#allocation7 + $0x70] sm:$0xff] }
 0x2ff   :  { %8173 = vst [vmem:[#allocation24_spill] sm:$0xff] %v6427_v42 }
 0x307   :  { %v5213_v25 = vpop.eup %5212 }
 0x308   :  { %v1376_v63 = vmul.f32 %v5213_v25, %v5209_v6  ;;  %v6409_v6 = vld [vmem:[#allocation7 + $0x98] sm:$0xff]  ;;  %v6415_v25 = vld [vmem:[#allocation7 + $0x90] sm:$0xff] }
 0x309   :  { %v5215_v17 = vpop.eup %5214  ;;  %8169 = vst [vmem:[#allocation20_spill] sm:$0xff] %v6415_v25 }
 0x30a   :  { %v1375_v30 = vmul.f32 %v5215_v17, %v1140_v14  ;;  %v6421_v17 = vld [vmem:[#allocation7 + $0x78] sm:$0xff] }
 0x30b   :  { %v5217_v53 = vpop.eup %5216  ;;  %8171 = vst [vmem:[#allocation22_spill] sm:$0xff] %v6421_v17 }
 0x30c   :  { %v1377_v33 = vadd.f32 %v1376_v63, %v1375_v30  ;;  %v6419_v63 = vld [vmem:[#allocation7 + $0x68] sm:$0xff] }
 0x30d   :  { %8170 = vst [vmem:[#allocation21_spill] sm:$0xff] %v6419_v63  ;;  %v6431_v30 = vld [vmem:[#allocation7 + $0x48] sm:$0xff] }
 0x30e   :  { %5218 = vtanh.f32 %v1377_v33  ;;  %v6262_v20 = vsel %vm1385_vm10, %v1377_v33, %v1140_v14  ;;  %v6425_v14 = vld [vmem:[#allocation7 + $0x60] sm:$0xff]  ;;  %8174 = vst [vmem:[#allocation25_spill] sm:$0xff] %v6431_v30  ;;  %v6433_v33 = vld [vmem:[#allocation7 + $0x58] sm:$0xff] }
 0x30f   :  { %8172 = vst [vmem:[#allocation23_spill] sm:$0xff] %v6425_v14  ;;  %8175 = vst [vmem:[#allocation26_spill] sm:$0xff] %v6433_v33 }
 0x31b   :  { %v5219_v36 = vpop.eup %5218 }
 0x31c   :  { %v1379_v16 = vmul.f32 %v5219_v36, %v5217_v53  ;;  %v6437_v53 = vld [vmem:[#allocation7 + $0x40] sm:$0xff]  ;;  %v6439_v36 = vld [vmem:[#allocation7 + $0x50] sm:$0xff] }
 0x31d   :  { %8176 = vst [vmem:[#allocation27_spill] sm:$0xff] %v6437_v53  ;;  %8177 = vst [vmem:[#allocation28_spill] sm:$0xff] %v6439_v36 }
 0x31e   :  { %v6269_v39 = vsel %vm1385_vm10, %v1379_v16, %v1139_v46  ;;  %v6443_v16 = vld [vmem:[#allocation7 + $0x28] sm:$0xff]  ;;  %v6445_v46 = vld [vmem:[#allocation7 + $0x38] sm:$0xff] }
 0x31f   :  { %8165 = vst [vmem:[#allocation16_spill] sm:$0xff] %v6269_v39  ;;  %1522 = vmatmul.mubr.f32.vlgmr.msra.gmra.mxu1 %v6269_v39  ;;  %1593 = vmatmul.mubr.f32.vlgmr.msra.gmra.mxu0 %v6269_v39  ;;  %8178 = vst [vmem:[#allocation29_spill] sm:$0xff] %v6443_v16 }
 0x320   :  { %1768 = vmatprep.mubr.f32.mxu1 %v8157_v23  ;;  %1839 = vmatprep.mubr.f32.mxu0 %v8157_v23  ;;  %8179 = vst [vmem:[#allocation30_spill] sm:$0xff] %v6445_v46  ;;  %v6457_v23 = vld [vmem:[#allocation7 + $0x18] sm:$0xff] }
 0x321   :  { %1705 = vmatpush1.msra.mxu1 %v6279_v51  ;;  %1776 = vmatpush1.msra.mxu0 %v6283_v52  ;;  %8183 = vst [vmem:[#allocation34_spill] sm:$0xff] %v6457_v23 }
 0x322   :  { %1706 = vmatprep.subr.mxu1 %v6285_v54  ;;  %1777 = vmatprep.subr.mxu0 %v6287_v55 }
 0x323   :  { %1707 = vmatpush1.msra.mxu1 %v6291_v58  ;;  %1778 = vmatpush1.msra.mxu0 %v6293_v59 }
 0x324   :  { %1708 = vmatprep.subr.mxu1 %v6295_v60  ;;  %1779 = vmatprep.subr.mxu0 %v6299_v61 }
 0x325   :  { %1709 = vmatpush1.msra.mxu1 %v6301_v0  ;;  %1780 = vmatpush1.msra.mxu0 %v6303_v1 }
 0x326   :  { %1710 = vmatprep.subr.mxu1 %v6307_v4  ;;  %1781 = vmatprep.subr.mxu0 %v6309_v5 }
 0x327   :  { %1711 = vmatpush1.msra.mxu1 %v6313_v7  ;;  %1782 = vmatpush1.msra.mxu0 %v6315_v8 }
 0x328   :  { %1712 = vmatprep.subr.mxu1 %v6319_v11  ;;  %1783 = vmatprep.subr.mxu0 %v6321_v12 }
 0x329   :  { %1713 = vmatpush1.msra.mxu1 %v6325_v15  ;;  %1784 = vmatpush1.msra.mxu0 %v6327_v21 }
 0x32a   :  { %1714 = vmatprep.subr.mxu1 %v6331_v24  ;;  %1785 = vmatprep.subr.mxu0 %v6333_v28 }
 0x32b   :  { %1715 = vmatpush1.msra.mxu1 %v6337_v29  ;;  %1786 = vmatpush1.msra.mxu0 %v6339_v31 }
 0x32c   :  { %1716 = vmatprep.subr.mxu1 %v6343_v34  ;;  %1787 = vmatprep.subr.mxu0 %v6345_v37 }
 0x32d   :  { %1717 = vmatpush1.msra.mxu1 %v6353_v38  ;;  %1788 = vmatpush1.msra.mxu0 %v6355_v41 }
 0x32e   :  { %1718 = vmatprep.subr.mxu1 %v6359_v26  ;;  %1789 = vmatprep.subr.mxu0 %v6361_v43 }
 0x32f   :  { %1719 = vmatpush1.msra.mxu1 %v6365_v44  ;;  %1790 = vmatpush1.msra.mxu0 %v6367_v49 }
 0x330   :  { %1720 = vmatprep.subr.mxu1 %v6371_v50  ;;  %1791 = vmatprep.subr.mxu0 %v6373_v57 }
 0x331   :  { %1721 = vmatpush1.msra.mxu1 %v6377_v62  ;;  %1792 = vmatpush1.msra.mxu0 %v6379_v2 }
 0x332   :  { %1722 = vmatprep.subr.mxu1 %v6383_v3  ;;  %1793 = vmatprep.subr.mxu0 %v6385_v9 }
 0x333   :  { %1723 = vmatpush1.msra.mxu1 %v6389_v10  ;;  %1794 = vmatpush1.msra.mxu0 %v6391_v13 }
 0x334   :  { %1724 = vmatprep.subr.mxu1 %v6395_v32  ;;  %1795 = vmatprep.subr.mxu0 %v6397_v40 }
 0x335   :  { %1725 = vmatpush1.msra.mxu1 %v6401_v35  ;;  %1796 = vmatpush1.msra.mxu0 %v6403_v22 }
 0x336   :  { %1726 = vmatprep.subr.mxu1 %v6407_v45  ;;  %1797 = vmatprep.subr.mxu0 %v6409_v6 }
 0x337   :  { %1727 = vmatpush1.msra.mxu1 %v6413_v19  ;;  %1798 = vmatpush1.msra.mxu0 %v6415_v25 }
 0x338   :  { %1728 = vmatprep.subr.mxu1 %v6419_v63  ;;  %1799 = vmatprep.subr.mxu0 %v6421_v17  ;;  %v8188_v17 = vld [vmem:[#allocation43_spill] sm:$0xff]  ;;  %v8189_v63 = vld [vmem:[#allocation41_spill] sm:$0xff] }
 0x339   :  { %1729 = vmatpush1.msra.mxu1 %v6425_v14  ;;  %1800 = vmatpush1.msra.mxu0 %v6427_v42 }
 0x33a   :  { %1730 = vmatprep.subr.mxu1 %v6431_v30  ;;  %1801 = vmatprep.subr.mxu0 %v6433_v33 }
 0x33b   :  { %1731 = vmatpush1.msra.mxu1 %v6437_v53  ;;  %1802 = vmatpush1.msra.mxu0 %v6439_v36  ;;  %v6461_v36 = vld [vmem:[#allocation7] sm:$0xff] }
 0x33c   :  { %1732 = vmatprep.subr.mxu1 %v6443_v16  ;;  %1803 = vmatprep.subr.mxu0 %v6445_v46  ;;  %8184 = vst [vmem:[#allocation35_spill] sm:$0xff] %v6461_v36  ;;  %v6463_v16 = vld [vmem:[#allocation7 + $0x10] sm:$0xff] }
 0x33d   :  { %1733 = vmatpush1.msra.mxu1 %v6449_v56  ;;  %1804 = vmatpush1.msra.mxu0 %v6451_v27  ;;  %8185 = vst [vmem:[#allocation14_spill] sm:$0xff] %v6463_v16  ;;  %v8186_v56 = vld [vmem:[#allocation40_spill] sm:$0xff] }
 0x33e   :  { %1734 = vmatprep.subr.mxu1 %v6455_v18  ;;  %1805 = vmatprep.subr.mxu0 %v6457_v23  ;;  %v8187_v18 = vld [vmem:[#allocation42_spill] sm:$0xff] }
 0x33f   :  { %1735 = vmatpush1.msra.mxu1 %v6461_v36  ;;  %1806 = vmatpush1.msra.mxu0 %v6463_v16 }
 0x340   :  { %1951 = vmatprep.subr.mxu1 %v6275_v47  ;;  %2022 = vmatprep.subr.mxu0 %v6277_v48 }
 0x3df   :  { %v1523_v27 = vpop.f32.mrf.mxu1  ;;  %v1594_v23 = vpop.f32.mrf.mxu0 }
 0x3e0   :  { %v1599_v46 = vadd.f32 %v1523_v27, %v8186_v56  ;;  %v1601_v16 = vadd.f32 %v1594_v23, %v8189_v63 }
 0x3e1   :  { %v1525_v53 = vpop.f32.mrf.mxu1  ;;  %v1596_v14 = vpop.f32.mrf.mxu0 }
 0x3e2   :  { %v4940_v33 = vmul.f32 -1.442695, %v1599_v46  ;;  %v1600_v30 = vadd.f32 %v1525_v53, %v8187_v18  ;;  %v1602_v36 = vadd.f32 %v1596_v14, %v8188_v17  ;;  %v6473_v53 = vpop.permute.xlu1 %1630  ;;  %v8193_v14 = vld [vmem:[#allocation20_spill] sm:$0xff] }
 0x3e3   :  { %8190 = vst [vmem:[#allocation38_spill] sm:$0xff] %v6473_v53  ;;  %vm1632_vm11 = vcmp.eq.s32.totalorder %v6473_v53, 1  ;;  %v8208_v53 = vld [vmem:[#allocation35_spill] sm:$0xff] }
 0x3e4   :  { %5220 = vpow2.f32 %v4940_v33  ;;  %v4941_v42 = vmul.f32 -1.442695, %v1600_v30  ;;  %v4942_v25 = vmul.f32 -1.442695, %v1602_v36  ;;  %v8194_v36 = vld [vmem:[#allocation21_spill] sm:$0xff] }
 0x3e6   :  { %5222 = vpow2.f32 %v4941_v42 }
 0x3e7   :  { %5224 = vtanh.f32 %v1601_v16  ;;  %v8195_v16 = vld [vmem:[#allocation22_spill] sm:$0xff] }
 0x3e8   :  { %5226 = vpow2.f32 %v4942_v25 }
 0x3f1   :  { %v5221_v47 = vpop.eup %5220 }
 0x3f2   :  { %v1606_v19 = vadd.f32 1.0, %v5221_v47 }
 0x3f3   :  { %v5223_v48 = vpop.eup %5222 }
 0x3f4   :  { %5228 = vrcp.f32 %v1606_v19  ;;  %v1612_v27 = vadd.f32 1.0, %v5223_v48  ;;  %v5225_v56 = vpop.eup %5224 }
 0x3f5   :  { %v5227_v18 = vpop.eup %5226 }
 0x3f6   :  { %5230 = vrcp.f32 %v1612_v27  ;;  %v1619_v46 = vadd.f32 1.0, %v5227_v18  ;;  %v8196_v27 = vld [vmem:[#allocation23_spill] sm:$0xff]  ;;  %v8198_v18 = vld [vmem:[#allocation25_spill] sm:$0xff] }
 0x3f8   :  { %5232 = vrcp.f32 %v1619_v46  ;;  %v8202_v46 = vld [vmem:[#allocation29_spill] sm:$0xff] }
 0x401   :  { %v5229_v33 = vpop.eup %5228 }
 0x402   :  { %v1623_v42 = vmul.f32 %v5229_v33, %v5225_v56  ;;  %v8197_v56 = vld [vmem:[#allocation24_spill] sm:$0xff]  ;;  %v8199_v33 = vld [vmem:[#allocation26_spill] sm:$0xff] }
 0x403   :  { %v5231_v30 = vpop.eup %5230 }
 0x404   :  { %v1622_v17 = vmul.f32 %v5231_v30, %v6262_v20  ;;  %v8201_v30 = vld [vmem:[#allocation28_spill] sm:$0xff] }
 0x405   :  { %v5233_v48 = vpop.eup %5232 }
 0x406   :  { %v1624_v23 = vadd.f32 %v1623_v42, %v1622_v17  ;;  %v8200_v42 = vld [vmem:[#allocation27_spill] sm:$0xff]  ;;  %v8203_v17 = vld [vmem:[#allocation30_spill] sm:$0xff] }
 0x408   :  { %5234 = vtanh.f32 %v1624_v23  ;;  %v6480_v47 = vsel %vm1632_vm11, %v1624_v23, %v6262_v20  ;;  %v8192_v20 = vld [vmem:[#allocation19_spill] sm:$0xff] }
 0x409   :  { %v8204_v23 = vld [vmem:[#allocation31_spill] sm:$0xff] }
 0x415   :  { %v5235_v19 = vpop.eup %5234 }
 0x416   :  { %v1626_v25 = vmul.f32 %v5235_v19, %v5233_v48  ;;  %v8205_v48 = vld [vmem:[#allocation32_spill] sm:$0xff]  ;;  %v8206_v19 = vld [vmem:[#allocation33_spill] sm:$0xff] }
 0x418   :  { %v6485_v63 = vsel %vm1632_vm11, %v1626_v25, %v6269_v39  ;;  %v8207_v25 = vld [vmem:[#allocation34_spill] sm:$0xff]  ;;  %v8209_v39 = vmov 0.0  }
 0x419   :  { %8191 = vst [vmem:[#allocation39_spill] sm:$0xff] %v6485_v63  ;;  %1769 = vmatmul.mubr.f32.vlgmr.msra.gmra.mxu1 %v6485_v63  ;;  %1840 = vmatmul.mubr.f32.vlgmr.msra.gmra.mxu0 %v6485_v63 }
 0x41a   :  { %1952 = vmatpush1.msra.mxu1 %v6279_v51  ;;  %2023 = vmatpush1.msra.mxu0 %v6283_v52 }
 0x41b   :  { %1953 = vmatprep.subr.mxu1 %v6285_v54  ;;  %2024 = vmatprep.subr.mxu0 %v6287_v55 }
 0x41c   :  { %1954 = vmatpush1.msra.mxu1 %v6291_v58  ;;  %2025 = vmatpush1.msra.mxu0 %v6293_v59 }
 0x41d   :  { %1955 = vmatprep.subr.mxu1 %v6295_v60  ;;  %2026 = vmatprep.subr.mxu0 %v6299_v61 }
 0x41e   :  { %1956 = vmatpush1.msra.mxu1 %v6301_v0  ;;  %2027 = vmatpush1.msra.mxu0 %v6303_v1 }
 0x41f   :  { %1957 = vmatprep.subr.mxu1 %v6307_v4  ;;  %2028 = vmatprep.subr.mxu0 %v6309_v5 }
 0x420   :  { %1958 = vmatpush1.msra.mxu1 %v6313_v7  ;;  %2029 = vmatpush1.msra.mxu0 %v6315_v8 }
 0x421   :  { %1959 = vmatprep.subr.mxu1 %v6319_v11  ;;  %2030 = vmatprep.subr.mxu0 %v6321_v12 }
 0x422   :  { %1960 = vmatpush1.msra.mxu1 %v6325_v15  ;;  %2031 = vmatpush1.msra.mxu0 %v6327_v21 }
 0x423   :  { %1961 = vmatprep.subr.mxu1 %v6331_v24  ;;  %2032 = vmatprep.subr.mxu0 %v6333_v28 }
 0x424   :  { %1962 = vmatpush1.msra.mxu1 %v6337_v29  ;;  %2033 = vmatpush1.msra.mxu0 %v6339_v31 }
 0x425   :  { %1963 = vmatprep.subr.mxu1 %v6343_v34  ;;  %2034 = vmatprep.subr.mxu0 %v6345_v37 }
 0x426   :  { %1964 = vmatpush1.msra.mxu1 %v6353_v38  ;;  %2035 = vmatpush1.msra.mxu0 %v6355_v41 }
 0x427   :  { %1965 = vmatprep.subr.mxu1 %v6359_v26  ;;  %2036 = vmatprep.subr.mxu0 %v6361_v43 }
 0x428   :  { %1966 = vmatpush1.msra.mxu1 %v6365_v44  ;;  %2037 = vmatpush1.msra.mxu0 %v6367_v49 }
 0x429   :  { %1967 = vmatprep.subr.mxu1 %v6371_v50  ;;  %2038 = vmatprep.subr.mxu0 %v6373_v57 }
 0x42a   :  { %1968 = vmatpush1.msra.mxu1 %v6377_v62  ;;  %2039 = vmatpush1.msra.mxu0 %v6379_v2 }
 0x42b   :  { %1969 = vmatprep.subr.mxu1 %v6383_v3  ;;  %2040 = vmatprep.subr.mxu0 %v6385_v9 }
 0x42c   :  { %1970 = vmatpush1.msra.mxu1 %v6389_v10  ;;  %2041 = vmatpush1.msra.mxu0 %v6391_v13 }
 0x42d   :  { %1971 = vmatprep.subr.mxu1 %v6395_v32  ;;  %2042 = vmatprep.subr.mxu0 %v6397_v40 }
 0x42e   :  { %1972 = vmatpush1.msra.mxu1 %v6401_v35  ;;  %2043 = vmatpush1.msra.mxu0 %v6403_v22 }
 0x42f   :  { %1973 = vmatprep.subr.mxu1 %v6407_v45  ;;  %2044 = vmatprep.subr.mxu0 %v6409_v6 }
 0x430   :  { %1974 = vmatpush1.msra.mxu1 %v8192_v20  ;;  %2045 = vmatpush1.msra.mxu0 %v8193_v14 }
 0x431   :  { %1975 = vmatprep.subr.mxu1 %v8194_v36  ;;  %2046 = vmatprep.subr.mxu0 %v8195_v16  ;;  %v8215_v16 = vld [vmem:[#allocation47_spill] sm:$0xff]  ;;  %v8216_v36 = vld [vmem:[#allocation45_spill] sm:$0xff] }
 0x432   :  { %1976 = vmatpush1.msra.mxu1 %v8196_v27  ;;  %2047 = vmatpush1.msra.mxu0 %v8197_v56 }
 0x433   :  { %1977 = vmatprep.subr.mxu1 %v8198_v18  ;;  %2048 = vmatprep.subr.mxu0 %v8199_v33  ;;  %v8210_v33 = vld [vmem:[#allocation14_spill] sm:$0xff] }
 0x434   :  { %1978 = vmatpush1.msra.mxu1 %v8200_v42  ;;  %2049 = vmatpush1.msra.mxu0 %v8201_v30  ;;  %v8211_v30 = vld [vmem:[#allocation17_spill] sm:$0xff] }
 0x435   :  { %1979 = vmatprep.subr.mxu1 %v8202_v46  ;;  %2050 = vmatprep.subr.mxu0 %v8203_v17  ;;  %v8212_v46 = vld [vmem:[#allocation18_spill] sm:$0xff] }
 0x436   :  { %1980 = vmatpush1.msra.mxu1 %v8204_v23  ;;  %2051 = vmatpush1.msra.mxu0 %v8205_v48  ;;  %v8213_v23 = vld [vmem:[#allocation44_spill] sm:$0xff] }
 0x437   :  { %1981 = vmatprep.subr.mxu1 %v8206_v19  ;;  %2052 = vmatprep.subr.mxu0 %v8207_v25  ;;  %v8214_v19 = vld [vmem:[#allocation46_spill] sm:$0xff] }
 0x438   :  { %1982 = vmatpush1.msra.mxu1 %v8208_v53  ;;  %2015 = vmatprep.mubr.f32.mxu1 %v8209_v39 }
 0x439   :  { %2053 = vmatpush1.msra.mxu0 %v8210_v33  ;;  %2086 = vmatprep.mubr.f32.mxu0 %v8209_v39 }
 0x43a   :  { %2198 = vmatprep.subr.mxu1 %v8211_v30  ;;  %2269 = vmatprep.subr.mxu0 %v8212_v46 }
 0x4d9   :  { %v1770_v17 = vpop.f32.mrf.mxu1  ;;  %v1841_v25 = vpop.f32.mrf.mxu0 }
 0x4da   :  { %v1846_v42 = vadd.f32 %v1770_v17, %v8213_v23  ;;  %v1848_v39 = vadd.f32 %v1841_v25, %v8216_v36  ;;  %v8221_v25 = vld [vmem:[#allocation22_spill] sm:$0xff] }
 0x4db   :  { %v1772_v48 = vpop.f32.mrf.mxu1  ;;  %v1843_v27 = vpop.f32.mrf.mxu0 }
 0x4dc   :  { %v4943_v18 = vmul.f32 -1.442695, %v1846_v42  ;;  %v1847_v56 = vadd.f32 %v1772_v48, %v8214_v19  ;;  %v1849_v33 = vadd.f32 %v1843_v27, %v8215_v16  ;;  %v6560_v16 = vpop.permute.xlu1 %1877 }
 0x4dd   :  { %8217 = vst [vmem:[#allocation37_spill] sm:$0xff] %v6560_v16  ;;  %vm1879_vm12 = vcmp.eq.s32.totalorder %v6560_v16, 1  ;;  %v8234_v16 = vld [vmem:[#allocation35_spill] sm:$0xff] }
 0x4de   :  { %5236 = vpow2.f32 %v4943_v18  ;;  %v4944_v53 = vmul.f32 -1.442695, %v1847_v56  ;;  %v4945_v14 = vmul.f32 -1.442695, %v1849_v33 }
 0x4e0   :  { %5238 = vpow2.f32 %v4944_v53 }
 0x4e1   :  { %5240 = vtanh.f32 %v1848_v39 }
 0x4e2   :  { %5242 = vpow2.f32 %v4945_v14 }
 0x4eb   :  { %v5237_v30 = vpop.eup %5236 }
 0x4ec   :  { %v1853_v20 = vadd.f32 1.0, %v5237_v30  ;;  %v8219_v30 = vld [vmem:[#allocation20_spill] sm:$0xff] }
 0x4ed   :  { %v5239_v46 = vpop.eup %5238 }
 0x4ee   :  { %5244 = vrcp.f32 %v1853_v20  ;;  %v1859_v17 = vadd.f32 1.0, %v5239_v46  ;;  %v5241_v42 = vpop.eup %5240  ;;  %v8220_v46 = vld [vmem:[#allocation21_spill] sm:$0xff] }
 0x4ef   :  { %v5243_v23 = vpop.eup %5242 }
 0x4f0   :  { %5246 = vrcp.f32 %v1859_v17  ;;  %v1866_v53 = vadd.f32 1.0, %v5243_v23  ;;  %v8222_v17 = vld [vmem:[#allocation23_spill] sm:$0xff]  ;;  %v8224_v23 = vld [vmem:[#allocation25_spill] sm:$0xff] }
 0x4f2   :  { %5248 = vrcp.f32 %v1866_v53  ;;  %v8228_v53 = vld [vmem:[#allocation29_spill] sm:$0xff] }
 0x4fb   :  { %v5245_v18 = vpop.eup %5244 }
 0x4fc   :  { %v1870_v48 = vmul.f32 %v5245_v18, %v5241_v42  ;;  %v8223_v42 = vld [vmem:[#allocation24_spill] sm:$0xff]  ;;  %v8225_v18 = vld [vmem:[#allocation26_spill] sm:$0xff] }
 0x4fd   :  { %v5247_v56 = vpop.eup %5246 }
 0x4fe   :  { %v1869_v19 = vmul.f32 %v5247_v56, %v6480_v47  ;;  %v8227_v56 = vld [vmem:[#allocation28_spill] sm:$0xff] }
 0x4ff   :  { %v5249_v20 = vpop.eup %5248 }
 0x500   :  { %v1871_v36 = vadd.f32 %v1870_v48, %v1869_v19  ;;  %v8226_v48 = vld [vmem:[#allocation27_spill] sm:$0xff]  ;;  %v8229_v19 = vld [vmem:[#allocation30_spill] sm:$0xff] }
 0x502   :  { %5250 = vtanh.f32 %v1871_v36  ;;  %v6566_v39 = vsel %vm1879_vm12, %v1871_v36, %v6480_v47  ;;  %v8218_v47 = vld [vmem:[#allocation19_spill] sm:$0xff] }
 0x503   :  { %v8230_v36 = vld [vmem:[#allocation31_spill] sm:$0xff] }
 0x50f   :  { %v5251_v14 = vpop.eup %5250 }
 0x510   :  { %v1873_v27 = vmul.f32 %v5251_v14, %v5249_v20  ;;  %v8231_v20 = vld [vmem:[#allocation32_spill] sm:$0xff]  ;;  %v8232_v14 = vld [vmem:[#allocation33_spill] sm:$0xff] }
 0x512   :  { %v6571_v33 = vsel %vm1879_vm12, %v1873_v27, %v6485_v63  ;;  %v8233_v27 = vld [vmem:[#allocation34_spill] sm:$0xff]  ;;  %v8235_v63 = vmov 0.0  }
 0x513   :  { %2016 = vmatmul.mubr.f32.vlgmr.msra.gmra.mxu1 %v6571_v33  ;;  %2087 = vmatmul.mubr.f32.vlgmr.msra.gmra.mxu0 %v6571_v33 }
 0x514   :  { %2199 = vmatpush1.msra.mxu1 %v6279_v51  ;;  %2270 = vmatpush1.msra.mxu0 %v6283_v52 }
 0x515   :  { %2200 = vmatprep.subr.mxu1 %v6285_v54  ;;  %2271 = vmatprep.subr.mxu0 %v6287_v55 }
 0x516   :  { %2201 = vmatpush1.msra.mxu1 %v6291_v58  ;;  %2272 = vmatpush1.msra.mxu0 %v6293_v59 }
 0x517   :  { %2202 = vmatprep.subr.mxu1 %v6295_v60  ;;  %2273 = vmatprep.subr.mxu0 %v6299_v61 }
 0x518   :  { %2203 = vmatpush1.msra.mxu1 %v6301_v0  ;;  %2274 = vmatpush1.msra.mxu0 %v6303_v1 }
 0x519   :  { %2204 = vmatprep.subr.mxu1 %v6307_v4  ;;  %2275 = vmatprep.subr.mxu0 %v6309_v5 }
 0x51a   :  { %2205 = vmatpush1.msra.mxu1 %v6313_v7  ;;  %2276 = vmatpush1.msra.mxu0 %v6315_v8 }
 0x51b   :  { %2206 = vmatprep.subr.mxu1 %v6319_v11  ;;  %2277 = vmatprep.subr.mxu0 %v6321_v12 }
 0x51c   :  { %2207 = vmatpush1.msra.mxu1 %v6325_v15  ;;  %2278 = vmatpush1.msra.mxu0 %v6327_v21 }
 0x51d   :  { %2208 = vmatprep.subr.mxu1 %v6331_v24  ;;  %2279 = vmatprep.subr.mxu0 %v6333_v28 }
 0x51e   :  { %2209 = vmatpush1.msra.mxu1 %v6337_v29  ;;  %2280 = vmatpush1.msra.mxu0 %v6339_v31 }
 0x51f   :  { %2210 = vmatprep.subr.mxu1 %v6343_v34  ;;  %2281 = vmatprep.subr.mxu0 %v6345_v37 }
 0x520   :  { %2211 = vmatpush1.msra.mxu1 %v6353_v38  ;;  %2282 = vmatpush1.msra.mxu0 %v6355_v41 }
 0x521   :  { %2212 = vmatprep.subr.mxu1 %v6359_v26  ;;  %2283 = vmatprep.subr.mxu0 %v6361_v43 }
 0x522   :  { %2213 = vmatpush1.msra.mxu1 %v6365_v44  ;;  %2284 = vmatpush1.msra.mxu0 %v6367_v49 }
 0x523   :  { %2214 = vmatprep.subr.mxu1 %v6371_v50  ;;  %2285 = vmatprep.subr.mxu0 %v6373_v57 }
 0x524   :  { %2215 = vmatpush1.msra.mxu1 %v6377_v62  ;;  %2286 = vmatpush1.msra.mxu0 %v6379_v2 }
 0x525   :  { %2216 = vmatprep.subr.mxu1 %v6383_v3  ;;  %2287 = vmatprep.subr.mxu0 %v6385_v9 }
 0x526   :  { %2217 = vmatpush1.msra.mxu1 %v6389_v10  ;;  %2288 = vmatpush1.msra.mxu0 %v6391_v13 }
 0x527   :  { %2218 = vmatprep.subr.mxu1 %v6395_v32  ;;  %2289 = vmatprep.subr.mxu0 %v6397_v40 }
 0x528   :  { %2219 = vmatpush1.msra.mxu1 %v6401_v35  ;;  %2290 = vmatpush1.msra.mxu0 %v6403_v22 }
 0x529   :  { %2220 = vmatprep.subr.mxu1 %v6407_v45  ;;  %2291 = vmatprep.subr.mxu0 %v6409_v6 }
 0x52a   :  { %2221 = vmatpush1.msra.mxu1 %v8218_v47  ;;  %2292 = vmatpush1.msra.mxu0 %v8219_v30 }
 0x52b   :  { %2222 = vmatprep.subr.mxu1 %v8220_v46  ;;  %2293 = vmatprep.subr.mxu0 %v8221_v25  ;;  %v8241_v25 = vld [vmem:[#allocation51_spill] sm:$0xff]  ;;  %v8242_v46 = vld [vmem:[#allocation49_spill] sm:$0xff] }
 0x52c   :  { %2223 = vmatpush1.msra.mxu1 %v8222_v17  ;;  %2294 = vmatpush1.msra.mxu0 %v8223_v42 }
 0x52d   :  { %2224 = vmatprep.subr.mxu1 %v8224_v23  ;;  %2295 = vmatprep.subr.mxu0 %v8225_v18  ;;  %v8236_v18 = vld [vmem:[#allocation14_spill] sm:$0xff] }
 0x52e   :  { %2225 = vmatpush1.msra.mxu1 %v8226_v48  ;;  %2296 = vmatpush1.msra.mxu0 %v8227_v56  ;;  %v8237_v56 = vld [vmem:[#allocation17_spill] sm:$0xff] }
 0x52f   :  { %2226 = vmatprep.subr.mxu1 %v8228_v53  ;;  %2297 = vmatprep.subr.mxu0 %v8229_v19  ;;  %v8238_v53 = vld [vmem:[#allocation18_spill] sm:$0xff] }
 0x530   :  { %2227 = vmatpush1.msra.mxu1 %v8230_v36  ;;  %2298 = vmatpush1.msra.mxu0 %v8231_v20  ;;  %v8239_v36 = vld [vmem:[#allocation48_spill] sm:$0xff] }
 0x531   :  { %2228 = vmatprep.subr.mxu1 %v8232_v14  ;;  %2299 = vmatprep.subr.mxu0 %v8233_v27  ;;  %v8240_v14 = vld [vmem:[#allocation50_spill] sm:$0xff] }
 0x532   :  { %2229 = vmatpush1.msra.mxu1 %v8234_v16  ;;  %2262 = vmatprep.mubr.f32.mxu1 %v8235_v63 }
 0x533   :  { %2300 = vmatpush1.msra.mxu0 %v8236_v18  ;;  %2333 = vmatprep.mubr.f32.mxu0 %v8235_v63 }
 0x534   :  { %2445 = vmatprep.subr.mxu1 %v8237_v56  ;;  %2516 = vmatprep.subr.mxu0 %v8238_v53 }
 0x5d3   :  { %v2017_v19 = vpop.f32.mrf.mxu1  ;;  %v2088_v27 = vpop.f32.mrf.mxu0 }
 0x5d4   :  { %v2093_v48 = vadd.f32 %v2017_v19, %v8239_v36  ;;  %v2095_v63 = vadd.f32 %v2088_v27, %v8242_v46  ;;  %v6730_v27 = vpop.permute.xlu1 %2371 }
 0x5d5   :  { %v2019_v20 = vpop.f32.mrf.mxu1  ;;  %v2090_v17 = vpop.f32.mrf.mxu0  ;;  %8267 = vst [vmem:[#allocation42_spill] sm:$0xff] %v6730_v27  ;;  %vm2373_vm14 = vcmp.eq.s32.totalorder %v6730_v27, 1  ;;  %v7040_v27 = vld [vmem:[#allocation7 + $0x258] sm:$0xff] }
 0x5d6   :  { %v4946_v23 = vmul.f32 -1.442695, %v2093_v48  ;;  %v2094_v42 = vadd.f32 %v2019_v20, %v8240_v14  ;;  %v2096_v18 = vadd.f32 %v2090_v17, %v8241_v25  ;;  %v6646_v25 = vpop.permute.xlu0 %2124 }
 0x5d7   :  { %8243 = vst [vmem:[#allocation40_spill] sm:$0xff] %v6646_v25  ;;  %vm2126_vm13 = vcmp.eq.s32.totalorder %v6646_v25, 1  ;;  %v7048_v25 = vld [vmem:[#allocation7 + $0x238] sm:$0xff] }
 0x5d8   :  { %5252 = vpow2.f32 %v4946_v23  ;;  %v4947_v16 = vmul.f32 -1.442695, %v2094_v42  ;;  %v4948_v30 = vmul.f32 -1.442695, %v2096_v18 }
 0x5da   :  { %5254 = vpow2.f32 %v4947_v16 }
 0x5db   :  { %5256 = vtanh.f32 %v2095_v63 }
 0x5dc   :  { %5258 = vpow2.f32 %v4948_v30 }
 0x5e5   :  { %v5253_v56 = vpop.eup %5252 }
 0x5e6   :  { %v2100_v47 = vadd.f32 1.0, %v5253_v56 }
 0x5e7   :  { %v5255_v53 = vpop.eup %5254 }
 0x5e8   :  { %5260 = vrcp.f32 %v2100_v47  ;;  %v2106_v19 = vadd.f32 1.0, %v5255_v53  ;;  %v5257_v48 = vpop.eup %5256 }
 0x5e9   :  { %v5259_v36 = vpop.eup %5258 }
 0x5ea   :  { %5262 = vrcp.f32 %v2106_v19  ;;  %v2113_v16 = vadd.f32 1.0, %v5259_v36 }
 0x5ec   :  { %5264 = vrcp.f32 %v2113_v16  ;;  %v2690_v16 = vld [vmem:[#allocation7 + $0x1f0] sm:$0xff] }
 0x5f5   :  { %v5261_v23 = vpop.eup %5260 }
 0x5f6   :  { %v2117_v20 = vmul.f32 %v5261_v23, %v5257_v48 }
 0x5f7   :  { %v5263_v42 = vpop.eup %5262 }
 0x5f8   :  { %v2116_v14 = vmul.f32 %v5263_v42, %v6566_v39  ;;  %v2689_v42 = vld [vmem:[#allocation7 + $0x1e8] sm:$0xff] }
 0x5f9   :  { %v5265_v47 = vpop.eup %5264 }
 0x5fa   :  { %v2118_v46 = vadd.f32 %v2117_v20, %v2116_v14  ;;  %v2691_v20 = vld [vmem:[#allocation7 + $0x1f8] sm:$0xff]  ;;  %v2688_v14 = vld [vmem:[#allocation7 + $0x1e0] sm:$0xff] }
 0x5fc   :  { %5266 = vtanh.f32 %v2118_v46  ;;  %v6652_v63 = vsel %vm2126_vm13, %v2118_v46, %v6566_v39  ;;  %v2687_v46 = vld [vmem:[#allocation7 + $0x1d8] sm:$0xff] }
 0x609   :  { %v5267_v30 = vpop.eup %5266 }
 0x60a   :  { %v2120_v17 = vmul.f32 %v5267_v30, %v5265_v47  ;;  %v2686_v47 = vld [vmem:[#allocation7 + $0x1d0] sm:$0xff]  ;;  %v2684_v30 = vld [vmem:[#allocation7 + $0x1c0] sm:$0xff] }
 0x60c   :  { %v6657_v18 = vsel %vm2126_vm13, %v2120_v17, %v6571_v33  ;;  %v2683_v17 = vld [vmem:[#allocation7 + $0x1b8] sm:$0xff] }
 0x60d   :  { %2263 = vmatmul.mubr.f32.vlgmr.msra.gmra.mxu1 %v6657_v18  ;;  %2334 = vmatmul.mubr.f32.vlgmr.msra.gmra.mxu0 %v6657_v18 }
 0x60e   :  { %2446 = vmatpush1.msra.mxu1 %v6279_v51  ;;  %2517 = vmatpush1.msra.mxu0 %v6283_v52  ;;  %v8244_v51 = vld [vmem:[#allocation19_spill] sm:$0xff]  ;;  %v8245_v52 = vld [vmem:[#allocation20_spill] sm:$0xff] }
 0x60f   :  { %2447 = vmatprep.subr.mxu1 %v6285_v54  ;;  %2518 = vmatprep.subr.mxu0 %v6287_v55  ;;  %v8246_v54 = vld [vmem:[#allocation21_spill] sm:$0xff]  ;;  %v8247_v55 = vld [vmem:[#allocation22_spill] sm:$0xff] }
 0x610   :  { %2448 = vmatpush1.msra.mxu1 %v6291_v58  ;;  %2519 = vmatpush1.msra.mxu0 %v6293_v59  ;;  %v8248_v58 = vld [vmem:[#allocation23_spill] sm:$0xff]  ;;  %v8249_v59 = vld [vmem:[#allocation24_spill] sm:$0xff] }
 0x611   :  { %2449 = vmatprep.subr.mxu1 %v6295_v60  ;;  %2520 = vmatprep.subr.mxu0 %v6299_v61  ;;  %v8250_v60 = vld [vmem:[#allocation25_spill] sm:$0xff]  ;;  %v8251_v61 = vld [vmem:[#allocation26_spill] sm:$0xff] }
 0x612   :  { %2450 = vmatpush1.msra.mxu1 %v6301_v0  ;;  %2521 = vmatpush1.msra.mxu0 %v6303_v1  ;;  %v8252_v0 = vld [vmem:[#allocation27_spill] sm:$0xff]  ;;  %v8253_v1 = vld [vmem:[#allocation28_spill] sm:$0xff] }
 0x613   :  { %2451 = vmatprep.subr.mxu1 %v6307_v4  ;;  %2522 = vmatprep.subr.mxu0 %v6309_v5  ;;  %v8254_v4 = vld [vmem:[#allocation29_spill] sm:$0xff]  ;;  %v8255_v5 = vld [vmem:[#allocation30_spill] sm:$0xff]  ;;  %8301 = vst [vmem:[#allocation28_spill] sm:$0xff] %v7040_v27 }
 0x614   :  { %2452 = vmatpush1.msra.mxu1 %v6313_v7  ;;  %2523 = vmatpush1.msra.mxu0 %v6315_v8  ;;  %v8256_v7 = vld [vmem:[#allocation31_spill] sm:$0xff]  ;;  %v8257_v8 = vld [vmem:[#allocation32_spill] sm:$0xff]  ;;  %8303 = vst [vmem:[#allocation30_spill] sm:$0xff] %v7048_v25 }
 0x615   :  { %2453 = vmatprep.subr.mxu1 %v6319_v11  ;;  %2524 = vmatprep.subr.mxu0 %v6321_v12  ;;  %v8258_v11 = vld [vmem:[#allocation33_spill] sm:$0xff]  ;;  %v8259_v12 = vld [vmem:[#allocation34_spill] sm:$0xff] }
 0x616   :  { %2454 = vmatpush1.msra.mxu1 %v6325_v15  ;;  %2525 = vmatpush1.msra.mxu0 %v6327_v21  ;;  %v8260_v15 = vld [vmem:[#allocation35_spill] sm:$0xff]  ;;  %v8261_v21 = vmov 0.0  }
 0x617   :  { %2455 = vmatprep.subr.mxu1 %v6331_v24  ;;  %2526 = vmatprep.subr.mxu0 %v6333_v28  ;;  %v8262_v24 = vld [vmem:[#allocation14_spill] sm:$0xff] }
 0x618   :  { %2456 = vmatpush1.msra.mxu1 %v6337_v29  ;;  %2527 = vmatpush1.msra.mxu0 %v6339_v31  ;;  %v8263_v29 = vld [vmem:[#allocation52_spill] sm:$0xff] }
 0x619   :  { %2457 = vmatprep.subr.mxu1 %v6343_v34  ;;  %2528 = vmatprep.subr.mxu0 %v6345_v37 }
 0x61a   :  { %2458 = vmatpush1.msra.mxu1 %v6353_v38  ;;  %2529 = vmatpush1.msra.mxu0 %v6355_v41  ;;  %v8264_v38 = vld [vmem:[#allocation54_spill] sm:$0xff] }
 0x61b   :  { %2459 = vmatprep.subr.mxu1 %v6359_v26  ;;  %2530 = vmatprep.subr.mxu0 %v6361_v43 }
 0x61c   :  { %2460 = vmatpush1.msra.mxu1 %v6365_v44  ;;  %2531 = vmatpush1.msra.mxu0 %v6367_v49  ;;  %v8265_v49 = vld [vmem:[#allocation55_spill] sm:$0xff] }
 0x61d   :  { %2461 = vmatprep.subr.mxu1 %v6371_v50  ;;  %2532 = vmatprep.subr.mxu0 %v6373_v57  ;;  %v8266_v57 = vld [vmem:[#allocation53_spill] sm:$0xff] }
 0x61e   :  { %2462 = vmatpush1.msra.mxu1 %v6377_v62  ;;  %2533 = vmatpush1.msra.mxu0 %v6379_v2 }
 0x61f   :  { %2463 = vmatprep.subr.mxu1 %v6383_v3  ;;  %2534 = vmatprep.subr.mxu0 %v6385_v9 }
 0x620   :  { %2464 = vmatpush1.msra.mxu1 %v6389_v10  ;;  %2535 = vmatpush1.msra.mxu0 %v6391_v13 }
 0x621   :  { %2465 = vmatprep.subr.mxu1 %v6395_v32  ;;  %2536 = vmatprep.subr.mxu0 %v6397_v40 }
 0x622   :  { %2466 = vmatpush1.msra.mxu1 %v6401_v35  ;;  %2537 = vmatpush1.msra.mxu0 %v6403_v22 }
 0x623   :  { %2467 = vmatprep.subr.mxu1 %v6407_v45  ;;  %2538 = vmatprep.subr.mxu0 %v6409_v6 }
 0x624   :  { %2468 = vmatpush1.msra.mxu1 %v8244_v51  ;;  %2539 = vmatpush1.msra.mxu0 %v8245_v52  ;;  %v2681_v51 = vld [vmem:[#allocation7 + $0x1a8] sm:$0xff]  ;;  %v2682_v52 = vld [vmem:[#allocation7 + $0x1b0] sm:$0xff] }
 0x625   :  { %2469 = vmatprep.subr.mxu1 %v8246_v54  ;;  %2540 = vmatprep.subr.mxu0 %v8247_v55  ;;  %v2680_v54 = vld [vmem:[#allocation7 + $0x1a0] sm:$0xff]  ;;  %v2679_v55 = vld [vmem:[#allocation7 + $0x198] sm:$0xff] }
 0x626   :  { %2470 = vmatpush1.msra.mxu1 %v8248_v58  ;;  %2541 = vmatpush1.msra.mxu0 %v8249_v59  ;;  %v2677_v58 = vld [vmem:[#allocation7 + $0x188] sm:$0xff]  ;;  %v2678_v59 = vld [vmem:[#allocation7 + $0x190] sm:$0xff] }
 0x627   :  { %2471 = vmatprep.subr.mxu1 %v8250_v60  ;;  %2542 = vmatprep.subr.mxu0 %v8251_v61  ;;  %v2676_v60 = vld [vmem:[#allocation7 + $0x180] sm:$0xff]  ;;  %v2675_v61 = vld [vmem:[#allocation7 + $0x178] sm:$0xff] }
 0x628   :  { %2472 = vmatpush1.msra.mxu1 %v8252_v0  ;;  %2543 = vmatpush1.msra.mxu0 %v8253_v1  ;;  %v2673_v0 = vld [vmem:[#allocation7 + $0x168] sm:$0xff]  ;;  %v2674_v1 = vld [vmem:[#allocation7 + $0x170] sm:$0xff] }
 0x629   :  { %2473 = vmatprep.subr.mxu1 %v8254_v4  ;;  %2544 = vmatprep.subr.mxu0 %v8255_v5  ;;  %v2672_v4 = vld [vmem:[#allocation7 + $0x160] sm:$0xff]  ;;  %v2671_v5 = vld [vmem:[#allocation7 + $0x158] sm:$0xff] }
 0x62a   :  { %2474 = vmatpush1.msra.mxu1 %v8256_v7  ;;  %2545 = vmatpush1.msra.mxu0 %v8257_v8  ;;  %v2669_v7 = vld [vmem:[#allocation7 + $0x148] sm:$0xff]  ;;  %v2670_v8 = vld [vmem:[#allocation7 + $0x150] sm:$0xff] }
 0x62b   :  { %2475 = vmatprep.subr.mxu1 %v8258_v11  ;;  %2546 = vmatprep.subr.mxu0 %v8259_v12  ;;  %v2668_v11 = vld [vmem:[#allocation7 + $0x140] sm:$0xff]  ;;  %v2667_v12 = vld [vmem:[#allocation7 + $0x138] sm:$0xff] }
 0x62c   :  { %2476 = vmatpush1.msra.mxu1 %v8260_v15  ;;  %2509 = vmatprep.mubr.f32.mxu1 %v8261_v21  ;;  %v2665_v15 = vld [vmem:[#allocation7 + $0x128] sm:$0xff] }
 0x62d   :  { %2547 = vmatpush1.msra.mxu0 %v8262_v24  ;;  %2580 = vmatprep.mubr.f32.mxu0 %v8261_v21  ;;  %v2666_v24 = vld [vmem:[#allocation7 + $0x130] sm:$0xff] }
 0x62e   :  { %2763 = vmatprep.subr.mxu0 %v2691_v20  ;;  %2692 = vmatprep.subr.mxu1 %v2689_v42  ;;  %v2633_v20 = vld [vmem:[#allocation7 + $0x28] sm:$0xff]  ;;  %v2634_v42 = vld [vmem:[#allocation7 + $0x30] sm:$0xff] }
 0x6cd   :  { %v2264_v28 = vpop.f32.mrf.mxu1  ;;  %v2335_v26 = vpop.f32.mrf.mxu0 }
 0x6ce   :  { %v2340_v31 = vadd.f32 %v2264_v28, %v8263_v29  ;;  %v2342_v62 = vadd.f32 %v2335_v26, %v8266_v57  ;;  %v2664_v28 = vld [vmem:[#allocation7 + $0x120] sm:$0xff]  ;;  %v2663_v29 = vld [vmem:[#allocation7 + $0x118] sm:$0xff]  ;;  %v2658_v26 = vld [vmem:[#allocation7 + $0xf0] sm:$0xff] }
 0x6cf   :  { %v2266_v34 = vpop.f32.mrf.mxu1  ;;  %v2337_v44 = vpop.f32.mrf.mxu0  ;;  %v2652_v57 = vld [vmem:[#allocation7 + $0xc0] sm:$0xff] }
 0x6d0   :  { %v4949_v37 = vmul.f32 -1.442695, %v2340_v31  ;;  %v2341_v41 = vadd.f32 %v2266_v34, %v8264_v38  ;;  %v2343_v50 = vadd.f32 %v2337_v44, %v8265_v49  ;;  %v2661_v31 = vld [vmem:[#allocation7 + $0x108] sm:$0xff]  ;;  %v2662_v34 = vld [vmem:[#allocation7 + $0x110] sm:$0xff]  ;;  %v2659_v38 = vld [vmem:[#allocation7 + $0xf8] sm:$0xff] }
 0x6d1   :  { %v2655_v44 = vld [vmem:[#allocation7 + $0xd8] sm:$0xff]  ;;  %v2653_v49 = vld [vmem:[#allocation7 + $0xc8] sm:$0xff] }
 0x6d2   :  { %5268 = vpow2.f32 %v4949_v37  ;;  %v4950_v43 = vmul.f32 -1.442695, %v2341_v41  ;;  %v4951_v2 = vmul.f32 -1.442695, %v2343_v50  ;;  %v2660_v37 = vld [vmem:[#allocation7 + $0x100] sm:$0xff]  ;;  %v2657_v41 = vld [vmem:[#allocation7 + $0xe8] sm:$0xff] }
 0x6d3   :  { %v2654_v50 = vld [vmem:[#allocation7 + $0xd0] sm:$0xff] }
 0x6d4   :  { %5270 = vpow2.f32 %v4950_v43  ;;  %v2656_v43 = vld [vmem:[#allocation7 + $0xe0] sm:$0xff] }
 0x6d5   :  { %5272 = vtanh.f32 %v2342_v62  ;;  %v2651_v62 = vld [vmem:[#allocation7 + $0xb8] sm:$0xff] }
 0x6d6   :  { %5274 = vpow2.f32 %v4951_v2  ;;  %v2649_v2 = vld [vmem:[#allocation7 + $0xa8] sm:$0xff] }
 0x6df   :  { %v5269_v3 = vpop.eup %5268 }
 0x6e0   :  { %v2347_v9 = vadd.f32 1.0, %v5269_v3  ;;  %v2650_v3 = vld [vmem:[#allocation7 + $0xb0] sm:$0xff] }
 0x6e1   :  { %v5271_v10 = vpop.eup %5270 }
 0x6e2   :  { %5276 = vrcp.f32 %v2347_v9  ;;  %v2353_v13 = vadd.f32 1.0, %v5271_v10  ;;  %v5273_v32 = vpop.eup %5272  ;;  %v2648_v9 = vld [vmem:[#allocation7 + $0xa0] sm:$0xff]  ;;  %v2647_v10 = vld [vmem:[#allocation7 + $0x98] sm:$0xff] }
 0x6e3   :  { %v5275_v40 = vpop.eup %5274 }
 0x6e4   :  { %5278 = vrcp.f32 %v2353_v13  ;;  %v2360_v6 = vadd.f32 1.0, %v5275_v40  ;;  %v2645_v13 = vld [vmem:[#allocation7 + $0x88] sm:$0xff]  ;;  %v2644_v40 = vld [vmem:[#allocation7 + $0x80] sm:$0xff] }
 0x6e6   :  { %5280 = vrcp.f32 %v2360_v6  ;;  %v2640_v6 = vld [vmem:[#allocation7 + $0x60] sm:$0xff] }
 0x6ef   :  { %v5277_v35 = vpop.eup %5276 }
 0x6f0   :  { %v2364_v22 = vmul.f32 %v5277_v35, %v5273_v32  ;;  %v2646_v32 = vld [vmem:[#allocation7 + $0x90] sm:$0xff]  ;;  %v2643_v35 = vld [vmem:[#allocation7 + $0x78] sm:$0xff] }
 0x6f1   :  { %v5279_v45 = vpop.eup %5278 }
 0x6f2   :  { %v2363_v39 = vmul.f32 %v5279_v45, %v6652_v63  ;;  %v2642_v45 = vld [vmem:[#allocation7 + $0x70] sm:$0xff] }
 0x6f3   :  { %v5281_v19 = vpop.eup %5280 }
 0x6f4   :  { %v2365_v56 = vadd.f32 %v2364_v22, %v2363_v39  ;;  %v2641_v22 = vld [vmem:[#allocation7 + $0x68] sm:$0xff]  ;;  %v2639_v39 = vld [vmem:[#allocation7 + $0x58] sm:$0xff] }
 0x6f6   :  { %5282 = vtanh.f32 %v2365_v56  ;;  %v6736_v53 = vsel %vm2373_vm14, %v2365_v56, %v6652_v63  ;;  %v2685_v63 = vld [vmem:[#allocation7 + $0x1c8] sm:$0xff] }
 0x6f7   :  { %v2637_v56 = vld [vmem:[#allocation7 + $0x48] sm:$0xff] }
 0x703   :  { %v5283_v48 = vpop.eup %5282 }
 0x704   :  { %v2367_v36 = vmul.f32 %v5283_v48, %v5281_v19  ;;  %v2638_v19 = vld [vmem:[#allocation7 + $0x50] sm:$0xff]  ;;  %v2636_v48 = vld [vmem:[#allocation7 + $0x40] sm:$0xff] }
 0x706   :  { %v6741_v23 = vsel %vm2373_vm14, %v2367_v36, %v6657_v18  ;;  %v2635_v36 = vld [vmem:[#allocation7 + $0x38] sm:$0xff] }
 0x707   :  { %2510 = vmatmul.mubr.f32.vlgmr.msra.gmra.mxu1 %v6741_v23  ;;  %2581 = vmatmul.mubr.f32.vlgmr.msra.gmra.mxu0 %v6741_v23 }
 0x708   :  { %2756 = vmatprep.mubr.f32.mxu1 %v8261_v21  ;;  %2827 = vmatprep.mubr.f32.mxu0 %v8261_v21 }
 0x709   :  { %2764 = vmatpush1.msra.mxu0 %v2690_v16  ;;  %2693 = vmatpush1.msra.mxu1 %v2688_v14  ;;  %v2632_v16 = vld [vmem:[#allocation7 + $0x20] sm:$0xff]  ;;  %v2631_v14 = vld [vmem:[#allocation7 + $0x18] sm:$0xff] }
 0x70a   :  { %2765 = vmatprep.subr.mxu0 %v2687_v46  ;;  %2694 = vmatprep.subr.mxu1 %v2685_v63  ;;  %v2629_v46 = vld [vmem:[#allocation7 + $0x8] sm:$0xff]  ;;  %v2630_v63 = vld [vmem:[#allocation7 + $0x10] sm:$0xff] }
 0x70b   :  { %2766 = vmatpush1.msra.mxu0 %v2686_v47  ;;  %2695 = vmatpush1.msra.mxu1 %v2684_v30  ;;  %v2628_v47 = vld [vmem:[#allocation7] sm:$0xff]  ;;  %v3034_v30 = vld [vmem:[#allocation4 + $0x3e8] sm:$0xff] }
 0x70c   :  { %2767 = vmatprep.subr.mxu0 %v2683_v17  ;;  %2696 = vmatprep.subr.mxu1 %v2681_v51  ;;  %v8268_v51 = vld [vmem:[#allocation56_spill] sm:$0xff] }
 0x70d   :  { %2768 = vmatpush1.msra.mxu0 %v2682_v52  ;;  %2697 = vmatpush1.msra.mxu1 %v2680_v54 }
 0x70e   :  { %2769 = vmatprep.subr.mxu0 %v2679_v55  ;;  %2698 = vmatprep.subr.mxu1 %v2677_v58  ;;  %v8269_v58 = vld [vmem:[#allocation58_spill] sm:$0xff] }
 0x70f   :  { %2770 = vmatpush1.msra.mxu0 %v2678_v59  ;;  %2699 = vmatpush1.msra.mxu1 %v2676_v60 }
 0x710   :  { %2771 = vmatprep.subr.mxu0 %v2675_v61  ;;  %2700 = vmatprep.subr.mxu1 %v2673_v0 }
 0x711   :  { %2772 = vmatpush1.msra.mxu0 %v2674_v1  ;;  %2701 = vmatpush1.msra.mxu1 %v2672_v4  ;;  %v8270_v1 = vld [vmem:[#allocation59_spill] sm:$0xff] }
 0x712   :  { %2773 = vmatprep.subr.mxu0 %v2671_v5  ;;  %2702 = vmatprep.subr.mxu1 %v2669_v7  ;;  %v8271_v5 = vld [vmem:[#allocation57_spill] sm:$0xff] }
 0x713   :  { %2774 = vmatpush1.msra.mxu0 %v2670_v8  ;;  %2703 = vmatpush1.msra.mxu1 %v2668_v11 }
 0x714   :  { %2775 = vmatprep.subr.mxu0 %v2667_v12  ;;  %2704 = vmatprep.subr.mxu1 %v2665_v15 }
 0x715   :  { %2776 = vmatpush1.msra.mxu0 %v2666_v24  ;;  %2705 = vmatpush1.msra.mxu1 %v2664_v28 }
 0x716   :  { %2777 = vmatprep.subr.mxu0 %v2663_v29  ;;  %2706 = vmatprep.subr.mxu1 %v2661_v31 }
 0x717   :  { %2778 = vmatpush1.msra.mxu0 %v2662_v34  ;;  %2707 = vmatpush1.msra.mxu1 %v2660_v37 }
 0x718   :  { %2779 = vmatprep.subr.mxu0 %v2659_v38  ;;  %2708 = vmatprep.subr.mxu1 %v2657_v41  ;;  %v6752_v41 = vpop.permute.xlu0 %2618 }
 0x719   :  { %2780 = vmatpush1.msra.mxu0 %v2658_v26  ;;  %2709 = vmatpush1.msra.mxu1 %v2656_v43  ;;  %8272 = vst [vmem:[#allocation43_spill] sm:$0xff] %v6752_v41  ;;  %vm2620_vm15 = vcmp.eq.s32.totalorder %v6752_v41, 1  ;;  %v7037_v41 = vld [vmem:[#allocation7 + $0x270] sm:$0xff] }
 0x71a   :  { %2781 = vmatprep.subr.mxu0 %v2655_v44  ;;  %2710 = vmatprep.subr.mxu1 %v2653_v49  ;;  %8300 = vst [vmem:[#allocation27_spill] sm:$0xff] %v7037_v41 }
 0x71b   :  { %2782 = vmatpush1.msra.mxu0 %v2654_v50  ;;  %2711 = vmatpush1.msra.mxu1 %v2652_v57 }
 0x71c   :  { %2783 = vmatprep.subr.mxu0 %v2651_v62  ;;  %2712 = vmatprep.subr.mxu1 %v2649_v2  ;;  %v3033_v62 = vld [vmem:[#allocation4 + $0x3e0] sm:$0xff] }
 0x71d   :  { %2784 = vmatpush1.msra.mxu0 %v2650_v3  ;;  %2713 = vmatpush1.msra.mxu1 %v2648_v9  ;;  %v3030_v3 = vld [vmem:[#allocation4 + $0x3c8] sm:$0xff]  ;;  %v3029_v9 = vld [vmem:[#allocation4 + $0x3c0] sm:$0xff] }
 0x71e   :  { %2785 = vmatprep.subr.mxu0 %v2647_v10  ;;  %2714 = vmatprep.subr.mxu1 %v2645_v13  ;;  %v3026_v10 = vld [vmem:[#allocation4 + $0x3a8] sm:$0xff] }
 0x71f   :  { %2786 = vmatpush1.msra.mxu0 %v2646_v32  ;;  %2715 = vmatpush1.msra.mxu1 %v2644_v40  ;;  %v3022_v13 = vld [vmem:[#allocation4 + $0x388] sm:$0xff]  ;;  %v3021_v32 = vld [vmem:[#allocation4 + $0x380] sm:$0xff] }
 0x720   :  { %2787 = vmatprep.subr.mxu0 %v2643_v35  ;;  %2716 = vmatprep.subr.mxu1 %v2641_v22  ;;  %v3018_v40 = vld [vmem:[#allocation4 + $0x368] sm:$0xff]  ;;  %v3017_v35 = vld [vmem:[#allocation4 + $0x360] sm:$0xff] }
 0x721   :  { %2788 = vmatpush1.msra.mxu0 %v2642_v45  ;;  %2717 = vmatpush1.msra.mxu1 %v2640_v6  ;;  %v3014_v22 = vld [vmem:[#allocation4 + $0x348] sm:$0xff]  ;;  %v3013_v45 = vld [vmem:[#allocation4 + $0x340] sm:$0xff] }
 0x722   :  { %2789 = vmatprep.subr.mxu0 %v2639_v39  ;;  %2718 = vmatprep.subr.mxu1 %v2637_v56  ;;  %v3010_v6 = vld [vmem:[#allocation4 + $0x328] sm:$0xff]  ;;  %v3009_v39 = vld [vmem:[#allocation4 + $0x320] sm:$0xff] }
 0x723   :  { %2790 = vmatpush1.msra.mxu0 %v2638_v19  ;;  %2719 = vmatpush1.msra.mxu1 %v2636_v48  ;;  %v3006_v56 = vld [vmem:[#allocation4 + $0x308] sm:$0xff]  ;;  %v3005_v19 = vld [vmem:[#allocation4 + $0x300] sm:$0xff] }
 0x724   :  { %2791 = vmatprep.subr.mxu0 %v2635_v36  ;;  %2720 = vmatprep.subr.mxu1 %v2633_v20  ;;  %v3002_v48 = vld [vmem:[#allocation4 + $0x2e8] sm:$0xff]  ;;  %v3001_v36 = vld [vmem:[#allocation4 + $0x2e0] sm:$0xff] }
 0x725   :  { %2792 = vmatpush1.msra.mxu0 %v2634_v42  ;;  %2721 = vmatpush1.msra.mxu1 %v2632_v16  ;;  %v2998_v20 = vld [vmem:[#allocation4 + $0x2c8] sm:$0xff]  ;;  %v2997_v42 = vld [vmem:[#allocation4 + $0x2c0] sm:$0xff] }
 0x726   :  { %2793 = vmatprep.subr.mxu0 %v2631_v14  ;;  %2722 = vmatprep.subr.mxu1 %v2629_v46  ;;  %v2994_v16 = vld [vmem:[#allocation4 + $0x2a8] sm:$0xff]  ;;  %v2993_v14 = vld [vmem:[#allocation4 + $0x2a0] sm:$0xff] }
 0x727   :  { %2794 = vmatpush1.msra.mxu0 %v2630_v63  ;;  %2723 = vmatpush1.msra.mxu1 %v2628_v47  ;;  %v2990_v46 = vld [vmem:[#allocation4 + $0x288] sm:$0xff]  ;;  %v2989_v63 = vld [vmem:[#allocation4 + $0x280] sm:$0xff] }
 0x728   :  { %3060 = vmatprep.subr.mxu0 %v3034_v30  ;;  %5101 = vmatprep.subr.mxu1 %v8261_v21  ;;  %v2986_v47 = vld [vmem:[#allocation4 + $0x268] sm:$0xff]  ;;  %v2985_v30 = vld [vmem:[#allocation4 + $0x260] sm:$0xff] }
 0x7c7   :  { %v2511_v17 = vpop.f32.mrf.mxu1  ;;  %v2582_v60 = vpop.f32.mrf.mxu0 }
 0x7c8   :  { %v2587_v52 = vadd.f32 %v2511_v17, %v8268_v51  ;;  %v2589_v7 = vadd.f32 %v2582_v60, %v8271_v5  ;;  %v2982_v17 = vld [vmem:[#allocation4 + $0x248] sm:$0xff]  ;;  %v2981_v51 = vld [vmem:[#allocation4 + $0x240] sm:$0xff] }
 0x7c9   :  { %v2513_v54 = vpop.f32.mrf.mxu1  ;;  %v2584_v0 = vpop.f32.mrf.mxu0  ;;  %v2883_v5 = vld [vmem:[#allocation9 + $0x68] sm:$0xff]  ;;  %v7284_v60 = vld [vmem:[#allocation7 + $0x3c0] sm:$0xff] }
 0x7ca   :  { %v4952_v55 = vmul.f32 -1.442695, %v2587_v52  ;;  %v2588_v59 = vadd.f32 %v2513_v54, %v8269_v58  ;;  %v2590_v4 = vadd.f32 %v2584_v0, %v8270_v1  ;;  %v2978_v52 = vld [vmem:[#allocation4 + $0x228] sm:$0xff]  ;;  %v2977_v54 = vld [vmem:[#allocation4 + $0x220] sm:$0xff]  ;;  %v8276_v0 = vld [vmem:[#allocation39_spill] sm:$0xff] }
 0x7cb   :  { %v2973_v58 = vld [vmem:[#allocation4 + $0x200] sm:$0xff]  ;;  %v2885_v1 = vld [vmem:[#allocation9 + $0x78] sm:$0xff] }
 0x7cc   :  { %5284 = vpow2.f32 %v4952_v55  ;;  %v4953_v61 = vmul.f32 -1.442695, %v2588_v59  ;;  %v4954_v8 = vmul.f32 -1.442695, %v2590_v4  ;;  %v2974_v55 = vld [vmem:[#allocation4 + $0x208] sm:$0xff]  ;;  %v2884_v4 = vld [vmem:[#allocation9 + $0x70] sm:$0xff] }
 0x7cd   :  { %v8273_v59 = vld [vmem:[#allocation65_spill] sm:$0xff] }
 0x7ce   :  { %5286 = vpow2.f32 %v4953_v61  ;;  %v8275_v61 = vld [vmem:[#allocation16_spill] sm:$0xff] }
 0x7cf   :  { %5288 = vtanh.f32 %v2589_v7  ;;  %v6787_v7 = vld [vmem:[#allocation7 + $0x3e8] sm:$0xff] }
 0x7d0   :  { %5290 = vpow2.f32 %v4954_v8  ;;  %v6790_v8 = vld [vmem:[#allocation7 + $0x3e0] sm:$0xff] }
 0x7d9   :  { %v5285_v11 = vpop.eup %5284 }
 0x7da   :  { %v2594_v12 = vadd.f32 1.0, %v5285_v11  ;;  %v2882_v11 = vld [vmem:[#allocation9 + $0x60] sm:$0xff] }
 0x7db   :  { %v5287_v15 = vpop.eup %5286 }
 0x7dc   :  { %5292 = vrcp.f32 %v2594_v12  ;;  %v2600_v24 = vadd.f32 1.0, %v5287_v15  ;;  %v5289_v28 = vpop.eup %5288  ;;  %v6794_v12 = vld [vmem:[#allocation7 + $0x3c8] sm:$0xff]  ;;  %v6797_v15 = vld [vmem:[#allocation7 + $0x3c0] sm:$0xff] }
 0x7dd   :  { %v5291_v29 = vpop.eup %5290 }
 0x7de   :  { %5294 = vrcp.f32 %v2600_v24  ;;  %v2607_v38 = vadd.f32 1.0, %v5291_v29  ;;  %v2881_v24 = vld [vmem:[#allocation9 + $0x58] sm:$0xff]  ;;  %v6804_v29 = vld [vmem:[#allocation7 + $0x3a0] sm:$0xff] }
 0x7e0   :  { %5296 = vrcp.f32 %v2607_v38  ;;  %v2879_v38 = vld [vmem:[#allocation9 + $0x48] sm:$0xff] }
 0x7e9   :  { %v5293_v31 = vpop.eup %5292 }
 0x7ea   :  { %v2611_v34 = vmul.f32 %v5293_v31, %v5289_v28  ;;  %v6801_v28 = vld [vmem:[#allocation7 + $0x3a8] sm:$0xff]  ;;  %v2880_v31 = vld [vmem:[#allocation9 + $0x50] sm:$0xff] }
 0x7eb   :  { %v5295_v37 = vpop.eup %5294 }
 0x7ec   :  { %v2610_v26 = vmul.f32 %v5295_v37, %v6736_v53  ;;  %v6811_v37 = vld [vmem:[#allocation7 + $0x380] sm:$0xff] }
 0x7ed   :  { %v5297_v49 = vpop.eup %5296 }
 0x7ee   :  { %v2612_v43 = vadd.f32 %v2611_v34, %v2610_v26  ;;  %v6808_v34 = vld [vmem:[#allocation7 + $0x388] sm:$0xff] }
 0x7ef   :  { %v6815_v26 = vld [vmem:[#allocation7 + $0x368] sm:$0xff] }
 0x7f0   :  { %5298 = vtanh.f32 %v2612_v43  ;;  %v6759_v44 = vsel %vm2620_vm15, %v2612_v43, %v6736_v53  ;;  %v3025_v53 = vld [vmem:[#allocation4 + $0x3a0] sm:$0xff] }
 0x7f1   :  { %v6818_v43 = vld [vmem:[#allocation7 + $0x360] sm:$0xff] }
 0x7fd   :  { %v5299_v50 = vpop.eup %5298 }
 0x7fe   :  { %v2614_v57 = vmul.f32 %v5299_v50, %v5297_v49  ;;  %v2878_v49 = vld [vmem:[#allocation9 + $0x40] sm:$0xff]  ;;  %v6822_v50 = vld [vmem:[#allocation7 + $0x348] sm:$0xff] }
 0x800   :  { %v6764_v2 = vsel %vm2620_vm15, %v2614_v57, %v6741_v23  ;;  %v6825_v57 = vld [vmem:[#allocation7 + $0x340] sm:$0xff] }
 0x801   :  { %2757 = vmatmul.mubr.f32.vlgmr.msra.gmra.mxu1 %v6764_v2  ;;  %2828 = vmatmul.mubr.f32.vlgmr.msra.gmra.mxu0 %v6764_v2 }
 0x802   :  { %3061 = vmatpush1.msra.mxu0 %v3033_v62  ;;  %3124 = vmatprep.mubr.f32.mxu0 %v8261_v21  ;;  %v2877_v62 = vld [vmem:[#allocation9 + $0x38] sm:$0xff] }
 0x803   :  { %3062 = vmatprep.subr.mxu0 %v3030_v3  ;;  %5102 = vmatpush3.msra.mxu1 %v2885_v1  ;;  %v6829_v3 = vld [vmem:[#allocation7 + $0x328] sm:$0xff] }
 0x804   :  { %3063 = vmatpush1.msra.mxu0 %v3029_v9  ;;  %5103 = vmatprep.subr.mxu1 %v8261_v21  ;;  %v6832_v9 = vld [vmem:[#allocation7 + $0x320] sm:$0xff] }
 0x805   :  { %3064 = vmatprep.subr.mxu0 %v3026_v10  ;;  %5104 = vmatpush3.msra.mxu1 %v2884_v4  ;;  %v2876_v10 = vld [vmem:[#allocation9 + $0x30] sm:$0xff] }
 0x806   :  { %3065 = vmatpush1.msra.mxu0 %v3025_v53  ;;  %5105 = vmatprep.subr.mxu1 %v8261_v21  ;;  %v6836_v53 = vld [vmem:[#allocation7 + $0x308] sm:$0xff] }
 0x807   :  { %3066 = vmatprep.subr.mxu0 %v3022_v13  ;;  %5106 = vmatpush3.msra.mxu1 %v2883_v5  ;;  %v6839_v13 = vld [vmem:[#allocation7 + $0x300] sm:$0xff] }
 0x808   :  { %3067 = vmatpush1.msra.mxu0 %v3021_v32  ;;  %5107 = vmatprep.subr.mxu1 %v8261_v21  ;;  %v2875_v32 = vld [vmem:[#allocation9 + $0x28] sm:$0xff] }
 0x809   :  { %3068 = vmatprep.subr.mxu0 %v3018_v40  ;;  %5108 = vmatpush3.msra.mxu1 %v2882_v11  ;;  %v6843_v40 = vld [vmem:[#allocation7 + $0x2e8] sm:$0xff]  ;;  %v8290_v11 = vld [vmem:[#allocation62_spill] sm:$0xff] }
 0x80a   :  { %3069 = vmatpush1.msra.mxu0 %v3017_v35  ;;  %5109 = vmatprep.subr.mxu1 %v8261_v21  ;;  %v6846_v35 = vld [vmem:[#allocation7 + $0x2e0] sm:$0xff] }
 0x80b   :  { %3070 = vmatprep.subr.mxu0 %v3014_v22  ;;  %5110 = vmatpush3.msra.mxu1 %v2881_v24  ;;  %v2874_v22 = vld [vmem:[#allocation9 + $0x20] sm:$0xff] }
 0x80c   :  { %3071 = vmatpush1.msra.mxu0 %v3013_v45  ;;  %5111 = vmatprep.subr.mxu1 %v8261_v21  ;;  %v6850_v45 = vld [vmem:[#allocation7 + $0x2c8] sm:$0xff] }
 0x80d   :  { %3072 = vmatprep.subr.mxu0 %v3010_v6  ;;  %5112 = vmatpush3.msra.mxu1 %v2880_v31  ;;  %v6853_v6 = vld [vmem:[#allocation7 + $0x2c0] sm:$0xff] }
 0x80e   :  { %3073 = vmatpush1.msra.mxu0 %v3009_v39  ;;  %5113 = vmatprep.subr.mxu1 %v8261_v21  ;;  %v2873_v39 = vld [vmem:[#allocation9 + $0x18] sm:$0xff] }
 0x80f   :  { %3074 = vmatprep.subr.mxu0 %v3006_v56  ;;  %5114 = vmatpush3.msra.mxu1 %v2879_v38  ;;  %v6857_v56 = vld [vmem:[#allocation7 + $0x2a8] sm:$0xff] }
 0x810   :  { %3075 = vmatpush1.msra.mxu0 %v3005_v19  ;;  %5115 = vmatprep.subr.mxu1 %v8261_v21  ;;  %8277 = vst [vmem:[#allocation41_spill] sm:$0xff] %v6857_v56  ;;  %v6860_v19 = vld [vmem:[#allocation7 + $0x2a0] sm:$0xff] }
 0x811   :  { %3076 = vmatprep.subr.mxu0 %v3002_v48  ;;  %5116 = vmatpush3.msra.mxu1 %v2878_v49  ;;  %8278 = vst [vmem:[#allocation44_spill] sm:$0xff] %v6860_v19  ;;  %v2872_v48 = vld [vmem:[#allocation9 + $0x10] sm:$0xff] }
 0x812   :  { %3077 = vmatpush1.msra.mxu0 %v3001_v36  ;;  %5117 = vmatprep.subr.mxu1 %v8261_v21  ;;  %v6864_v36 = vld [vmem:[#allocation7 + $0x288] sm:$0xff] }
 0x813   :  { %3078 = vmatprep.subr.mxu0 %v2998_v20  ;;  %5118 = vmatpush3.msra.mxu1 %v2877_v62  ;;  %8279 = vst [vmem:[#allocation46_spill] sm:$0xff] %v6864_v36  ;;  %v6867_v20 = vld [vmem:[#allocation7 + $0x280] sm:$0xff]  ;;  %v8291_v62 = vld [vmem:[#allocation63_spill] sm:$0xff] }
 0x814   :  { %3079 = vmatpush1.msra.mxu0 %v2997_v42  ;;  %5119 = vmatprep.subr.mxu1 %v8261_v21  ;;  %8280 = vst [vmem:[#allocation47_spill] sm:$0xff] %v6867_v20  ;;  %v2871_v42 = vld [vmem:[#allocation9 + $0x8] sm:$0xff] }
 0x815   :  { %3080 = vmatprep.subr.mxu0 %v2994_v16  ;;  %5120 = vmatpush3.msra.mxu1 %v2876_v10  ;;  %v6871_v16 = vld [vmem:[#allocation7 + $0x268] sm:$0xff] }
 0x816   :  { %3081 = vmatpush1.msra.mxu0 %v2993_v14  ;;  %5121 = vmatprep.subr.mxu1 %v8261_v21  ;;  %8281 = vst [vmem:[#allocation45_spill] sm:$0xff] %v6871_v16  ;;  %v6874_v14 = vld [vmem:[#allocation7 + $0x260] sm:$0xff] }
 0x817   :  { %3082 = vmatprep.subr.mxu0 %v2990_v46  ;;  %5122 = vmatpush3.msra.mxu1 %v2875_v32  ;;  %8282 = vst [vmem:[#allocation17_spill] sm:$0xff] %v6874_v14  ;;  %v2870_v46 = vld [vmem:[#allocation9] sm:$0xff]  ;;  %v8292_v32 = vld [vmem:[#allocation61_spill] sm:$0xff] }
 0x818   :  { %3083 = vmatpush1.msra.mxu0 %v2989_v63  ;;  %5123 = vmatprep.subr.mxu1 %v8261_v21  ;;  %v6878_v63 = vld [vmem:[#allocation7 + $0x248] sm:$0xff] }
 0x819   :  { %3084 = vmatprep.subr.mxu0 %v2986_v47  ;;  %5124 = vmatpush3.msra.mxu1 %v2874_v22  ;;  %8283 = vst [vmem:[#allocation18_spill] sm:$0xff] %v6878_v63  ;;  %v3036_v47 = vld [vmem:[#allocation4 + $0x3f8] sm:$0xff] }
 0x81a   :  { %3085 = vmatpush1.msra.mxu0 %v2985_v30  ;;  %5125 = vmatprep.subr.mxu1 %v8261_v21  ;;  %v6881_v30 = vld [vmem:[#allocation7 + $0x240] sm:$0xff] }
 0x81b   :  { %3086 = vmatprep.subr.mxu0 %v2982_v17  ;;  %5126 = vmatpush3.msra.mxu1 %v2873_v39  ;;  %8284 = vst [vmem:[#allocation48_spill] sm:$0xff] %v6881_v30  ;;  %v6885_v17 = vld [vmem:[#allocation7 + $0x228] sm:$0xff] }
 0x81c   :  { %3087 = vmatpush1.msra.mxu0 %v2981_v51  ;;  %5127 = vmatprep.subr.mxu1 %v8261_v21  ;;  %8285 = vst [vmem:[#allocation50_spill] sm:$0xff] %v6885_v17  ;;  %v6888_v51 = vld [vmem:[#allocation7 + $0x220] sm:$0xff] }
 0x81d   :  { %3088 = vmatprep.subr.mxu0 %v2978_v52  ;;  %5128 = vmatpush3.msra.mxu1 %v2872_v48  ;;  %8286 = vst [vmem:[#allocation51_spill] sm:$0xff] %v6888_v51  ;;  %v6891_v52 = vld [vmem:[#allocation7 + $0x208] sm:$0xff] }
 0x81e   :  { %3089 = vmatpush1.msra.mxu0 %v2977_v54  ;;  %5129 = vmatprep.subr.mxu1 %v8261_v21  ;;  %8287 = vst [vmem:[#allocation49_spill] sm:$0xff] %v6891_v52  ;;  %v6894_v54 = vld [vmem:[#allocation7 + $0x200] sm:$0xff] }
 0x81f   :  { %3090 = vmatprep.subr.mxu0 %v2974_v55  ;;  %5130 = vmatpush3.msra.mxu1 %v2871_v42  ;;  %8288 = vst [vmem:[#allocation19_spill] sm:$0xff] %v6894_v54 }
 0x820   :  { %3091 = vmatpush1.msra.mxu0 %v2973_v58  ;;  %5131 = vmatprep.subr.mxu1 %v8261_v21  ;;  %v8289_v58 = vld [vmem:[#allocation60_spill] sm:$0xff] }
 0x821   :  { %4987 = vmatmul.mubr.msk.f32.vlgmr.msra.gmra.mxu0 %vm1138_vm5, %v8273_v59  ;;  %3387 = vmatprep.subr.mxu0 %v6787_v7 }
 0x822   :  { %3130 = vmatprep.mubr.f32.mxu0 %v8261_v21  ;;  %3388 = vmatpush1.msra.mxu0 %v6790_v8 }
 0x823   :  { %3389 = vmatprep.subr.mxu0 %v6794_v12  ;;  %5132 = vmatpush3.msra.mxu1 %v2870_v46 }
 0x824   :  { %3390 = vmatpush1.msra.mxu0 %v6797_v15  ;;  %5133 = vmatprep.mubr.msk.f32.mxu1 %vm5603_vm0, %v8261_v21 }
 0x825   :  { %3131 = vmatmul.mubr.f32.gmra.mxu0 %v8275_v61  ;;  %3391 = vmatprep.subr.mxu0 %v6801_v28 }
 0x826   :  { %3136 = vmatprep.mubr.f32.mxu0 %v8261_v21  ;;  %3392 = vmatpush1.msra.mxu0 %v6804_v29 }
 0x827   :  { %3393 = vmatprep.subr.mxu0 %v6808_v34  ;;  %3173 = vmatprep.subr.mxu1 %v3036_v47 }
 0x828   :  { %3394 = vmatpush1.msra.mxu0 %v6811_v37 }
 0x829   :  { %3137 = vmatmul.mubr.f32.gmra.mxu0 %v8276_v0  ;;  %3395 = vmatprep.subr.mxu0 %v6815_v26 }
 0x82a   :  { %3142 = vmatprep.mubr.f32.mxu0 %v8261_v21  ;;  %3396 = vmatpush1.msra.mxu0 %v6818_v43 }
 0x82b   :  { %3397 = vmatprep.subr.mxu0 %v6822_v50 }
 0x82c   :  { %3398 = vmatpush1.msra.mxu0 %v6825_v57 }
 0x82d   :  { %3143 = vmatmul.mubr.f32.gmra.mxu0 %v6571_v33  ;;  %3399 = vmatprep.subr.mxu0 %v6829_v3 }
 0x82e   :  { %3148 = vmatprep.mubr.f32.mxu0 %v8261_v21  ;;  %3400 = vmatpush1.msra.mxu0 %v6832_v9 }
 0x82f   :  { %3401 = vmatprep.subr.mxu0 %v6836_v53 }
 0x830   :  { %3402 = vmatpush1.msra.mxu0 %v6839_v13 }
 0x831   :  { %3149 = vmatmul.mubr.f32.gmra.mxu0 %v6657_v18  ;;  %3403 = vmatprep.subr.mxu0 %v6843_v40 }
 0x832   :  { %3154 = vmatprep.mubr.f32.mxu0 %v8261_v21  ;;  %3404 = vmatpush1.msra.mxu0 %v6846_v35 }
 0x833   :  { %3405 = vmatprep.subr.mxu0 %v6850_v45 }
 0x834   :  { %3406 = vmatpush1.msra.mxu0 %v6853_v6 }
 0x835   :  { %3155 = vmatmul.mubr.f32.gmra.mxu0 %v6741_v23  ;;  %3407 = vmatprep.subr.mxu0 %v6857_v56 }
 0x836   :  { %3160 = vmatprep.mubr.f32.mxu0 %v8261_v21  ;;  %3408 = vmatpush1.msra.mxu0 %v6860_v19 }
 0x837   :  { %3409 = vmatprep.subr.mxu0 %v6864_v36 }
 0x838   :  { %3410 = vmatpush1.msra.mxu0 %v6867_v20 }
 0x839   :  { %3161 = vmatmul.mubr.f32.gmra.mxu0 %v6764_v2  ;;  %3411 = vmatprep.subr.mxu0 %v6871_v16 }
 0x83a   :  { %3166 = vmatprep.mubr.f32.mxu0 %v8261_v21  ;;  %3412 = vmatpush1.msra.mxu0 %v6874_v14 }
 0x83b   :  { %3413 = vmatprep.subr.mxu0 %v6878_v63 }
 0x83c   :  { %3414 = vmatpush1.msra.mxu0 %v6881_v30 }
 0x83d   :  { %3415 = vmatprep.subr.mxu0 %v6885_v17 }
 0x83e   :  { %3416 = vmatpush1.msra.mxu0 %v6888_v51 }
 0x83f   :  { %3417 = vmatprep.subr.mxu0 %v6891_v52 }
 0x840   :  { %3418 = vmatpush1.msra.mxu0 %v6894_v54 }
 0x841   :  { %3563 = vmatprep.subr.mxu0 %v6787_v7 }
 0x8c1   :  { %v2758_v55 = vpop.f32.mrf.mxu1  ;;  %v2829_v31 = vpop.f32.mrf.mxu0 }
 0x8c2   :  { %v2834_v1 = vadd.f32 %v2758_v55, %v8289_v58  ;;  %v2836_v22 = vadd.f32 %v2829_v31, %v8292_v32  ;;  %v3035_v32 = vld [vmem:[#allocation4 + $0x3f0] sm:$0xff] }
 0x8c3   :  { %v2760_v4 = vpop.f32.mrf.mxu1  ;;  %v2831_v49 = vpop.f32.mrf.mxu0 }
 0x8c4   :  { %v4955_v5 = vmul.f32 -1.442695, %v2834_v1  ;;  %v2835_v24 = vadd.f32 %v2760_v4, %v8290_v11  ;;  %v2837_v10 = vadd.f32 %v2831_v49, %v8291_v62  ;;  %v6904_v49 = vpop.permute.xlu1 %2865 }
 0x8c5   :  { %8293 = vst [vmem:[#allocation20_spill] sm:$0xff] %v6904_v49  ;;  %vm2867_vm1 = vcmp.eq.s32.totalorder %v6904_v49, 1  ;;  %v7034_v49 = vld [vmem:[#allocation7 + $0x278] sm:$0xff] }
 0x8c6   :  { %5300 = vpow2.f32 %v4955_v5  ;;  %v4956_v38 = vmul.f32 -1.442695, %v2835_v24  ;;  %v4957_v39 = vmul.f32 -1.442695, %v2837_v10  ;;  %8299 = vst [vmem:[#allocation26_spill] sm:$0xff] %v7034_v49 }
 0x8c8   :  { %5302 = vpow2.f32 %v4956_v38 }
 0x8c9   :  { %5304 = vtanh.f32 %v2836_v22 }
 0x8ca   :  { %5306 = vpow2.f32 %v4957_v39  ;;  %v3032_v39 = vld [vmem:[#allocation4 + $0x3d8] sm:$0xff] }
 0x8d3   :  { %v5301_v48 = vpop.eup %5300 }
 0x8d4   :  { %v2841_v42 = vadd.f32 1.0, %v5301_v48  ;;  %v3028_v48 = vld [vmem:[#allocation4 + $0x3b8] sm:$0xff] }
 0x8d5   :  { %v5303_v46 = vpop.eup %5302 }
 0x8d6   :  { %5308 = vrcp.f32 %v2841_v42  ;;  %v2847_v47 = vadd.f32 1.0, %v5303_v46  ;;  %v5305_v55 = vpop.eup %5304  ;;  %v3027_v42 = vld [vmem:[#allocation4 + $0x3b0] sm:$0xff]  ;;  %v3024_v46 = vld [vmem:[#allocation4 + $0x398] sm:$0xff] }
 0x8d7   :  { %v5307_v58 = vpop.eup %5306 }
 0x8d8   :  { %5310 = vrcp.f32 %v2847_v47  ;;  %v2854_v11 = vadd.f32 1.0, %v5307_v58  ;;  %v3023_v47 = vld [vmem:[#allocation4 + $0x390] sm:$0xff] }
 0x8d9   :  { %v3019_v58 = vld [vmem:[#allocation4 + $0x370] sm:$0xff] }
 0x8da   :  { %5312 = vrcp.f32 %v2854_v11  ;;  %v3011_v11 = vld [vmem:[#allocation4 + $0x330] sm:$0xff] }
 0x8e3   :  { %v5309_v1 = vpop.eup %5308 }
 0x8e4   :  { %v2858_v4 = vmul.f32 %v5309_v1, %v5305_v55  ;;  %v3020_v55 = vld [vmem:[#allocation4 + $0x378] sm:$0xff] }
 0x8e5   :  { %v5311_v5 = vpop.eup %5310  ;;  %v3016_v1 = vld [vmem:[#allocation4 + $0x358] sm:$0xff] }
 0x8e6   :  { %v2857_v24 = vmul.f32 %v5311_v5, %v6759_v44  ;;  %v3031_v44 = vld [vmem:[#allocation4 + $0x3d0] sm:$0xff]  ;;  %v3012_v5 = vld [vmem:[#allocation4 + $0x338] sm:$0xff] }
 0x8e7   :  { %v5313_v31 = vpop.eup %5312 }
 0x8e8   :  { %v2859_v38 = vadd.f32 %v2858_v4, %v2857_v24  ;;  %v3015_v4 = vld [vmem:[#allocation4 + $0x350] sm:$0xff]  ;;  %v3008_v24 = vld [vmem:[#allocation4 + $0x318] sm:$0xff] }
 0x8ea   :  { %5314 = vtanh.f32 %v2859_v38  ;;  %v3007_v38 = vld [vmem:[#allocation4 + $0x310] sm:$0xff] }
 0x8f7   :  { %v5315_v62 = vpop.eup %5314 }
 0x8f8   :  { %v2861_v10 = vmul.f32 %v5315_v62, %v5313_v31  ;;  %v3004_v31 = vld [vmem:[#allocation4 + $0x2f8] sm:$0xff]  ;;  %v3003_v62 = vld [vmem:[#allocation4 + $0x2f0] sm:$0xff] }
 0x8fa   :  { %v6910_v22 = vsel %vm2867_vm1, %v2861_v10, %v6764_v2  ;;  %v3000_v10 = vld [vmem:[#allocation4 + $0x2d8] sm:$0xff] }
 0x8fb   :  { %5134 = vmatmul.mubr.f32.vlgmr.msra.gmra.mxu1 %v6910_v22  ;;  %3167 = vmatmul.mubr.f32.gmra.mxu0 %v6910_v22 }
 0x8fc   :  { %3174 = vmatpush1.msra.mxu1 %v3035_v32  ;;  %3451 = vmatprep.mubr.f32.mxu0 %v8261_v21  ;;  %v2999_v32 = vld [vmem:[#allocation4 + $0x2d0] sm:$0xff] }
 0x8fd   :  { %3175 = vmatprep.subr.mxu1 %v3032_v39  ;;  %3237 = vmatprep.mubr.f32.mxu1 %v8261_v21  ;;  %v2996_v39 = vld [vmem:[#allocation4 + $0x2b8] sm:$0xff] }
 0x8fe   :  { %3176 = vmatpush1.msra.mxu1 %v3031_v44  ;;  %v2995_v44 = vld [vmem:[#allocation4 + $0x2b0] sm:$0xff] }
 0x8ff   :  { %3177 = vmatprep.subr.mxu1 %v3028_v48  ;;  %3452 = vmatmul.mubr.f32.vlgmr.msra.gmra.mxu0 %v8261_v21  ;;  %v2992_v48 = vld [vmem:[#allocation4 + $0x298] sm:$0xff] }
 0x900   :  { %3178 = vmatpush1.msra.mxu1 %v3027_v42  ;;  %3564 = vmatpush1.msra.mxu0 %v6790_v8  ;;  %v2991_v42 = vld [vmem:[#allocation4 + $0x290] sm:$0xff] }
 0x901   :  { %3179 = vmatprep.subr.mxu1 %v3024_v46  ;;  %3565 = vmatprep.subr.mxu0 %v6794_v12  ;;  %v2988_v46 = vld [vmem:[#allocation4 + $0x278] sm:$0xff] }
 0x902   :  { %3180 = vmatpush1.msra.mxu1 %v3023_v47  ;;  %3566 = vmatpush1.msra.mxu0 %v6797_v15  ;;  %v2987_v47 = vld [vmem:[#allocation4 + $0x270] sm:$0xff] }
 0x903   :  { %3181 = vmatprep.subr.mxu1 %v3020_v55  ;;  %3567 = vmatprep.subr.mxu0 %v6801_v28  ;;  %v2984_v55 = vld [vmem:[#allocation4 + $0x258] sm:$0xff] }
 0x904   :  { %3182 = vmatpush1.msra.mxu1 %v3019_v58  ;;  %3568 = vmatpush1.msra.mxu0 %v6804_v29  ;;  %v2983_v58 = vld [vmem:[#allocation4 + $0x250] sm:$0xff] }
 0x905   :  { %3183 = vmatprep.subr.mxu1 %v3016_v1  ;;  %3569 = vmatprep.subr.mxu0 %v6808_v34  ;;  %v2980_v1 = vld [vmem:[#allocation4 + $0x238] sm:$0xff] }
 0x906   :  { %3184 = vmatpush1.msra.mxu1 %v3015_v4  ;;  %3570 = vmatpush1.msra.mxu0 %v6811_v37  ;;  %v2979_v4 = vld [vmem:[#allocation4 + $0x230] sm:$0xff] }
 0x907   :  { %3185 = vmatprep.subr.mxu1 %v3012_v5  ;;  %3571 = vmatprep.subr.mxu0 %v6815_v26  ;;  %v2976_v5 = vld [vmem:[#allocation4 + $0x218] sm:$0xff] }
 0x908   :  { %3186 = vmatpush1.msra.mxu1 %v3011_v11  ;;  %3572 = vmatpush1.msra.mxu0 %v6818_v43  ;;  %v2975_v11 = vld [vmem:[#allocation4 + $0x210] sm:$0xff] }
 0x909   :  { %3187 = vmatprep.subr.mxu1 %v3008_v24  ;;  %3573 = vmatprep.subr.mxu0 %v6822_v50  ;;  %v6941_v24 = vld [vmem:[#allocation7 + $0x3f8] sm:$0xff] }
 0x90a   :  { %3188 = vmatpush1.msra.mxu1 %v3007_v38  ;;  %3574 = vmatpush1.msra.mxu0 %v6825_v57  ;;  %8294 = vst [vmem:[#allocation21_spill] sm:$0xff] %v6941_v24  ;;  %v6944_v38 = vld [vmem:[#allocation7 + $0x3f0] sm:$0xff] }
 0x90b   :  { %3189 = vmatprep.subr.mxu1 %v3004_v31  ;;  %3575 = vmatprep.subr.mxu0 %v6829_v3  ;;  %v6947_v31 = vld [vmem:[#allocation7 + $0x3d8] sm:$0xff] }
 0x90c   :  { %3190 = vmatpush1.msra.mxu1 %v3003_v62  ;;  %3576 = vmatpush1.msra.mxu0 %v6832_v9  ;;  %v6954_v62 = vld [vmem:[#allocation7 + $0x3d0] sm:$0xff] }
 0x90d   :  { %3191 = vmatprep.subr.mxu1 %v3000_v10  ;;  %3577 = vmatprep.subr.mxu0 %v6836_v53  ;;  %v6958_v10 = vld [vmem:[#allocation7 + $0x3b8] sm:$0xff] }
 0x90e   :  { %3192 = vmatpush1.msra.mxu1 %v2999_v32  ;;  %3578 = vmatpush1.msra.mxu0 %v6839_v13  ;;  %v6961_v32 = vld [vmem:[#allocation7 + $0x3b0] sm:$0xff] }
 0x90f   :  { %3193 = vmatprep.subr.mxu1 %v2996_v39  ;;  %3579 = vmatprep.subr.mxu0 %v6843_v40  ;;  %v6965_v39 = vld [vmem:[#allocation7 + $0x398] sm:$0xff] }
 0x910   :  { %3194 = vmatpush1.msra.mxu1 %v2995_v44  ;;  %3580 = vmatpush1.msra.mxu0 %v6846_v35  ;;  %v6974_v44 = vld [vmem:[#allocation7 + $0x378] sm:$0xff] }
 0x911   :  { %3195 = vmatprep.subr.mxu1 %v2992_v48  ;;  %3581 = vmatprep.subr.mxu0 %v6850_v45  ;;  %v6977_v48 = vld [vmem:[#allocation7 + $0x370] sm:$0xff] }
 0x912   :  { %3196 = vmatpush1.msra.mxu1 %v2991_v42  ;;  %3582 = vmatpush1.msra.mxu0 %v6853_v6  ;;  %v6981_v42 = vld [vmem:[#allocation7 + $0x358] sm:$0xff] }
 0x913   :  { %3197 = vmatprep.subr.mxu1 %v2988_v46  ;;  %3583 = vmatprep.subr.mxu0 %v6857_v56  ;;  %v6990_v46 = vld [vmem:[#allocation7 + $0x338] sm:$0xff] }
 0x914   :  { %3198 = vmatpush1.msra.mxu1 %v2987_v47  ;;  %3584 = vmatpush1.msra.mxu0 %v6860_v19  ;;  %v6993_v47 = vld [vmem:[#allocation7 + $0x330] sm:$0xff] }
 0x915   :  { %3199 = vmatprep.subr.mxu1 %v2984_v55  ;;  %3585 = vmatprep.subr.mxu0 %v6864_v36  ;;  %v6997_v55 = vld [vmem:[#allocation7 + $0x318] sm:$0xff] }
 0x916   :  { %3200 = vmatpush1.msra.mxu1 %v2983_v58  ;;  %3586 = vmatpush1.msra.mxu0 %v6867_v20  ;;  %v7006_v58 = vld [vmem:[#allocation7 + $0x2f8] sm:$0xff] }
 0x917   :  { %3201 = vmatprep.subr.mxu1 %v2980_v1  ;;  %3587 = vmatprep.subr.mxu0 %v6871_v16  ;;  %v7009_v1 = vld [vmem:[#allocation7 + $0x2f0] sm:$0xff] }
 0x918   :  { %3202 = vmatpush1.msra.mxu1 %v2979_v4  ;;  %3588 = vmatpush1.msra.mxu0 %v6874_v14  ;;  %v7012_v4 = vld [vmem:[#allocation7 + $0x2d8] sm:$0xff] }
 0x919   :  { %3203 = vmatprep.subr.mxu1 %v2976_v5  ;;  %3589 = vmatprep.subr.mxu0 %v6878_v63  ;;  %v7023_v5 = vld [vmem:[#allocation7 + $0x2b0] sm:$0xff] }
 0x91a   :  { %3204 = vmatpush1.msra.mxu1 %v2975_v11  ;;  %3590 = vmatpush1.msra.mxu0 %v6881_v30  ;;  %8296 = vst [vmem:[#allocation23_spill] sm:$0xff] %v7023_v5  ;;  %v7026_v11 = vld [vmem:[#allocation7 + $0x298] sm:$0xff] }
 0x91b   :  { %4988 = vmatmul.mubr.msk.f32.vlgmr.msra.gmra.mxu1 %vm1138_vm5, %v8273_v59  ;;  %3458 = vmatprep.subr.mxu1 %v6941_v24  ;;  %v6970_v59 = vld [vmem:[#allocation7 + $0x390] sm:$0xff]  ;;  %8297 = vst [vmem:[#allocation24_spill] sm:$0xff] %v7026_v11 }
 0x91c   :  { %3459 = vmatpush1.msra.mxu1 %v6944_v38  ;;  %3243 = vmatprep.mubr.f32.mxu1 %v8261_v21 }
 0x91d   :  { %3460 = vmatprep.subr.mxu1 %v6947_v31  ;;  %3591 = vmatprep.subr.mxu0 %v6885_v17 }
 0x91e   :  { %3461 = vmatpush1.msra.mxu1 %v6954_v62  ;;  %3592 = vmatpush1.msra.mxu0 %v6888_v51 }
 0x91f   :  { %3244 = vmatmul.mubr.f32.gmra.mxu1 %v8275_v61  ;;  %3462 = vmatprep.subr.mxu1 %v6958_v10  ;;  %v6986_v61 = vld [vmem:[#allocation7 + $0x350] sm:$0xff] }
 0x920   :  { %3463 = vmatpush1.msra.mxu1 %v6961_v32  ;;  %3249 = vmatprep.mubr.f32.mxu1 %v8261_v21 }
 0x921   :  { %3464 = vmatprep.subr.mxu1 %v6965_v39  ;;  %3593 = vmatprep.subr.mxu0 %v6891_v52  ;;  %v7054_v52 = vld [vmem:[#allocation7 + $0x218] sm:$0xff] }
 0x922   :  { %3465 = vmatpush1.msra.mxu1 %v6970_v59  ;;  %3594 = vmatpush1.msra.mxu0 %v6894_v54  ;;  %v7051_v54 = vld [vmem:[#allocation7 + $0x230] sm:$0xff]  ;;  %8305 = vst [vmem:[#allocation32_spill] sm:$0xff] %v7054_v52 }
 0x923   :  { %3250 = vmatmul.mubr.f32.gmra.mxu1 %v8276_v0  ;;  %3466 = vmatprep.subr.mxu1 %v6974_v44  ;;  %v7002_v0 = vld [vmem:[#allocation7 + $0x310] sm:$0xff]  ;;  %8304 = vst [vmem:[#allocation31_spill] sm:$0xff] %v7051_v54 }
 0x924   :  { %3467 = vmatpush1.msra.mxu1 %v6977_v48  ;;  %3255 = vmatprep.mubr.f32.mxu1 %v8261_v21 }
 0x925   :  { %3468 = vmatprep.subr.mxu1 %v6981_v42  ;;  %3627 = vmatprep.mubr.f32.mxu0 %v8261_v21 }
 0x926   :  { %3469 = vmatpush1.msra.mxu1 %v6986_v61  ;;  %3739 = vmatprep.subr.mxu0 %v6787_v7  ;;  %v7020_v7 = vld [vmem:[#allocation7 + $0x2b8] sm:$0xff] }
 0x927   :  { %3256 = vmatmul.mubr.f32.gmra.mxu1 %v6571_v33  ;;  %3470 = vmatprep.subr.mxu1 %v6990_v46  ;;  %v7016_v33 = vld [vmem:[#allocation7 + $0x2d0] sm:$0xff]  ;;  %8295 = vst [vmem:[#allocation22_spill] sm:$0xff] %v7020_v7 }
 0x928   :  { %3471 = vmatpush1.msra.mxu1 %v6993_v47  ;;  %3261 = vmatprep.mubr.f32.mxu1 %v8261_v21 }
 0x929   :  { %3472 = vmatprep.subr.mxu1 %v6997_v55 }
 0x92a   :  { %3473 = vmatpush1.msra.mxu1 %v7002_v0 }
 0x92b   :  { %3262 = vmatmul.mubr.f32.gmra.mxu1 %v6657_v18  ;;  %3474 = vmatprep.subr.mxu1 %v7006_v58  ;;  %v7030_v18 = vld [vmem:[#allocation7 + $0x290] sm:$0xff] }
 0x92c   :  { %3475 = vmatpush1.msra.mxu1 %v7009_v1  ;;  %3267 = vmatprep.mubr.f32.mxu1 %v8261_v21  ;;  %8298 = vst [vmem:[#allocation25_spill] sm:$0xff] %v7030_v18 }
 0x92d   :  { %3476 = vmatprep.subr.mxu1 %v7012_v4 }
 0x92e   :  { %3477 = vmatpush1.msra.mxu1 %v7016_v33 }
 0x92f   :  { %3268 = vmatmul.mubr.f32.gmra.mxu1 %v6741_v23  ;;  %3478 = vmatprep.subr.mxu1 %v7020_v7  ;;  %v7044_v23 = vld [vmem:[#allocation7 + $0x250] sm:$0xff] }
 0x930   :  { %3479 = vmatpush1.msra.mxu1 %v7023_v5  ;;  %3273 = vmatprep.mubr.f32.mxu1 %v8261_v21  ;;  %8302 = vst [vmem:[#allocation29_spill] sm:$0xff] %v7044_v23 }
 0x931   :  { %3480 = vmatprep.subr.mxu1 %v7026_v11 }
 0x932   :  { %3481 = vmatpush1.msra.mxu1 %v7030_v18 }
 0x933   :  { %3274 = vmatmul.mubr.f32.gmra.mxu1 %v6764_v2  ;;  %3482 = vmatprep.subr.mxu1 %v7034_v49  ;;  %v7058_v2 = vld [vmem:[#allocation7 + $0x210] sm:$0xff] }
 0x934   :  { %3483 = vmatpush1.msra.mxu1 %v7037_v41  ;;  %3279 = vmatprep.mubr.f32.mxu1 %v8261_v21  ;;  %8306 = vst [vmem:[#allocation33_spill] sm:$0xff] %v7058_v2 }
 0x935   :  { %3484 = vmatprep.subr.mxu1 %v7040_v27 }
 0x936   :  { %3485 = vmatpush1.msra.mxu1 %v7044_v23 }
 0x937   :  { %3280 = vmatmul.mubr.f32.gmra.mxu1 %v6910_v22  ;;  %3486 = vmatprep.subr.mxu1 %v7048_v25  ;;  %v3126_v22 = vpop.f32.mrf.mxu0 }
 0x938   :  { %3487 = vmatpush1.msra.mxu1 %v7051_v54  ;;  %3522 = vmatprep.mubr.f32.mxu1 %v8261_v21 }
 0x939   :  { %3488 = vmatprep.subr.mxu1 %v7054_v52 }
 0x93a   :  { %3489 = vmatpush1.msra.mxu1 %v7058_v2 }
 0x93b   :  { %3523 = vmatmul.mubr.f32.vlgmr.msra.gmra.mxu1 %v8261_v21  ;;  %3634 = vmatprep.subr.mxu1 %v6941_v24 }
 0x93c   :  { %3635 = vmatpush1.msra.mxu1 %v6944_v38  ;;  %3698 = vmatprep.mubr.f32.mxu1 %v8261_v21  ;;  %v3128_v21 = vpop.f32.mrf.mxu0 }
 0x93d   :  { %3636 = vmatprep.subr.mxu1 %v6947_v31 }
 0x93e   :  { %3637 = vmatpush1.msra.mxu1 %v6954_v62  ;;  %v7099_v51 = vpop.f32.mrf.mxu0 }
 0x93f   :  { %3638 = vmatprep.subr.mxu1 %v6958_v10  ;;  %8307 = vst [vmem:[#allocation34_spill] sm:$0xff] %v7099_v51 }
 0x940   :  { %3639 = vmatpush1.msra.mxu1 %v6961_v32  ;;  %v7101_v17 = vpop.f32.mrf.mxu0 }
 0x941   :  { %3640 = vmatprep.subr.mxu1 %v6965_v39  ;;  %8308 = vst [vmem:[#allocation35_spill] sm:$0xff] %v7101_v17 }
 0x942   :  { %3641 = vmatpush1.msra.mxu1 %v6970_v59  ;;  %v7103_v30 = vpop.f32.mrf.mxu0 }
 0x943   :  { %3642 = vmatprep.subr.mxu1 %v6974_v44  ;;  %8309 = vst [vmem:[#allocation14_spill] sm:$0xff] %v7103_v30 }
 0x944   :  { %3643 = vmatpush1.msra.mxu1 %v6977_v48 }
 0x945   :  { %3644 = vmatprep.subr.mxu1 %v6981_v42 }
 0x946   :  { %3645 = vmatpush1.msra.mxu1 %v6986_v61 }
 0x947   :  { %3646 = vmatprep.subr.mxu1 %v6990_v46 }
 0x948   :  { %3647 = vmatpush1.msra.mxu1 %v6993_v47 }
 0x949   :  { %3648 = vmatprep.subr.mxu1 %v6997_v55 }
 0x94a   :  { %3649 = vmatpush1.msra.mxu1 %v7002_v0 }
 0x94b   :  { %3650 = vmatprep.subr.mxu1 %v7006_v58 }
 0x94c   :  { %3651 = vmatpush1.msra.mxu1 %v7009_v1 }
 0x94d   :  { %3652 = vmatprep.subr.mxu1 %v7012_v4 }
 0x94e   :  { %3653 = vmatpush1.msra.mxu1 %v7016_v33 }
 0x94f   :  { %3654 = vmatprep.subr.mxu1 %v7020_v7 }
 0x950   :  { %3655 = vmatpush1.msra.mxu1 %v7023_v5 }
 0x951   :  { %3656 = vmatprep.subr.mxu1 %v7026_v11 }
 0x952   :  { %3657 = vmatpush1.msra.mxu1 %v7030_v18 }
 0x953   :  { %3658 = vmatprep.subr.mxu1 %v7034_v49 }
 0x954   :  { %3659 = vmatpush1.msra.mxu1 %v7037_v41 }
 0x955   :  { %3660 = vmatprep.subr.mxu1 %v7040_v27  ;;  %v7105_v27 = vpop.f32.mrf.mxu0 }
 0x956   :  { %3661 = vmatpush1.msra.mxu1 %v7044_v23  ;;  %8310 = vst [vmem:[#allocation52_spill] sm:$0xff] %v7105_v27 }
 0x957   :  { %3662 = vmatprep.subr.mxu1 %v7048_v25  ;;  %v7107_v23 = vpop.f32.mrf.mxu0 }
 0x958   :  { %3663 = vmatpush1.msra.mxu1 %v7051_v54  ;;  %8311 = vst [vmem:[#allocation54_spill] sm:$0xff] %v7107_v23 }
 0x959   :  { %3664 = vmatprep.subr.mxu1 %v7054_v52  ;;  %v7109_v25 = vpop.f32.mrf.mxu0 }
 0x95a   :  { %3665 = vmatpush1.msra.mxu1 %v7058_v2  ;;  %8312 = vst [vmem:[#allocation55_spill] sm:$0xff] %v7109_v25  ;;  %v4958_v2 = vld [vmem:[%s7870_s8] ss:$0 sm:$0xff] }
 0x95b   :  { %3810 = vmatprep.subr.mxu1 %v6941_v24  ;;  %v7114_v52 = vpop.f32.mrf.mxu0 }
 0x95c   :  { %8313 = vst [vmem:[#allocation53_spill] sm:$0xff] %v7114_v52 }
 0x95d   :  { %v7116_v51 = vpop.f32.mrf.mxu0 }
 0x95e   :  { %8314 = vst [vmem:[#allocation56_spill] sm:$0xff] %v7116_v51 }
 0x95f   :  { %v7118_v17 = vpop.f32.mrf.mxu0 }
 0x960   :  { %8315 = vst [vmem:[#allocation58_spill] sm:$0xff] %v7118_v17 }
 0x961   :  { %v7120_v30 = vpop.f32.mrf.mxu0 }
 0x962   :  { %8316 = vst [vmem:[#allocation59_spill] sm:$0xff] %v7120_v30 }
 0x963   :  { %v7122_v27 = vpop.f32.mrf.mxu0 }
 0x964   :  { %8317 = vst [vmem:[#allocation57_spill] sm:$0xff] %v7122_v27 }
 0x965   :  { %v7124_v23 = vpop.f32.mrf.mxu0 }
 0x966   :  { %8318 = vst [vmem:[#allocation65_spill] sm:$0xff] %v7124_v23 }
 0x9bb   :  { %v2959_v24 = vpop.f32.mrf.mxu1  ;;  %v7126_v25 = vpop.f32.mrf.mxu0 }
 0x9bc   :  { %v2960_v54 = vadd.f32 %v4958_v2, %v2959_v24  ;;  %8319 = vst [vmem:[#allocation64_spill] sm:$0xff] %v7126_v25  ;;  %v4959_v24 = vld [vmem:[%s7868_s6 + $0x4] sm:$0xf] }
 0x9bd   :  { %v5135_v63 = vpop.f32.mrf.mxu1  ;;  %v7128_v41 = vpop.f32.mrf.mxu0 }
 0x9be   :  { %2963 = vst [vmem:[#allocation10] sm:$0xff] %v2960_v54  ;;  %8320 = vst [vmem:[#allocation16_spill] sm:$0xff] %v7128_v41  ;;  %v8321_v54 = vld [vmem:[#allocation36_spill] sm:$0xff] }
 0x9bf   :  { %v3453_v63 = vpop.f32.mrf.mxu0  ;;  %v8322_v2 = vsub.s32 1, %v8321_v54  ;;  %v8324_v17 = vsub.s32 0, %v8321_v54  ;;  %v8326_v41 = vsub.s32 2, %v8321_v54  ;;  %v8327_v20 = vsub.s32 3, %v8321_v54 }
 0x9c1   :  { %v7135_v51 = vrot.slane %v4959_v24, %v8322_v2  ;;  %v7139_v30 = vrot.slane %v4959_v24, %v8324_v17  ;;  %v3455_v52 = vpop.f32.mrf.mxu0  ;;  %v3051_v14 = vrot.slane %v4959_v24, %v8326_v41  ;;  %v3055_v2 = vrot.slane %v4959_v24, %v8327_v20 }
 0x9c3   :  { %8323 = vst [vmem:[#allocation39_spill] sm:$0xff] %v7135_v51  ;;  %8325 = vst [vmem:[#allocation60_spill] sm:$0xff] %v7139_v30  ;;  %v3129_v25 = vadd.f32 %v3128_v21, %v7135_v51  ;;  %v3127_v49 = vadd.f32 %v3126_v22, %v7139_v30 }
 0x9c5   :  { %v3530_v18 = vadd.f32 %v3455_v52, %v3129_v25  ;;  %v3529_v36 = vadd.f32 %v3453_v63, %v3127_v49 }
 0x9c7   :  { %v4961_v7 = vmul.f32 -1.442695, %v3530_v18  ;;  %v4960_v21 = vmul.f32 -1.442695, %v3529_v36 }
 0x9c9   :  { %5316 = vpow2.f32 %v4961_v7 }
 0x9ca   :  { %5318 = vpow2.f32 %v4960_v21 }
 0x9db   :  { %v3239_v27 = vpop.f32.mrf.mxu1 }
 0x9dd   :  { %v3241_v23 = vpop.f32.mrf.mxu1 }
 0x9df   :  { %v3245_v16 = vpop.f32.mrf.mxu1 }
 0x9e0   :  { %v7147_v11 = vadd.f32 %v3245_v16, %v3051_v14 }
 0x9e1   :  { %v3247_v17 = vpop.f32.mrf.mxu1 }
 0x9e2   :  { %v7149_v5 = vadd.f32 %v3247_v17, %v3055_v2  ;;  %v5317_v17 = vpop.eup %5316 }
 0x9e3   :  { %v3251_v19 = vpop.f32.mrf.mxu1 }
 0x9e4   :  { %v7151_v56 = vadd.f32 %v3251_v19, %v3051_v14 }
 0x9e5   :  { %v3253_v51 = vpop.f32.mrf.mxu1 }
 0x9e6   :  { %8328 = vst [vmem:[#allocation62_spill] sm:$0xff] %v7151_v56  ;;  %v7153_v41 = vadd.f32 %v3253_v51, %v3055_v2 }
 0x9e7   :  { %v3257_v22 = vpop.f32.mrf.mxu1 }
 0x9e8   :  { %v7155_v25 = vadd.f32 %v3257_v22, %v3051_v14  ;;  %v5319_v22 = vpop.eup %5318 }
 0x9e9   :  { %v3259_v20 = vpop.f32.mrf.mxu1 }
 0x9ea   :  { %8329 = vst [vmem:[#allocation63_spill] sm:$0xff] %v7155_v25  ;;  %v7157_v16 = vadd.f32 %v3259_v20, %v3055_v2 }
 0x9eb   :  { %v3263_v52 = vpop.f32.mrf.mxu1 }
 0x9ec   :  { %8330 = vst [vmem:[#allocation61_spill] sm:$0xff] %v7157_v16  ;;  %v7159_v49 = vadd.f32 %v3263_v52, %v3051_v14  ;;  %v3542_v52 = vadd.f32 1.0, %v5317_v17  ;;  %v3240_v16 = vadd.f32 %v3239_v27, %v3051_v14 }
 0x9ed   :  { %v3265_v24 = vpop.f32.mrf.mxu1 }
 0x9ee   :  { %8331 = vst [vmem:[#allocation36_spill] sm:$0xff] %v7159_v49  ;;  %v7161_v63 = vadd.f32 %v3265_v24, %v3055_v2  ;;  %v3536_v24 = vadd.f32 1.0, %v5319_v22  ;;  %5320 = vrcp.f32 %v3542_v52  ;;  %v8365_v52 = vld [vmem:[#allocation21_spill] sm:$0xff] }
 0x9ef   :  { %v3269_v19 = vpop.f32.mrf.mxu1 }
 0x9f0   :  { %8332 = vst [vmem:[#allocation66_spill] sm:$0xff] %v7161_v63  ;;  %v7163_v18 = vadd.f32 %v3269_v19, %v3051_v14  ;;  %5322 = vrcp.f32 %v3536_v24  ;;  %v8366_v24 = vld [vmem:[#allocation34_spill] sm:$0xff] }
 0x9f1   :  { %v3271_v36 = vpop.f32.mrf.mxu1 }
 0x9f2   :  { %8333 = vst [vmem:[#allocation67_spill] sm:$0xff] %v7163_v18  ;;  %v7165_v51 = vadd.f32 %v3271_v36, %v3055_v2  ;;  %v3242_v36 = vadd.f32 %v3241_v23, %v3055_v2 }
 0x9f3   :  { %v3275_v54 = vpop.f32.mrf.mxu1 }
 0x9f4   :  { %8334 = vst [vmem:[#allocation68_spill] sm:$0xff] %v7165_v51  ;;  %v7167_v7 = vadd.f32 %v3275_v54, %v3051_v14 }
 0x9f5   :  { %v3277_v21 = vpop.f32.mrf.mxu1 }
 0x9f6   :  { %8335 = vst [vmem:[#allocation69_spill] sm:$0xff] %v7167_v7  ;;  %v7169_v20 = vadd.f32 %v3277_v21, %v3055_v2 }
 0x9f7   :  { %v3281_v25 = vpop.f32.mrf.mxu1 }
 0x9f8   :  { %8336 = vst [vmem:[#allocation70_spill] sm:$0xff] %v7169_v20  ;;  %v7171_v49 = vadd.f32 %v3281_v25, %v3051_v14 }
 0x9f9   :  { %v3283_v63 = vpop.f32.mrf.mxu1 }
 0x9fa   :  { %8337 = vst [vmem:[#allocation71_spill] sm:$0xff] %v7171_v49  ;;  %v7173_v19 = vadd.f32 %v3283_v63, %v3055_v2  ;;  %v8360_v63 = vld [vmem:[#allocation32_spill] sm:$0xff] }
 0x9fb   :  { %v3524_v18 = vpop.f32.mrf.mxu1  ;;  %v5321_v21 = vpop.eup %5320 }
 0x9fc   :  { %8338 = vst [vmem:[#allocation72_spill] sm:$0xff] %v7173_v19  ;;  %v3531_v51 = vadd.f32 %v3524_v18, %v3240_v16  ;;  %v3552_v25 = vmul.f32 0.0, %v5321_v21  ;;  %v8361_v18 = vld [vmem:[#allocation19_spill] sm:$0xff]  ;;  %v7372_v19 = vld [vmem:[#allocation7 + $0x260] sm:$0xff] }
 0x9fd   :  { %v3526_v54 = vpop.f32.mrf.mxu1  ;;  %v5323_v20 = vpop.eup %5322  ;;  %v8367_v21 = vld [vmem:[#allocation39_spill] sm:$0xff] }
 0x9fe   :  { %5324 = vtanh.f32 %v3531_v51  ;;  %v3532_v7 = vadd.f32 %v3526_v54, %v3242_v36  ;;  %v8362_v51 = vmov 0.0   ;;  %v3133_v36 = vadd.f32 %v8366_v24, %v7139_v30 }
 0xa00   :  { %v4962_v56 = vmul.f32 -1.442695, %v3532_v7  ;;  %v8363_v7 = vld [vmem:[#allocation33_spill] sm:$0xff] }
 0xa02   :  { %5326 = vpow2.f32 %v4962_v56  ;;  %v8358_v56 = vld [vmem:[#allocation31_spill] sm:$0xff] }
 0xa0b   :  { %v5325_v17 = vpop.eup %5324 }
 0xa0c   :  { %v3553_v49 = vmul.f32 %v5325_v17, %v5323_v20  ;;  %v7250_v20 = vld [vmem:[#allocation7 + $0x3e8] sm:$0xff]  ;;  %v8368_v17 = vld [vmem:[#allocation35_spill] sm:$0xff] }
 0xa0e   :  { %v7175_v22 = vadd.f32 %v3553_v49, %v3552_v25  ;;  %v8359_v49 = vld [vmem:[#allocation49_spill] sm:$0xff]  ;;  %v3135_v25 = vadd.f32 %v8368_v17, %v8367_v21 }
 0xa0f   :  { %v5327_v27 = vpop.eup %5326 }
 0xa10   :  { %v3549_v14 = vadd.f32 1.0, %v5327_v27  ;;  %5328 = vtanh.f32 %v7175_v22 }
 0xa12   :  { %5330 = vrcp.f32 %v3549_v14 }
 0xa1d   :  { %v5329_v23 = vpop.eup %5328 }
 0xa1f   :  { %v5331_v2 = vpop.eup %5330 }
 0xa20   :  { %v7178_v16 = vmul.f32 %v5331_v2, %v5329_v23 }
 0xa22   :  { %4963 = vmatmul.mubr.msk.f32.vlgmr.msra.gmra.mxu0 %vm1138_vm5, %v7178_v16  ;;  %4964 = vmatmul.mubr.msk.f32.vlgmr.msra.gmra.mxu1 %vm1138_vm5, %v7178_v16 }
 0xa23   :  { %3740 = vmatpush1.msra.mxu0 %v6790_v8  ;;  %3811 = vmatpush1.msra.mxu1 %v6944_v38  ;;  %v8339_v8 = vld [vmem:[#allocation41_spill] sm:$0xff] }
 0xa24   :  { %3741 = vmatprep.subr.mxu0 %v6794_v12  ;;  %3812 = vmatprep.subr.mxu1 %v6947_v31  ;;  %v8340_v12 = vld [vmem:[#allocation22_spill] sm:$0xff]  ;;  %8364 = vst [vmem:[#allocation41_spill] sm:$0xff] %v7250_v20 }
 0xa25   :  { %3742 = vmatpush1.msra.mxu0 %v6797_v15  ;;  %3813 = vmatpush1.msra.mxu1 %v6954_v62  ;;  %v8341_v15 = vld [vmem:[#allocation44_spill] sm:$0xff] }
 0xa26   :  { %3743 = vmatprep.subr.mxu0 %v6801_v28  ;;  %3814 = vmatprep.subr.mxu1 %v6958_v10  ;;  %v8342_v28 = vld [vmem:[#allocation23_spill] sm:$0xff] }
 0xa27   :  { %3744 = vmatpush1.msra.mxu0 %v6804_v29  ;;  %3815 = vmatpush1.msra.mxu1 %v6961_v32  ;;  %v8343_v29 = vld [vmem:[#allocation46_spill] sm:$0xff] }
 0xa28   :  { %3745 = vmatprep.subr.mxu0 %v6808_v34  ;;  %3816 = vmatprep.subr.mxu1 %v6965_v39  ;;  %v8344_v34 = vld [vmem:[#allocation24_spill] sm:$0xff]  ;;  %8373 = vst [vmem:[#allocation46_spill] sm:$0xff] %v7372_v19 }
 0xa29   :  { %3746 = vmatpush1.msra.mxu0 %v6811_v37  ;;  %3817 = vmatpush1.msra.mxu1 %v6970_v59  ;;  %v8345_v37 = vld [vmem:[#allocation47_spill] sm:$0xff] }
 0xa2a   :  { %3747 = vmatprep.subr.mxu0 %v6815_v26  ;;  %3818 = vmatprep.subr.mxu1 %v6974_v44  ;;  %v8346_v26 = vld [vmem:[#allocation25_spill] sm:$0xff] }
 0xa2b   :  { %3748 = vmatpush1.msra.mxu0 %v6818_v43  ;;  %3819 = vmatpush1.msra.mxu1 %v6977_v48  ;;  %v8347_v43 = vld [vmem:[#allocation45_spill] sm:$0xff] }
 0xa2c   :  { %3749 = vmatprep.subr.mxu0 %v6822_v50  ;;  %3820 = vmatprep.subr.mxu1 %v6981_v42  ;;  %v8348_v50 = vld [vmem:[#allocation26_spill] sm:$0xff] }
 0xa2d   :  { %3750 = vmatpush1.msra.mxu0 %v6825_v57  ;;  %3821 = vmatpush1.msra.mxu1 %v6986_v61  ;;  %v8349_v57 = vld [vmem:[#allocation17_spill] sm:$0xff] }
 0xa2e   :  { %3751 = vmatprep.subr.mxu0 %v6829_v3  ;;  %3822 = vmatprep.subr.mxu1 %v6990_v46  ;;  %v8350_v3 = vld [vmem:[#allocation27_spill] sm:$0xff] }
 0xa2f   :  { %3752 = vmatpush1.msra.mxu0 %v6832_v9  ;;  %3823 = vmatpush1.msra.mxu1 %v6993_v47  ;;  %v8351_v9 = vld [vmem:[#allocation18_spill] sm:$0xff] }
 0xa30   :  { %3753 = vmatprep.subr.mxu0 %v6836_v53  ;;  %3824 = vmatprep.subr.mxu1 %v6997_v55  ;;  %v8352_v53 = vld [vmem:[#allocation28_spill] sm:$0xff] }
 0xa31   :  { %3754 = vmatpush1.msra.mxu0 %v6839_v13  ;;  %3825 = vmatpush1.msra.mxu1 %v7002_v0  ;;  %v8353_v13 = vld [vmem:[#allocation48_spill] sm:$0xff] }
 0xa32   :  { %3755 = vmatprep.subr.mxu0 %v6843_v40  ;;  %3826 = vmatprep.subr.mxu1 %v7006_v58  ;;  %v8354_v40 = vld [vmem:[#allocation29_spill] sm:$0xff] }
 0xa33   :  { %3756 = vmatpush1.msra.mxu0 %v6846_v35  ;;  %3827 = vmatpush1.msra.mxu1 %v7009_v1  ;;  %v8355_v35 = vld [vmem:[#allocation50_spill] sm:$0xff] }
 0xa34   :  { %3757 = vmatprep.subr.mxu0 %v6850_v45  ;;  %3828 = vmatprep.subr.mxu1 %v7012_v4  ;;  %v8356_v45 = vld [vmem:[#allocation30_spill] sm:$0xff] }
 0xa35   :  { %3758 = vmatpush1.msra.mxu0 %v6853_v6  ;;  %3829 = vmatpush1.msra.mxu1 %v7016_v33  ;;  %v8357_v6 = vld [vmem:[#allocation51_spill] sm:$0xff] }
 0xa36   :  { %3759 = vmatprep.subr.mxu0 %v8339_v8  ;;  %3830 = vmatprep.subr.mxu1 %v8340_v12 }
 0xa37   :  { %3760 = vmatpush1.msra.mxu0 %v8341_v15  ;;  %3831 = vmatpush1.msra.mxu1 %v8342_v28 }
 0xa38   :  { %3761 = vmatprep.subr.mxu0 %v8343_v29  ;;  %3832 = vmatprep.subr.mxu1 %v8344_v34 }
 0xa39   :  { %3762 = vmatpush1.msra.mxu0 %v8345_v37  ;;  %3833 = vmatpush1.msra.mxu1 %v8346_v26 }
 0xa3a   :  { %3763 = vmatprep.subr.mxu0 %v8347_v43  ;;  %3834 = vmatprep.subr.mxu1 %v8348_v50 }
 0xa3b   :  { %3764 = vmatpush1.msra.mxu0 %v8349_v57  ;;  %3835 = vmatpush1.msra.mxu1 %v8350_v3 }
 0xa3c   :  { %3765 = vmatprep.subr.mxu0 %v8351_v9  ;;  %3836 = vmatprep.subr.mxu1 %v8352_v53 }
 0xa3d   :  { %3766 = vmatpush1.msra.mxu0 %v8353_v13  ;;  %3837 = vmatpush1.msra.mxu1 %v8354_v40 }
 0xa3e   :  { %3767 = vmatprep.subr.mxu0 %v8355_v35  ;;  %3838 = vmatprep.subr.mxu1 %v8356_v45 }
 0xa3f   :  { %3768 = vmatpush1.msra.mxu0 %v8357_v6  ;;  %3839 = vmatpush1.msra.mxu1 %v8358_v56 }
 0xa40   :  { %3769 = vmatprep.subr.mxu0 %v8359_v49  ;;  %3840 = vmatprep.subr.mxu1 %v8360_v63 }
 0xa41   :  { %3770 = vmatpush1.msra.mxu0 %v8361_v18  ;;  %3803 = vmatprep.mubr.f32.mxu0 %v8362_v51 }
 0xa42   :  { %3841 = vmatpush1.msra.mxu1 %v8363_v7  ;;  %3874 = vmatprep.mubr.f32.mxu1 %v8362_v51 }
 0xa43   :  { %3915 = vmatprep.subr.mxu0 %v7250_v20  ;;  %3986 = vmatprep.subr.mxu1 %v8365_v52 }
 0xae2   :  { %v3629_v54 = vpop.f32.mrf.mxu0  ;;  %v3700_v8 = vpop.f32.mrf.mxu1 }
 0xae3   :  { %v3705_v27 = vadd.f32 %v3629_v54, %v3133_v36  ;;  %v3707_v43 = vadd.f32 %v3700_v8, %v7147_v11 }
 0xae4   :  { %v3631_v14 = vpop.f32.mrf.mxu0  ;;  %v3702_v29 = vpop.f32.mrf.mxu1 }
 0xae5   :  { %v4965_v23 = vmul.f32 -1.442695, %v3705_v27  ;;  %v3706_v2 = vadd.f32 %v3631_v14, %v3135_v25  ;;  %v3708_v37 = vadd.f32 %v3702_v29, %v7149_v5  ;;  %v3558_v5 = vsel %vm1138_vm5, %v7175_v22, 0.0  ;;  %v7276_v22 = vld [vmem:[#allocation7 + $0x3e0] sm:$0xff]  ;;  %v7352_v27 = vld [vmem:[#allocation7 + $0x2a8] sm:$0xff] }
 0xae7   :  { %5332 = vpow2.f32 %v4965_v23  ;;  %v4966_v15 = vmul.f32 -1.442695, %v3706_v2  ;;  %v4967_v57 = vmul.f32 -1.442695, %v3708_v37  ;;  %v7280_v37 = vld [vmem:[#allocation7 + $0x3c8] sm:$0xff] }
 0xae9   :  { %5334 = vpow2.f32 %v4966_v15  ;;  %v3557_v15 = vsel %vm1138_vm5, %v7178_v16, 0.0  ;;  %v7288_v16 = vld [vmem:[#allocation7 + $0x3a8] sm:$0xff] }
 0xaea   :  { %5336 = vtanh.f32 %v3707_v43  ;;  %v7292_v43 = vld [vmem:[#allocation7 + $0x3a0] sm:$0xff] }
 0xaeb   :  { %5338 = vpow2.f32 %v4967_v57  ;;  %v7296_v57 = vld [vmem:[#allocation7 + $0x388] sm:$0xff] }
 0xaf4   :  { %v5333_v9 = vpop.eup %5332 }
 0xaf5   :  { %v3712_v13 = vadd.f32 1.0, %v5333_v9  ;;  %v7300_v9 = vld [vmem:[#allocation7 + $0x380] sm:$0xff] }
 0xaf6   :  { %v5335_v35 = vpop.eup %5334 }
 0xaf7   :  { %5340 = vrcp.f32 %v3712_v13  ;;  %v3718_v6 = vadd.f32 1.0, %v5335_v35  ;;  %v5337_v49 = vpop.eup %5336  ;;  %v7304_v13 = vld [vmem:[#allocation7 + $0x368] sm:$0xff]  ;;  %v7308_v35 = vld [vmem:[#allocation7 + $0x360] sm:$0xff] }
 0xaf8   :  { %v5339_v18 = vpop.eup %5338 }
 0xaf9   :  { %5342 = vrcp.f32 %v3718_v6  ;;  %v3725_v17 = vadd.f32 1.0, %v5339_v18  ;;  %v7312_v6 = vld [vmem:[#allocation7 + $0x348] sm:$0xff] }
 0xafa   :  { %v7320_v18 = vld [vmem:[#allocation7 + $0x328] sm:$0xff] }
 0xafb   :  { %5344 = vrcp.f32 %v3725_v17  ;;  %v7340_v17 = vld [vmem:[#allocation7 + $0x2e0] sm:$0xff] }
 0xb04   :  { %v5341_v24 = vpop.eup %5340 }
 0xb05   :  { %v3729_v36 = vmul.f32 %v5341_v24, %v5337_v49  ;;  %v7316_v49 = vld [vmem:[#allocation7 + $0x340] sm:$0xff] }
 0xb06   :  { %v5343_v54 = vpop.eup %5342  ;;  %v7324_v24 = vld [vmem:[#allocation7 + $0x320] sm:$0xff] }
 0xb07   :  { %v3728_v11 = vmul.f32 %v5343_v54, %v3558_v5  ;;  %v7332_v54 = vld [vmem:[#allocation7 + $0x300] sm:$0xff] }
 0xb08   :  { %v5345_v23 = vpop.eup %5344 }
 0xb09   :  { %v3730_v25 = vadd.f32 %v3729_v36, %v3728_v11  ;;  %v7328_v36 = vld [vmem:[#allocation7 + $0x308] sm:$0xff] }
 0xb0a   :  { %v7344_v11 = vld [vmem:[#allocation7 + $0x2c8] sm:$0xff] }
 0xb0b   :  { %5346 = vtanh.f32 %v3730_v25  ;;  %v7265_v14 = vsel %vm1385_vm10, %v3730_v25, %v3558_v5  ;;  %v7336_v5 = vld [vmem:[#allocation7 + $0x2e8] sm:$0xff]  ;;  %v7348_v25 = vld [vmem:[#allocation7 + $0x2c0] sm:$0xff] }
 0xb18   :  { %v5347_v2 = vpop.eup %5346 }
 0xb19   :  { %v3732_v8 = vmul.f32 %v5347_v2, %v5345_v23  ;;  %v7356_v23 = vld [vmem:[#allocation7 + $0x2a0] sm:$0xff]  ;;  %v7360_v2 = vld [vmem:[#allocation7 + $0x288] sm:$0xff] }
 0xb1a   :  { %8370 = vst [vmem:[#allocation22_spill] sm:$0xff] %v7360_v2 }
 0xb1b   :  { %v7272_v29 = vsel %vm1385_vm10, %v3732_v8, %v3557_v15  ;;  %v7364_v8 = vld [vmem:[#allocation7 + $0x280] sm:$0xff]  ;;  %v7368_v15 = vld [vmem:[#allocation7 + $0x268] sm:$0xff] }
 0xb1c   :  { %3804 = vmatmul.mubr.f32.vlgmr.msra.gmra.mxu0 %v7272_v29  ;;  %3875 = vmatmul.mubr.f32.vlgmr.msra.gmra.mxu1 %v7272_v29  ;;  %8371 = vst [vmem:[#allocation44_spill] sm:$0xff] %v7364_v8  ;;  %8372 = vst [vmem:[#allocation23_spill] sm:$0xff] %v7368_v15 }
 0xb1d   :  { %3916 = vmatpush1.msra.mxu0 %v7276_v22  ;;  %3987 = vmatpush1.msra.mxu1 %v6944_v38 }
 0xb1e   :  { %3917 = vmatprep.subr.mxu0 %v7280_v37  ;;  %3988 = vmatprep.subr.mxu1 %v6947_v31 }
 0xb1f   :  { %3918 = vmatpush1.msra.mxu0 %v7284_v60  ;;  %3989 = vmatpush1.msra.mxu1 %v6954_v62 }
 0xb20   :  { %3919 = vmatprep.subr.mxu0 %v7288_v16  ;;  %3990 = vmatprep.subr.mxu1 %v6958_v10 }
 0xb21   :  { %3920 = vmatpush1.msra.mxu0 %v7292_v43  ;;  %3991 = vmatpush1.msra.mxu1 %v6961_v32 }
 0xb22   :  { %3921 = vmatprep.subr.mxu0 %v7296_v57  ;;  %3992 = vmatprep.subr.mxu1 %v6965_v39 }
 0xb23   :  { %3922 = vmatpush1.msra.mxu0 %v7300_v9  ;;  %3993 = vmatpush1.msra.mxu1 %v6970_v59 }
 0xb24   :  { %3923 = vmatprep.subr.mxu0 %v7304_v13  ;;  %3994 = vmatprep.subr.mxu1 %v6974_v44 }
 0xb25   :  { %3924 = vmatpush1.msra.mxu0 %v7308_v35  ;;  %3995 = vmatpush1.msra.mxu1 %v6977_v48 }
 0xb26   :  { %3925 = vmatprep.subr.mxu0 %v7312_v6  ;;  %3996 = vmatprep.subr.mxu1 %v6981_v42 }
 0xb27   :  { %3926 = vmatpush1.msra.mxu0 %v7316_v49  ;;  %3997 = vmatpush1.msra.mxu1 %v6986_v61 }
 0xb28   :  { %3927 = vmatprep.subr.mxu0 %v7320_v18  ;;  %3998 = vmatprep.subr.mxu1 %v6990_v46 }
 0xb29   :  { %3928 = vmatpush1.msra.mxu0 %v7324_v24  ;;  %3999 = vmatpush1.msra.mxu1 %v6993_v47 }
 0xb2a   :  { %3929 = vmatprep.subr.mxu0 %v7328_v36  ;;  %4000 = vmatprep.subr.mxu1 %v6997_v55 }
 0xb2b   :  { %3930 = vmatpush1.msra.mxu0 %v7332_v54  ;;  %4001 = vmatpush1.msra.mxu1 %v7002_v0 }
 0xb2c   :  { %3931 = vmatprep.subr.mxu0 %v7336_v5  ;;  %4002 = vmatprep.subr.mxu1 %v7006_v58 }
 0xb2d   :  { %3932 = vmatpush1.msra.mxu0 %v7340_v17  ;;  %4003 = vmatpush1.msra.mxu1 %v7009_v1 }
 0xb2e   :  { %3933 = vmatprep.subr.mxu0 %v7344_v11  ;;  %4004 = vmatprep.subr.mxu1 %v7012_v4 }
 0xb2f   :  { %3934 = vmatpush1.msra.mxu0 %v7348_v25  ;;  %4005 = vmatpush1.msra.mxu1 %v7016_v33 }
 0xb30   :  { %3935 = vmatprep.subr.mxu0 %v7352_v27  ;;  %4006 = vmatprep.subr.mxu1 %v8340_v12 }
 0xb31   :  { %3936 = vmatpush1.msra.mxu0 %v7356_v23  ;;  %4007 = vmatpush1.msra.mxu1 %v8342_v28 }
 0xb32   :  { %3937 = vmatprep.subr.mxu0 %v7360_v2  ;;  %4008 = vmatprep.subr.mxu1 %v8344_v34  ;;  %v7376_v2 = vld [vmem:[#allocation7 + $0x248] sm:$0xff] }
 0xb33   :  { %3938 = vmatpush1.msra.mxu0 %v7364_v8  ;;  %4009 = vmatpush1.msra.mxu1 %v8346_v26  ;;  %8374 = vst [vmem:[#allocation47_spill] sm:$0xff] %v7376_v2  ;;  %v7380_v8 = vld [vmem:[#allocation7 + $0x240] sm:$0xff] }
 0xb34   :  { %3939 = vmatprep.subr.mxu0 %v7368_v15  ;;  %4010 = vmatprep.subr.mxu1 %v8348_v50  ;;  %8375 = vst [vmem:[#allocation45_spill] sm:$0xff] %v7380_v8  ;;  %v7384_v15 = vld [vmem:[#allocation7 + $0x228] sm:$0xff]  ;;  %v8382_v50 = vld [vmem:[#allocation62_spill] sm:$0xff] }
 0xb35   :  { %3940 = vmatpush1.msra.mxu0 %v7372_v19  ;;  %4011 = vmatpush1.msra.mxu1 %v8350_v3  ;;  %8376 = vst [vmem:[#allocation17_spill] sm:$0xff] %v7384_v15  ;;  %v7388_v19 = vld [vmem:[#allocation7 + $0x220] sm:$0xff] }
 0xb36   :  { %3941 = vmatprep.subr.mxu0 %v7376_v2  ;;  %4012 = vmatprep.subr.mxu1 %v8352_v53  ;;  %8377 = vst [vmem:[#allocation18_spill] sm:$0xff] %v7388_v19  ;;  %v7392_v2 = vld [vmem:[#allocation7 + $0x208] sm:$0xff] }
 0xb37   :  { %3942 = vmatpush1.msra.mxu0 %v7380_v8  ;;  %4013 = vmatpush1.msra.mxu1 %v8354_v40  ;;  %8378 = vst [vmem:[#allocation48_spill] sm:$0xff] %v7392_v2  ;;  %v7396_v8 = vld [vmem:[#allocation7 + $0x200] sm:$0xff] }
 0xb38   :  { %3943 = vmatprep.subr.mxu0 %v7384_v15  ;;  %4014 = vmatprep.subr.mxu1 %v8356_v45  ;;  %8379 = vst [vmem:[#allocation50_spill] sm:$0xff] %v7396_v8 }
 0xb39   :  { %3944 = vmatpush1.msra.mxu0 %v7388_v19  ;;  %4015 = vmatpush1.msra.mxu1 %v8358_v56  ;;  %v8380_v56 = vld [vmem:[#allocation14_spill] sm:$0xff] }
 0xb3a   :  { %3945 = vmatprep.subr.mxu0 %v7392_v2  ;;  %4016 = vmatprep.subr.mxu1 %v8360_v63  ;;  %v3139_v19 = vadd.f32 %v8380_v56, %v7139_v30  ;;  %v8381_v63 = vld [vmem:[#allocation52_spill] sm:$0xff] }
 0xb3b   :  { %3946 = vmatpush1.msra.mxu0 %v7396_v8  ;;  %3979 = vmatprep.mubr.f32.mxu0 %v8362_v51  ;;  %v3141_v45 = vadd.f32 %v8381_v63, %v8367_v21 }
 0xb3c   :  { %4017 = vmatpush1.msra.mxu1 %v8363_v7  ;;  %4050 = vmatprep.mubr.f32.mxu1 %v8362_v51 }
 0xb3d   :  { %4091 = vmatprep.subr.mxu0 %v7250_v20  ;;  %4162 = vmatprep.subr.mxu1 %v8365_v52 }
 0xbdc   :  { %v3805_v2 = vpop.f32.mrf.mxu0  ;;  %v3876_v3 = vpop.f32.mrf.mxu1 }
 0xbdd   :  { %v3881_v15 = vadd.f32 %v3805_v2, %v3139_v19  ;;  %v3883_v52 = vadd.f32 %v3876_v3, %v8382_v50  ;;  %v8410_v50 = vld [vmem:[#allocation61_spill] sm:$0xff] }
 0xbde   :  { %v3807_v40 = vpop.f32.mrf.mxu0  ;;  %v3878_v51 = vpop.f32.mrf.mxu1 }
 0xbdf   :  { %v4968_v8 = vmul.f32 -1.442695, %v3881_v15  ;;  %v3882_v53 = vadd.f32 %v3807_v40, %v3141_v45  ;;  %v3884_v20 = vadd.f32 %v3878_v51, %v7153_v41 }
 0xbe1   :  { %5348 = vpow2.f32 %v4968_v8  ;;  %v4969_v7 = vmul.f32 -1.442695, %v3882_v53  ;;  %v4970_v26 = vmul.f32 -1.442695, %v3884_v20  ;;  %v8405_v20 = vld [vmem:[#allocation41_spill] sm:$0xff] }
 0xbe3   :  { %5350 = vpow2.f32 %v4969_v7 }
 0xbe4   :  { %5352 = vtanh.f32 %v3883_v52  ;;  %v8406_v52 = vld [vmem:[#allocation21_spill] sm:$0xff] }
 0xbe5   :  { %5354 = vpow2.f32 %v4970_v26 }
 0xbee   :  { %v5349_v34 = vpop.eup %5348 }
 0xbef   :  { %v3888_v56 = vadd.f32 1.0, %v5349_v34 }
 0xbf0   :  { %v5351_v30 = vpop.eup %5350 }
 0xbf1   :  { %5356 = vrcp.f32 %v3888_v56  ;;  %v3894_v19 = vadd.f32 1.0, %v5351_v30  ;;  %v5353_v63 = vpop.eup %5352 }
 0xbf2   :  { %v5355_v40 = vpop.eup %5354 }
 0xbf3   :  { %5358 = vrcp.f32 %v3894_v19  ;;  %v3901_v7 = vadd.f32 1.0, %v5355_v40  ;;  %v8409_v19 = vld [vmem:[#allocation55_spill] sm:$0xff] }
 0xbf5   :  { %5360 = vrcp.f32 %v3901_v7 }
 0xbfe   :  { %v5357_v45 = vpop.eup %5356 }
 0xbff   :  { %v3905_v2 = vmul.f32 %v5357_v45, %v5353_v63  ;;  %v3147_v63 = vadd.f32 %v8409_v19, %v8367_v21 }
 0xc00   :  { %v5359_v53 = vpop.eup %5358 }
 0xc01   :  { %v3904_v8 = vmul.f32 %v5359_v53, %v7265_v14 }
 0xc02   :  { %v5361_v26 = vpop.eup %5360 }
 0xc03   :  { %v3906_v41 = vadd.f32 %v3905_v2, %v3904_v8 }
 0xc05   :  { %5362 = vtanh.f32 %v3906_v41  ;;  %v7414_v34 = vsel %vm1632_vm11, %v3906_v41, %v7265_v14  ;;  %v8407_v14 = vld [vmem:[#allocation60_spill] sm:$0xff] }
 0xc12   :  { %v5363_v3 = vpop.eup %5362 }
 0xc13   :  { %v3908_v30 = vmul.f32 %v5363_v3, %v5361_v26  ;;  %v8411_v3 = vld [vmem:[#allocation63_spill] sm:$0xff] }
 0xc15   :  { %v7419_v51 = vsel %vm1632_vm11, %v3908_v30, %v7272_v29  ;;  %v8408_v29 = vld [vmem:[#allocation54_spill] sm:$0xff] }
 0xc16   :  { %3980 = vmatmul.mubr.f32.vlgmr.msra.gmra.mxu0 %v7419_v51  ;;  %4051 = vmatmul.mubr.f32.vlgmr.msra.gmra.mxu1 %v7419_v51  ;;  %v3145_v15 = vadd.f32 %v8408_v29, %v8407_v14 }
 0xc17   :  { %4092 = vmatpush1.msra.mxu0 %v7276_v22  ;;  %4163 = vmatpush1.msra.mxu1 %v6944_v38  ;;  %v8384_v38 = vld [vmem:[#allocation22_spill] sm:$0xff] }
 0xc18   :  { %4093 = vmatprep.subr.mxu0 %v7280_v37  ;;  %4164 = vmatprep.subr.mxu1 %v6947_v31  ;;  %v8385_v31 = vld [vmem:[#allocation24_spill] sm:$0xff] }
 0xc19   :  { %4094 = vmatpush1.msra.mxu0 %v7284_v60  ;;  %4165 = vmatpush1.msra.mxu1 %v6954_v62  ;;  %v8386_v62 = vld [vmem:[#allocation44_spill] sm:$0xff] }
 0xc1a   :  { %4095 = vmatprep.subr.mxu0 %v7288_v16  ;;  %4166 = vmatprep.subr.mxu1 %v6958_v10  ;;  %v8387_v10 = vld [vmem:[#allocation25_spill] sm:$0xff] }
 0xc1b   :  { %4096 = vmatpush1.msra.mxu0 %v7292_v43  ;;  %4167 = vmatpush1.msra.mxu1 %v6961_v32  ;;  %v8388_v32 = vld [vmem:[#allocation23_spill] sm:$0xff] }
 0xc1c   :  { %4097 = vmatprep.subr.mxu0 %v7296_v57  ;;  %4168 = vmatprep.subr.mxu1 %v6965_v39  ;;  %v8389_v39 = vld [vmem:[#allocation26_spill] sm:$0xff] }
 0xc1d   :  { %4098 = vmatpush1.msra.mxu0 %v7300_v9  ;;  %4169 = vmatpush1.msra.mxu1 %v6970_v59  ;;  %v8390_v59 = vld [vmem:[#allocation46_spill] sm:$0xff] }
 0xc1e   :  { %4099 = vmatprep.subr.mxu0 %v7304_v13  ;;  %4170 = vmatprep.subr.mxu1 %v6974_v44  ;;  %v8391_v44 = vld [vmem:[#allocation27_spill] sm:$0xff] }
 0xc1f   :  { %4100 = vmatpush1.msra.mxu0 %v7308_v35  ;;  %4171 = vmatpush1.msra.mxu1 %v6977_v48  ;;  %v8392_v48 = vld [vmem:[#allocation47_spill] sm:$0xff] }
 0xc20   :  { %4101 = vmatprep.subr.mxu0 %v7312_v6  ;;  %4172 = vmatprep.subr.mxu1 %v6981_v42  ;;  %v8393_v42 = vld [vmem:[#allocation28_spill] sm:$0xff] }
 0xc21   :  { %4102 = vmatpush1.msra.mxu0 %v7316_v49  ;;  %4173 = vmatpush1.msra.mxu1 %v6986_v61  ;;  %v8394_v61 = vld [vmem:[#allocation45_spill] sm:$0xff] }
 0xc22   :  { %4103 = vmatprep.subr.mxu0 %v7320_v18  ;;  %4174 = vmatprep.subr.mxu1 %v6990_v46  ;;  %v8395_v46 = vld [vmem:[#allocation29_spill] sm:$0xff] }
 0xc23   :  { %4104 = vmatpush1.msra.mxu0 %v7324_v24  ;;  %4175 = vmatpush1.msra.mxu1 %v6993_v47  ;;  %v8396_v47 = vld [vmem:[#allocation17_spill] sm:$0xff] }
 0xc24   :  { %4105 = vmatprep.subr.mxu0 %v7328_v36  ;;  %4176 = vmatprep.subr.mxu1 %v6997_v55  ;;  %v8397_v55 = vld [vmem:[#allocation30_spill] sm:$0xff] }
 0xc25   :  { %4106 = vmatpush1.msra.mxu0 %v7332_v54  ;;  %4177 = vmatpush1.msra.mxu1 %v7002_v0  ;;  %v8398_v0 = vld [vmem:[#allocation18_spill] sm:$0xff] }
 0xc26   :  { %4107 = vmatprep.subr.mxu0 %v7336_v5  ;;  %4178 = vmatprep.subr.mxu1 %v7006_v58  ;;  %v8399_v58 = vld [vmem:[#allocation31_spill] sm:$0xff] }
 0xc27   :  { %4108 = vmatpush1.msra.mxu0 %v7340_v17  ;;  %4179 = vmatpush1.msra.mxu1 %v7009_v1  ;;  %v8400_v1 = vld [vmem:[#allocation48_spill] sm:$0xff] }
 0xc28   :  { %4109 = vmatprep.subr.mxu0 %v7344_v11  ;;  %4180 = vmatprep.subr.mxu1 %v7012_v4  ;;  %v8401_v4 = vld [vmem:[#allocation32_spill] sm:$0xff] }
 0xc29   :  { %4110 = vmatpush1.msra.mxu0 %v7348_v25  ;;  %4181 = vmatpush1.msra.mxu1 %v7016_v33  ;;  %v8402_v33 = vld [vmem:[#allocation50_spill] sm:$0xff] }
 0xc2a   :  { %4111 = vmatprep.subr.mxu0 %v7352_v27  ;;  %4182 = vmatprep.subr.mxu1 %v8340_v12  ;;  %v8403_v12 = vmov 0.0  }
 0xc2b   :  { %4112 = vmatpush1.msra.mxu0 %v7356_v23  ;;  %4183 = vmatpush1.msra.mxu1 %v8342_v28  ;;  %v8404_v28 = vld [vmem:[#allocation33_spill] sm:$0xff] }
 0xc2c   :  { %4113 = vmatprep.subr.mxu0 %v8384_v38  ;;  %4184 = vmatprep.subr.mxu1 %v8385_v31 }
 0xc2d   :  { %4114 = vmatpush1.msra.mxu0 %v8386_v62  ;;  %4185 = vmatpush1.msra.mxu1 %v8387_v10 }
 0xc2e   :  { %4115 = vmatprep.subr.mxu0 %v8388_v32  ;;  %4186 = vmatprep.subr.mxu1 %v8389_v39 }
 0xc2f   :  { %4116 = vmatpush1.msra.mxu0 %v8390_v59  ;;  %4187 = vmatpush1.msra.mxu1 %v8391_v44 }
 0xc30   :  { %4117 = vmatprep.subr.mxu0 %v8392_v48  ;;  %4188 = vmatprep.subr.mxu1 %v8393_v42 }
 0xc31   :  { %4118 = vmatpush1.msra.mxu0 %v8394_v61  ;;  %4189 = vmatpush1.msra.mxu1 %v8395_v46 }
 0xc32   :  { %4119 = vmatprep.subr.mxu0 %v8396_v47  ;;  %4190 = vmatprep.subr.mxu1 %v8397_v55 }
 0xc33   :  { %4120 = vmatpush1.msra.mxu0 %v8398_v0  ;;  %4191 = vmatpush1.msra.mxu1 %v8399_v58 }
 0xc34   :  { %4121 = vmatprep.subr.mxu0 %v8400_v1  ;;  %4192 = vmatprep.subr.mxu1 %v8401_v4 }
 0xc35   :  { %4122 = vmatpush1.msra.mxu0 %v8402_v33  ;;  %4155 = vmatprep.mubr.f32.mxu0 %v8403_v12 }
 0xc36   :  { %4193 = vmatpush1.msra.mxu1 %v8404_v28  ;;  %4226 = vmatprep.mubr.f32.mxu1 %v8403_v12 }
 0xc37   :  { %4267 = vmatprep.subr.mxu0 %v8405_v20  ;;  %4338 = vmatprep.subr.mxu1 %v8406_v52 }
 0xcd6   :  { %v3981_v56 = vpop.f32.mrf.mxu0  ;;  %v4052_v7 = vpop.f32.mrf.mxu1 }
 0xcd7   :  { %v4057_v40 = vadd.f32 %v3981_v56, %v3145_v15  ;;  %v4059_v30 = vadd.f32 %v4052_v7, %v8411_v3  ;;  %v7521_v7 = vld [vmem:[#allocation7 + $0x3b8] sm:$0xff]  ;;  %v7541_v3 = vld [vmem:[#allocation7 + $0x370] sm:$0xff] }
 0xcd8   :  { %v3983_v45 = vpop.f32.mrf.mxu0  ;;  %v4054_v41 = vpop.f32.mrf.mxu1  ;;  %v7601_v56 = vld [vmem:[#allocation7 + $0x278] sm:$0xff] }
 0xcd9   :  { %v4971_v2 = vmul.f32 -1.442695, %v4057_v40  ;;  %v4058_v53 = vadd.f32 %v3983_v45, %v3147_v63  ;;  %v4060_v26 = vadd.f32 %v4054_v41, %v8410_v50  ;;  %v7529_v41 = vld [vmem:[#allocation7 + $0x398] sm:$0xff]  ;;  %v7533_v50 = vld [vmem:[#allocation7 + $0x390] sm:$0xff]  ;;  %8415 = vst [vmem:[#allocation19_spill] sm:$0xff] %v7601_v56 }
 0xcdb   :  { %5364 = vpow2.f32 %v4971_v2  ;;  %v4972_v8 = vmul.f32 -1.442695, %v4058_v53  ;;  %v4973_v31 = vmul.f32 -1.442695, %v4060_v26  ;;  %v7509_v53 = vld [vmem:[#allocation7 + $0x3f0] sm:$0xff]  ;;  %v7537_v26 = vld [vmem:[#allocation7 + $0x378] sm:$0xff] }
 0xcdd   :  { %5366 = vpow2.f32 %v4972_v8  ;;  %v7525_v8 = vld [vmem:[#allocation7 + $0x3b0] sm:$0xff] }
 0xcde   :  { %5368 = vtanh.f32 %v4059_v30  ;;  %v7545_v30 = vld [vmem:[#allocation7 + $0x358] sm:$0xff] }
 0xcdf   :  { %5370 = vpow2.f32 %v4973_v31  ;;  %v7549_v31 = vld [vmem:[#allocation7 + $0x350] sm:$0xff] }
 0xce8   :  { %v5365_v10 = vpop.eup %5364 }
 0xce9   :  { %v4064_v39 = vadd.f32 1.0, %v5365_v10  ;;  %v7553_v10 = vld [vmem:[#allocation7 + $0x338] sm:$0xff] }
 0xcea   :  { %v5367_v44 = vpop.eup %5366 }
 0xceb   :  { %5372 = vrcp.f32 %v4064_v39  ;;  %v4070_v42 = vadd.f32 1.0, %v5367_v44  ;;  %v5369_v46 = vpop.eup %5368  ;;  %v7557_v39 = vld [vmem:[#allocation7 + $0x330] sm:$0xff]  ;;  %v7561_v44 = vld [vmem:[#allocation7 + $0x318] sm:$0xff] }
 0xcec   :  { %v5371_v55 = vpop.eup %5370 }
 0xced   :  { %5374 = vrcp.f32 %v4070_v42  ;;  %v4077_v52 = vadd.f32 1.0, %v5371_v55  ;;  %v7565_v42 = vld [vmem:[#allocation7 + $0x310] sm:$0xff] }
 0xcee   :  { %v7573_v55 = vld [vmem:[#allocation7 + $0x2f0] sm:$0xff] }
 0xcef   :  { %5376 = vrcp.f32 %v4077_v52  ;;  %v7589_v52 = vld [vmem:[#allocation7 + $0x2b0] sm:$0xff] }
 0xcf8   :  { %v5373_v58 = vpop.eup %5372 }
 0xcf9   :  { %v4081_v4 = vmul.f32 %v5373_v58, %v5369_v46  ;;  %v7569_v46 = vld [vmem:[#allocation7 + $0x2f8] sm:$0xff] }
 0xcfa   :  { %v5375_v28 = vpop.eup %5374  ;;  %v7577_v58 = vld [vmem:[#allocation7 + $0x2d8] sm:$0xff] }
 0xcfb   :  { %v4080_v29 = vmul.f32 %v5375_v28, %v7414_v34  ;;  %v7585_v28 = vld [vmem:[#allocation7 + $0x2b8] sm:$0xff] }
 0xcfc   :  { %v5377_v63 = vpop.eup %5376 }
 0xcfd   :  { %v4082_v15 = vadd.f32 %v4081_v4, %v4080_v29  ;;  %v7581_v4 = vld [vmem:[#allocation7 + $0x2d0] sm:$0xff]  ;;  %v7593_v29 = vld [vmem:[#allocation7 + $0x298] sm:$0xff] }
 0xcfe   :  { %8413 = vst [vmem:[#allocation51_spill] sm:$0xff] %v7593_v29 }
 0xcff   :  { %5378 = vtanh.f32 %v4082_v15  ;;  %v7499_v19 = vsel %vm1879_vm12, %v4082_v15, %v7414_v34  ;;  %v7513_v34 = vld [vmem:[#allocation7 + $0x3d8] sm:$0xff]  ;;  %v7597_v15 = vld [vmem:[#allocation7 + $0x290] sm:$0xff] }
 0xd00   :  { %8414 = vst [vmem:[#allocation49_spill] sm:$0xff] %v7597_v15 }
 0xd0c   :  { %v5379_v40 = vpop.eup %5378 }
 0xd0d   :  { %v4084_v45 = vmul.f32 %v5379_v40, %v5377_v63  ;;  %v7605_v63 = vld [vmem:[#allocation7 + $0x270] sm:$0xff]  ;;  %v7609_v40 = vld [vmem:[#allocation7 + $0x258] sm:$0xff] }
 0xd0e   :  { %8416 = vst [vmem:[#allocation34_spill] sm:$0xff] %v7605_v63  ;;  %8417 = vst [vmem:[#allocation39_spill] sm:$0xff] %v7609_v40 }
 0xd0f   :  { %v7504_v2 = vsel %vm1879_vm12, %v4084_v45, %v7419_v51  ;;  %v7517_v51 = vld [vmem:[#allocation7 + $0x3d0] sm:$0xff] }
 0xd10   :  { %4156 = vmatmul.mubr.f32.vlgmr.msra.gmra.mxu0 %v7504_v2  ;;  %4227 = vmatmul.mubr.f32.vlgmr.msra.gmra.mxu1 %v7504_v2  ;;  %v7613_v45 = vld [vmem:[#allocation7 + $0x250] sm:$0xff] }
 0xd11   :  { %4268 = vmatpush1.msra.mxu0 %v7276_v22  ;;  %4339 = vmatpush1.msra.mxu1 %v7509_v53  ;;  %8418 = vst [vmem:[#allocation35_spill] sm:$0xff] %v7613_v45 }
 0xd12   :  { %4269 = vmatprep.subr.mxu0 %v7280_v37  ;;  %4340 = vmatprep.subr.mxu1 %v7513_v34 }
 0xd13   :  { %4270 = vmatpush1.msra.mxu0 %v7284_v60  ;;  %4341 = vmatpush1.msra.mxu1 %v7517_v51 }
 0xd14   :  { %4271 = vmatprep.subr.mxu0 %v7288_v16  ;;  %4342 = vmatprep.subr.mxu1 %v7521_v7 }
 0xd15   :  { %4272 = vmatpush1.msra.mxu0 %v7292_v43  ;;  %4343 = vmatpush1.msra.mxu1 %v7525_v8 }
 0xd16   :  { %4273 = vmatprep.subr.mxu0 %v7296_v57  ;;  %4344 = vmatprep.subr.mxu1 %v7529_v41 }
 0xd17   :  { %4274 = vmatpush1.msra.mxu0 %v7300_v9  ;;  %4345 = vmatpush1.msra.mxu1 %v7533_v50 }
 0xd18   :  { %4275 = vmatprep.subr.mxu0 %v7304_v13  ;;  %4346 = vmatprep.subr.mxu1 %v7537_v26 }
 0xd19   :  { %4276 = vmatpush1.msra.mxu0 %v7308_v35  ;;  %4347 = vmatpush1.msra.mxu1 %v7541_v3 }
 0xd1a   :  { %4277 = vmatprep.subr.mxu0 %v7312_v6  ;;  %4348 = vmatprep.subr.mxu1 %v7545_v30 }
 0xd1b   :  { %4278 = vmatpush1.msra.mxu0 %v7316_v49  ;;  %4349 = vmatpush1.msra.mxu1 %v7549_v31 }
 0xd1c   :  { %4279 = vmatprep.subr.mxu0 %v7320_v18  ;;  %4350 = vmatprep.subr.mxu1 %v7553_v10 }
 0xd1d   :  { %4280 = vmatpush1.msra.mxu0 %v7324_v24  ;;  %4351 = vmatpush1.msra.mxu1 %v7557_v39 }
 0xd1e   :  { %4281 = vmatprep.subr.mxu0 %v7328_v36  ;;  %4352 = vmatprep.subr.mxu1 %v7561_v44 }
 0xd1f   :  { %4282 = vmatpush1.msra.mxu0 %v7332_v54  ;;  %4353 = vmatpush1.msra.mxu1 %v7565_v42 }
 0xd20   :  { %4283 = vmatprep.subr.mxu0 %v7336_v5  ;;  %4354 = vmatprep.subr.mxu1 %v7569_v46 }
 0xd21   :  { %4284 = vmatpush1.msra.mxu0 %v7340_v17  ;;  %4355 = vmatpush1.msra.mxu1 %v7573_v55 }
 0xd22   :  { %4285 = vmatprep.subr.mxu0 %v7344_v11  ;;  %4356 = vmatprep.subr.mxu1 %v7577_v58 }
 0xd23   :  { %4286 = vmatpush1.msra.mxu0 %v7348_v25  ;;  %4357 = vmatpush1.msra.mxu1 %v7581_v4 }
 0xd24   :  { %4287 = vmatprep.subr.mxu0 %v7352_v27  ;;  %4358 = vmatprep.subr.mxu1 %v7585_v28 }
 0xd25   :  { %4288 = vmatpush1.msra.mxu0 %v7356_v23  ;;  %4359 = vmatpush1.msra.mxu1 %v7589_v52 }
 0xd26   :  { %4289 = vmatprep.subr.mxu0 %v8384_v38  ;;  %4360 = vmatprep.subr.mxu1 %v7593_v29 }
 0xd27   :  { %4290 = vmatpush1.msra.mxu0 %v8386_v62  ;;  %4361 = vmatpush1.msra.mxu1 %v7597_v15  ;;  %v8427_v62 = vld [vmem:[#allocation36_spill] sm:$0xff] }
 0xd28   :  { %4291 = vmatprep.subr.mxu0 %v8388_v32  ;;  %4362 = vmatprep.subr.mxu1 %v7601_v56  ;;  %v7617_v56 = vld [vmem:[#allocation7 + $0x238] sm:$0xff]  ;;  %v8426_v32 = vld [vmem:[#allocation66_spill] sm:$0xff] }
 0xd29   :  { %4292 = vmatpush1.msra.mxu0 %v8390_v59  ;;  %4363 = vmatpush1.msra.mxu1 %v7605_v63  ;;  %8419 = vst [vmem:[#allocation15_spill] sm:$0xff] %v7617_v56  ;;  %v7621_v63 = vld [vmem:[#allocation7 + $0x230] sm:$0xff] }
 0xd2a   :  { %4293 = vmatprep.subr.mxu0 %v8392_v48  ;;  %4364 = vmatprep.subr.mxu1 %v7609_v40  ;;  %8420 = vst [vmem:[#allocation14_spill] sm:$0xff] %v7621_v63  ;;  %v7625_v40 = vld [vmem:[#allocation7 + $0x218] sm:$0xff] }
 0xd2b   :  { %4294 = vmatpush1.msra.mxu0 %v8394_v61  ;;  %4365 = vmatpush1.msra.mxu1 %v7613_v45  ;;  %8421 = vst [vmem:[#allocation52_spill] sm:$0xff] %v7625_v40 }
 0xd2c   :  { %4295 = vmatprep.subr.mxu0 %v8396_v47  ;;  %4366 = vmatprep.subr.mxu1 %v7617_v56  ;;  %v7630_v47 = vld [vmem:[#allocation7 + $0x210] sm:$0xff] }
 0xd2d   :  { %4296 = vmatpush1.msra.mxu0 %v8398_v0  ;;  %4367 = vmatpush1.msra.mxu1 %v7621_v63  ;;  %8422 = vst [vmem:[#allocation62_spill] sm:$0xff] %v7630_v47  ;;  %v7635_v0 = vld [vmem:[#allocation7 + $0x3f8] sm:$0xff] }
 0xd2e   :  { %4297 = vmatprep.subr.mxu0 %v8400_v1  ;;  %4368 = vmatprep.subr.mxu1 %v7625_v40  ;;  %8423 = vst [vmem:[#allocation38_spill] sm:$0xff] %v7635_v0  ;;  %v8424_v1 = vld [vmem:[#allocation53_spill] sm:$0xff] }
 0xd2f   :  { %4298 = vmatpush1.msra.mxu0 %v8402_v33  ;;  %4331 = vmatprep.mubr.f32.mxu0 %v8403_v12  ;;  %v3151_v63 = vadd.f32 %v8424_v1, %v8407_v14  ;;  %v8425_v33 = vld [vmem:[#allocation56_spill] sm:$0xff] }
 0xd30   :  { %4369 = vmatpush1.msra.mxu1 %v7630_v47  ;;  %4402 = vmatprep.mubr.f32.mxu1 %v8403_v12  ;;  %v3153_v56 = vadd.f32 %v8425_v33, %v8367_v21 }
 0xd31   :  { %4443 = vmatprep.subr.mxu0 %v8405_v20  ;;  %4514 = vmatprep.subr.mxu1 %v7635_v0 }
 0xdd0   :  { %v4157_v40 = vpop.f32.mrf.mxu0  ;;  %v4228_v47 = vpop.f32.mrf.mxu1 }
 0xdd1   :  { %v4233_v45 = vadd.f32 %v4157_v40, %v3151_v63  ;;  %v4235_v0 = vadd.f32 %v4228_v47, %v8427_v62  ;;  %v8444_v62 = vld [vmem:[#allocation14_spill] sm:$0xff] }
 0xdd2   :  { %v4159_v61 = vpop.f32.mrf.mxu0  ;;  %v4230_v20 = vpop.f32.mrf.mxu1 }
 0xdd3   :  { %v4974_v48 = vmul.f32 -1.442695, %v4233_v45  ;;  %v4234_v59 = vadd.f32 %v4159_v61, %v3153_v56  ;;  %v4236_v15 = vadd.f32 %v4230_v20, %v8426_v32  ;;  %v8433_v45 = vld [vmem:[#allocation23_spill] sm:$0xff] }
 0xdd5   :  { %5380 = vpow2.f32 %v4974_v48  ;;  %v4975_v12 = vmul.f32 -1.442695, %v4234_v59  ;;  %v4976_v29 = vmul.f32 -1.442695, %v4236_v15  ;;  %v8432_v15 = vld [vmem:[#allocation49_spill] sm:$0xff] }
 0xdd7   :  { %5382 = vpow2.f32 %v4975_v12 }
 0xdd8   :  { %5384 = vtanh.f32 %v4235_v0 }
 0xdd9   :  { %5386 = vpow2.f32 %v4976_v29  ;;  %v8431_v29 = vld [vmem:[#allocation44_spill] sm:$0xff] }
 0xde2   :  { %v5381_v38 = vpop.eup %5380 }
 0xde3   :  { %v4240_v1 = vadd.f32 1.0, %v5381_v38 }
 0xde4   :  { %v5383_v14 = vpop.eup %5382 }
 0xde5   :  { %5388 = vrcp.f32 %v4240_v1  ;;  %v4246_v33 = vadd.f32 1.0, %v5383_v14  ;;  %v5385_v63 = vpop.eup %5384  ;;  %v8434_v1 = vld [vmem:[#allocation19_spill] sm:$0xff] }
 0xde6   :  { %v5387_v61 = vpop.eup %5386 }
 0xde7   :  { %5390 = vrcp.f32 %v4246_v33  ;;  %v4253_v12 = vadd.f32 1.0, %v5387_v61  ;;  %v8435_v33 = vld [vmem:[#allocation46_spill] sm:$0xff]  ;;  %v8437_v61 = vld [vmem:[#allocation47_spill] sm:$0xff] }
 0xde9   :  { %5392 = vrcp.f32 %v4253_v12  ;;  %v8441_v12 = vld [vmem:[#allocation17_spill] sm:$0xff] }
 0xdf2   :  { %v5389_v48 = vpop.eup %5388 }
 0xdf3   :  { %v4257_v56 = vmul.f32 %v5389_v48, %v5385_v63  ;;  %v8436_v63 = vld [vmem:[#allocation34_spill] sm:$0xff]  ;;  %v8438_v48 = vld [vmem:[#allocation39_spill] sm:$0xff] }
 0xdf4   :  { %v5391_v59 = vpop.eup %5390 }
 0xdf5   :  { %v4256_v40 = vmul.f32 %v5391_v59, %v7499_v19  ;;  %v8440_v59 = vld [vmem:[#allocation35_spill] sm:$0xff] }
 0xdf6   :  { %v5393_v47 = vpop.eup %5392 }
 0xdf7   :  { %v4258_v32 = vadd.f32 %v4257_v56, %v4256_v40  ;;  %v8439_v56 = vld [vmem:[#allocation45_spill] sm:$0xff]  ;;  %v8442_v40 = vld [vmem:[#allocation15_spill] sm:$0xff] }
 0xdf9   :  { %5394 = vtanh.f32 %v4258_v32  ;;  %v7648_v38 = vsel %vm2126_vm13, %v4258_v32, %v7499_v19  ;;  %v8429_v19 = vld [vmem:[#allocation22_spill] sm:$0xff] }
 0xdfa   :  { %v8443_v32 = vld [vmem:[#allocation18_spill] sm:$0xff] }
 0xe06   :  { %v5395_v0 = vpop.eup %5394 }
 0xe07   :  { %v4260_v20 = vmul.f32 %v5395_v0, %v5393_v47  ;;  %v8445_v47 = vld [vmem:[#allocation48_spill] sm:$0xff] }
 0xe08   :  { %v8446_v0 = vld [vmem:[#allocation52_spill] sm:$0xff] }
 0xe09   :  { %v7653_v14 = vsel %vm2126_vm13, %v4260_v20, %v7504_v2  ;;  %v8430_v2 = vld [vmem:[#allocation51_spill] sm:$0xff]  ;;  %v8447_v20 = vld [vmem:[#allocation50_spill] sm:$0xff] }
 0xe0a   :  { %4332 = vmatmul.mubr.f32.vlgmr.msra.gmra.mxu0 %v7653_v14  ;;  %4403 = vmatmul.mubr.f32.vlgmr.msra.gmra.mxu1 %v7653_v14 }
 0xe0b   :  { %4444 = vmatpush1.msra.mxu0 %v7276_v22  ;;  %4515 = vmatpush1.msra.mxu1 %v7509_v53 }
 0xe0c   :  { %4445 = vmatprep.subr.mxu0 %v7280_v37  ;;  %4516 = vmatprep.subr.mxu1 %v7513_v34 }
 0xe0d   :  { %4446 = vmatpush1.msra.mxu0 %v7284_v60  ;;  %4517 = vmatpush1.msra.mxu1 %v7517_v51 }
 0xe0e   :  { %4447 = vmatprep.subr.mxu0 %v7288_v16  ;;  %4518 = vmatprep.subr.mxu1 %v7521_v7 }
 0xe0f   :  { %4448 = vmatpush1.msra.mxu0 %v7292_v43  ;;  %4519 = vmatpush1.msra.mxu1 %v7525_v8 }
 0xe10   :  { %4449 = vmatprep.subr.mxu0 %v7296_v57  ;;  %4520 = vmatprep.subr.mxu1 %v7529_v41 }
 0xe11   :  { %4450 = vmatpush1.msra.mxu0 %v7300_v9  ;;  %4521 = vmatpush1.msra.mxu1 %v7533_v50 }
 0xe12   :  { %4451 = vmatprep.subr.mxu0 %v7304_v13  ;;  %4522 = vmatprep.subr.mxu1 %v7537_v26 }
 0xe13   :  { %4452 = vmatpush1.msra.mxu0 %v7308_v35  ;;  %4523 = vmatpush1.msra.mxu1 %v7541_v3 }
 0xe14   :  { %4453 = vmatprep.subr.mxu0 %v7312_v6  ;;  %4524 = vmatprep.subr.mxu1 %v7545_v30 }
 0xe15   :  { %4454 = vmatpush1.msra.mxu0 %v7316_v49  ;;  %4525 = vmatpush1.msra.mxu1 %v7549_v31 }
 0xe16   :  { %4455 = vmatprep.subr.mxu0 %v7320_v18  ;;  %4526 = vmatprep.subr.mxu1 %v7553_v10 }
 0xe17   :  { %4456 = vmatpush1.msra.mxu0 %v7324_v24  ;;  %4527 = vmatpush1.msra.mxu1 %v7557_v39 }
 0xe18   :  { %4457 = vmatprep.subr.mxu0 %v7328_v36  ;;  %4528 = vmatprep.subr.mxu1 %v7561_v44 }
 0xe19   :  { %4458 = vmatpush1.msra.mxu0 %v7332_v54  ;;  %4529 = vmatpush1.msra.mxu1 %v7565_v42 }
 0xe1a   :  { %4459 = vmatprep.subr.mxu0 %v7336_v5  ;;  %4530 = vmatprep.subr.mxu1 %v7569_v46 }
 0xe1b   :  { %4460 = vmatpush1.msra.mxu0 %v7340_v17  ;;  %4531 = vmatpush1.msra.mxu1 %v7573_v55 }
 0xe1c   :  { %4461 = vmatprep.subr.mxu0 %v7344_v11  ;;  %4532 = vmatprep.subr.mxu1 %v7577_v58 }
 0xe1d   :  { %4462 = vmatpush1.msra.mxu0 %v7348_v25  ;;  %4533 = vmatpush1.msra.mxu1 %v7581_v4 }
 0xe1e   :  { %4463 = vmatprep.subr.mxu0 %v7352_v27  ;;  %4534 = vmatprep.subr.mxu1 %v7585_v28 }
 0xe1f   :  { %4464 = vmatpush1.msra.mxu0 %v7356_v23  ;;  %4535 = vmatpush1.msra.mxu1 %v7589_v52 }
 0xe20   :  { %4465 = vmatprep.subr.mxu0 %v8429_v19  ;;  %4536 = vmatprep.subr.mxu1 %v8430_v2 }
 0xe21   :  { %4466 = vmatpush1.msra.mxu0 %v8431_v29  ;;  %4537 = vmatpush1.msra.mxu1 %v8432_v15  ;;  %v8455_v15 = vld [vmem:[#allocation68_spill] sm:$0xff]  ;;  %v8456_v29 = vld [vmem:[#allocation67_spill] sm:$0xff] }
 0xe22   :  { %4467 = vmatprep.subr.mxu0 %v8433_v45  ;;  %4538 = vmatprep.subr.mxu1 %v8434_v1 }
 0xe23   :  { %4468 = vmatpush1.msra.mxu0 %v8435_v33  ;;  %4539 = vmatpush1.msra.mxu1 %v8436_v63 }
 0xe24   :  { %4469 = vmatprep.subr.mxu0 %v8437_v61  ;;  %4540 = vmatprep.subr.mxu1 %v8438_v48  ;;  %v8448_v61 = vmov 0.0   ;;  %v8449_v48 = vld [vmem:[#allocation62_spill] sm:$0xff] }
 0xe25   :  { %4470 = vmatpush1.msra.mxu0 %v8439_v56  ;;  %4541 = vmatpush1.msra.mxu1 %v8440_v59  ;;  %v8450_v59 = vld [vmem:[#allocation41_spill] sm:$0xff] }
 0xe26   :  { %4471 = vmatprep.subr.mxu0 %v8441_v12  ;;  %4542 = vmatprep.subr.mxu1 %v8442_v40  ;;  %v8451_v12 = vld [vmem:[#allocation38_spill] sm:$0xff]  ;;  %v8452_v40 = vld [vmem:[#allocation60_spill] sm:$0xff] }
 0xe27   :  { %4472 = vmatpush1.msra.mxu0 %v8443_v32  ;;  %4543 = vmatpush1.msra.mxu1 %v8444_v62  ;;  %v8453_v32 = vld [vmem:[#allocation58_spill] sm:$0xff] }
 0xe28   :  { %4473 = vmatprep.subr.mxu0 %v8445_v47  ;;  %4544 = vmatprep.subr.mxu1 %v8446_v0  ;;  %v3157_v56 = vadd.f32 %v8453_v32, %v8452_v40  ;;  %v8454_v47 = vld [vmem:[#allocation59_spill] sm:$0xff] }
 0xe29   :  { %4474 = vmatpush1.msra.mxu0 %v8447_v20  ;;  %4507 = vmatprep.mubr.f32.mxu0 %v8448_v61  ;;  %v3159_v63 = vadd.f32 %v8454_v47, %v8367_v21 }
 0xe2a   :  { %4545 = vmatpush1.msra.mxu1 %v8449_v48  ;;  %4578 = vmatprep.mubr.f32.mxu1 %v8448_v61 }
 0xe2b   :  { %4619 = vmatprep.subr.mxu0 %v8450_v59  ;;  %4690 = vmatprep.subr.mxu1 %v8451_v12 }
 0xeca   :  { %v4333_v62 = vpop.f32.mrf.mxu0  ;;  %v4404_v45 = vpop.f32.mrf.mxu1 }
 0xecb   :  { %v4409_v0 = vadd.f32 %v4333_v62, %v3157_v56  ;;  %v4411_v12 = vadd.f32 %v4404_v45, %v8456_v29  ;;  %v4805_v29 = vld [vmem:[#allocation9 + $0x78] sm:$0xff] }
 0xecc   :  { %v4335_v33 = vpop.f32.mrf.mxu0  ;;  %v4406_v61 = vpop.f32.mrf.mxu1 }
 0xecd   :  { %v4977_v20 = vmul.f32 -1.442695, %v4409_v0  ;;  %v4410_v1 = vadd.f32 %v4335_v33, %v3159_v63  ;;  %v4412_v59 = vadd.f32 %v4406_v61, %v8455_v15 }
 0xecf   :  { %5396 = vpow2.f32 %v4977_v20  ;;  %v4978_v48 = vmul.f32 -1.442695, %v4410_v1  ;;  %v4979_v2 = vmul.f32 -1.442695, %v4412_v59 }
 0xed1   :  { %5398 = vpow2.f32 %v4978_v48 }
 0xed2   :  { %5400 = vtanh.f32 %v4411_v12 }
 0xed3   :  { %5402 = vpow2.f32 %v4979_v2 }
 0xedc   :  { %v5397_v19 = vpop.eup %5396 }
 0xedd   :  { %v4416_v32 = vadd.f32 1.0, %v5397_v19 }
 0xede   :  { %v5399_v40 = vpop.eup %5398 }
 0xedf   :  { %5404 = vrcp.f32 %v4416_v32  ;;  %v4422_v56 = vadd.f32 1.0, %v5399_v40  ;;  %v5401_v62 = vpop.eup %5400 }
 0xee0   :  { %v5403_v33 = vpop.eup %5402 }
 0xee1   :  { %5406 = vrcp.f32 %v4422_v56  ;;  %v4429_v48 = vadd.f32 1.0, %v5403_v33 }
 0xee3   :  { %5408 = vrcp.f32 %v4429_v48 }
 0xeec   :  { %v5405_v63 = vpop.eup %5404 }
 0xeed   :  { %v4433_v47 = vmul.f32 %v5405_v63, %v5401_v62 }
 0xeee   :  { %v5407_v1 = vpop.eup %5406 }
 0xeef   :  { %v4432_v0 = vmul.f32 %v5407_v1, %v7648_v38 }
 0xef0   :  { %v5409_v2 = vpop.eup %5408 }
 0xef1   :  { %v4434_v15 = vadd.f32 %v4433_v47, %v4432_v0 }
 0xef3   :  { %5410 = vtanh.f32 %v4434_v15  ;;  %v7733_v19 = vsel %vm2373_vm14, %v4434_v15, %v7648_v38 }
 0xf00   :  { %v5411_v45 = vpop.eup %5410 }
 0xf01   :  { %v4436_v61 = vmul.f32 %v5411_v45, %v5409_v2  ;;  %v4803_v2 = vld [vmem:[#allocation9 + $0x68] sm:$0xff]  ;;  %v4802_v45 = vld [vmem:[#allocation9 + $0x60] sm:$0xff] }
 0xf03   :  { %v7738_v40 = vsel %vm2373_vm14, %v4436_v61, %v7653_v14  ;;  %v4801_v61 = vld [vmem:[#allocation9 + $0x58] sm:$0xff] }
 0xf04   :  { %4508 = vmatmul.mubr.f32.vlgmr.msra.gmra.mxu0 %v7738_v40  ;;  %4579 = vmatmul.mubr.f32.vlgmr.msra.gmra.mxu1 %v7738_v40 }
 0xf05   :  { %4620 = vmatpush1.msra.mxu0 %v7276_v22  ;;  %4691 = vmatpush1.msra.mxu1 %v7509_v53  ;;  %v8458_v22 = vld [vmem:[#allocation22_spill] sm:$0xff]  ;;  %v8479_v53 = vld [vmem:[#allocation60_spill] sm:$0xff] }
 0xf06   :  { %4621 = vmatprep.subr.mxu0 %v7280_v37  ;;  %4692 = vmatprep.subr.mxu1 %v7513_v34  ;;  %v8459_v37 = vld [vmem:[#allocation51_spill] sm:$0xff]  ;;  %v8480_v34 = vld [vmem:[#allocation57_spill] sm:$0xff] }
 0xf07   :  { %4622 = vmatpush1.msra.mxu0 %v7284_v60  ;;  %4693 = vmatpush1.msra.mxu1 %v7517_v51  ;;  %v8460_v60 = vld [vmem:[#allocation44_spill] sm:$0xff]  ;;  %v3163_v51 = vadd.f32 %v8480_v34, %v8479_v53 }
 0xf08   :  { %4623 = vmatprep.subr.mxu0 %v7288_v16  ;;  %4694 = vmatprep.subr.mxu1 %v7521_v7  ;;  %v8461_v16 = vld [vmem:[#allocation49_spill] sm:$0xff] }
 0xf09   :  { %4624 = vmatpush1.msra.mxu0 %v7292_v43  ;;  %4695 = vmatpush1.msra.mxu1 %v7525_v8  ;;  %v8462_v43 = vld [vmem:[#allocation23_spill] sm:$0xff]  ;;  %v8481_v8 = vld [vmem:[#allocation65_spill] sm:$0xff] }
 0xf0a   :  { %4625 = vmatprep.subr.mxu0 %v7296_v57  ;;  %4696 = vmatprep.subr.mxu1 %v7529_v41  ;;  %v8463_v57 = vld [vmem:[#allocation19_spill] sm:$0xff]  ;;  %v3165_v41 = vadd.f32 %v8481_v8, %v8367_v21 }
 0xf0b   :  { %4626 = vmatpush1.msra.mxu0 %v7300_v9  ;;  %4697 = vmatpush1.msra.mxu1 %v7533_v50  ;;  %v8464_v9 = vld [vmem:[#allocation46_spill] sm:$0xff] }
 0xf0c   :  { %4627 = vmatprep.subr.mxu0 %v7304_v13  ;;  %4698 = vmatprep.subr.mxu1 %v7537_v26  ;;  %v8465_v13 = vld [vmem:[#allocation34_spill] sm:$0xff] }
 0xf0d   :  { %4628 = vmatpush1.msra.mxu0 %v7308_v35  ;;  %4699 = vmatpush1.msra.mxu1 %v7541_v3  ;;  %v8466_v35 = vld [vmem:[#allocation47_spill] sm:$0xff] }
 0xf0e   :  { %4629 = vmatprep.subr.mxu0 %v7312_v6  ;;  %4700 = vmatprep.subr.mxu1 %v7545_v30  ;;  %v8467_v6 = vld [vmem:[#allocation39_spill] sm:$0xff] }
 0xf0f   :  { %4630 = vmatpush1.msra.mxu0 %v7316_v49  ;;  %4701 = vmatpush1.msra.mxu1 %v7549_v31  ;;  %v8468_v49 = vld [vmem:[#allocation45_spill] sm:$0xff] }
 0xf10   :  { %4631 = vmatprep.subr.mxu0 %v7320_v18  ;;  %4702 = vmatprep.subr.mxu1 %v7553_v10  ;;  %v8469_v18 = vld [vmem:[#allocation35_spill] sm:$0xff] }
 0xf11   :  { %4632 = vmatpush1.msra.mxu0 %v7324_v24  ;;  %4703 = vmatpush1.msra.mxu1 %v7557_v39  ;;  %v8470_v24 = vld [vmem:[#allocation17_spill] sm:$0xff] }
 0xf12   :  { %4633 = vmatprep.subr.mxu0 %v7328_v36  ;;  %4704 = vmatprep.subr.mxu1 %v7561_v44  ;;  %v8471_v36 = vld [vmem:[#allocation15_spill] sm:$0xff]  ;;  %v8482_v44 = vld [vmem:[#allocation70_spill] sm:$0xff] }
 0xf13   :  { %4634 = vmatpush1.msra.mxu0 %v7332_v54  ;;  %4705 = vmatpush1.msra.mxu1 %v7565_v42  ;;  %v8472_v54 = vld [vmem:[#allocation18_spill] sm:$0xff] }
 0xf14   :  { %4635 = vmatprep.subr.mxu0 %v7336_v5  ;;  %4706 = vmatprep.subr.mxu1 %v7569_v46  ;;  %v8473_v5 = vld [vmem:[#allocation14_spill] sm:$0xff]  ;;  %v8483_v46 = vld [vmem:[#allocation69_spill] sm:$0xff] }
 0xf15   :  { %4636 = vmatpush1.msra.mxu0 %v7340_v17  ;;  %4707 = vmatpush1.msra.mxu1 %v7573_v55  ;;  %v8474_v17 = vld [vmem:[#allocation48_spill] sm:$0xff] }
 0xf16   :  { %4637 = vmatprep.subr.mxu0 %v7344_v11  ;;  %4708 = vmatprep.subr.mxu1 %v7577_v58  ;;  %v8475_v11 = vld [vmem:[#allocation52_spill] sm:$0xff] }
 0xf17   :  { %4638 = vmatpush1.msra.mxu0 %v7348_v25  ;;  %4709 = vmatpush1.msra.mxu1 %v7581_v4  ;;  %v8476_v25 = vld [vmem:[#allocation50_spill] sm:$0xff] }
 0xf18   :  { %4639 = vmatprep.subr.mxu0 %v7352_v27  ;;  %4710 = vmatprep.subr.mxu1 %v7585_v28  ;;  %v8477_v27 = vmov 0.0  }
 0xf19   :  { %4640 = vmatpush1.msra.mxu0 %v7356_v23  ;;  %4711 = vmatpush1.msra.mxu1 %v7589_v52  ;;  %v8478_v23 = vld [vmem:[#allocation62_spill] sm:$0xff] }
 0xf1a   :  { %4641 = vmatprep.subr.mxu0 %v8458_v22  ;;  %4712 = vmatprep.subr.mxu1 %v8459_v37  ;;  %v4799_v22 = vld [vmem:[#allocation9 + $0x48] sm:$0xff]  ;;  %v4798_v37 = vld [vmem:[#allocation9 + $0x40] sm:$0xff] }
 0xf1b   :  { %4642 = vmatpush1.msra.mxu0 %v8460_v60  ;;  %4713 = vmatpush1.msra.mxu1 %v8461_v16  ;;  %v4797_v60 = vld [vmem:[#allocation9 + $0x38] sm:$0xff]  ;;  %v4796_v16 = vld [vmem:[#allocation9 + $0x30] sm:$0xff] }
 0xf1c   :  { %4643 = vmatprep.subr.mxu0 %v8462_v43  ;;  %4714 = vmatprep.subr.mxu1 %v8463_v57  ;;  %v4795_v43 = vld [vmem:[#allocation9 + $0x28] sm:$0xff]  ;;  %v4794_v57 = vld [vmem:[#allocation9 + $0x20] sm:$0xff] }
 0xf1d   :  { %4644 = vmatpush1.msra.mxu0 %v8464_v9  ;;  %4715 = vmatpush1.msra.mxu1 %v8465_v13  ;;  %v4793_v9 = vld [vmem:[#allocation9 + $0x18] sm:$0xff]  ;;  %v4792_v13 = vld [vmem:[#allocation9 + $0x10] sm:$0xff] }
 0xf1e   :  { %4645 = vmatprep.subr.mxu0 %v8466_v35  ;;  %4716 = vmatprep.subr.mxu1 %v8467_v6  ;;  %v4791_v35 = vld [vmem:[#allocation9 + $0x8] sm:$0xff]  ;;  %v4790_v6 = vld [vmem:[#allocation9] sm:$0xff] }
 0xf1f   :  { %4646 = vmatpush1.msra.mxu0 %v8468_v49  ;;  %4717 = vmatpush1.msra.mxu1 %v8469_v18  ;;  %v8485_v49 = vld [vmem:[#allocation64_spill] sm:$0xff] }
 0xf20   :  { %4647 = vmatprep.subr.mxu0 %v8470_v24  ;;  %4718 = vmatprep.subr.mxu1 %v8471_v36  ;;  %v3169_v18 = vadd.f32 %v8485_v49, %v8479_v53  ;;  %v8486_v36 = vld [vmem:[#allocation16_spill] sm:$0xff] }
 0xf21   :  { %4648 = vmatpush1.msra.mxu0 %v8472_v54  ;;  %4719 = vmatpush1.msra.mxu1 %v8473_v5  ;;  %v3171_v54 = vadd.f32 %v8486_v36, %v8367_v21 }
 0xf22   :  { %4649 = vmatprep.subr.mxu0 %v8474_v17  ;;  %4720 = vmatprep.subr.mxu1 %v8475_v11 }
 0xf23   :  { %4650 = vmatpush1.msra.mxu0 %v8476_v25  ;;  %4683 = vmatprep.mubr.f32.mxu0 %v8477_v27 }
 0xf24   :  { %4721 = vmatpush1.msra.mxu1 %v8478_v23  ;;  %4754 = vmatprep.mubr.f32.mxu1 %v8477_v27 }
 0xf25   :  { %5136 = vmatprep.subr.mxu0 %v8477_v27 }
 0xfc4   :  { %v4509_v7 = vpop.f32.mrf.mxu0  ;;  %v4580_v31 = vpop.f32.mrf.mxu1 }
 0xfc5   :  { %v4585_v50 = vadd.f32 %v4509_v7, %v3163_v51  ;;  %v4587_v55 = vadd.f32 %v4580_v31, %v8483_v46  ;;  %v8487_v7 = vld [vmem:[#allocation72_spill] sm:$0xff] }
 0xfc6   :  { %v4511_v26 = vpop.f32.mrf.mxu0  ;;  %v4582_v39 = vpop.f32.mrf.mxu1 }
 0xfc7   :  { %v4980_v3 = vmul.f32 -1.442695, %v4585_v50  ;;  %v4586_v30 = vadd.f32 %v4511_v26, %v3165_v41  ;;  %v4588_v42 = vadd.f32 %v4582_v39, %v8482_v44 }
 0xfc9   :  { %5412 = vpow2.f32 %v4980_v3  ;;  %v4981_v10 = vmul.f32 -1.442695, %v4586_v30  ;;  %v4982_v58 = vmul.f32 -1.442695, %v4588_v42 }
 0xfcb   :  { %5414 = vpow2.f32 %v4981_v10 }
 0xfcc   :  { %5416 = vtanh.f32 %v4587_v55 }
 0xfcd   :  { %5418 = vpow2.f32 %v4982_v58 }
 0xfd6   :  { %v5413_v4 = vpop.eup %5412 }
 0xfd7   :  { %v4592_v28 = vadd.f32 1.0, %v5413_v4 }
 0xfd8   :  { %v5415_v52 = vpop.eup %5414 }
 0xfd9   :  { %5420 = vrcp.f32 %v4592_v28  ;;  %v4598_v38 = vadd.f32 1.0, %v5415_v52  ;;  %v5417_v14 = vpop.eup %5416 }
 0xfda   :  { %v5419_v20 = vpop.eup %5418 }
 0xfdb   :  { %5422 = vrcp.f32 %v4598_v38  ;;  %v4605_v56 = vadd.f32 1.0, %v5419_v20 }
 0xfdd   :  { %5424 = vrcp.f32 %v4605_v56 }
 0xfe6   :  { %v5421_v59 = vpop.eup %5420 }
 0xfe7   :  { %v4609_v12 = vmul.f32 %v5421_v59, %v5417_v14  ;;  %v4986_v14 = vld [vmem:[%s7870_s8] ss:$0 sm:$0xff] }
 0xfe8   :  { %v5423_v32 = vpop.eup %5422 }
 0xfe9   :  { %v4608_v62 = vmul.f32 %v5423_v32, %v7733_v19 }
 0xfea   :  { %v5425_v1 = vpop.eup %5424 }
 0xfeb   :  { %v4610_v33 = vadd.f32 %v4609_v12, %v4608_v62 }
 0xfed   :  { %5426 = vtanh.f32 %v4610_v33  ;;  %v7817_v47 = vsel %vm2620_vm15, %v4610_v33, %v7733_v19  ;;  %v4804_v19 = vld [vmem:[#allocation9 + $0x70] sm:$0xff] }
 0xffa   :  { %v5427_v48 = vpop.eup %5426 }
 0xffb   :  { %v4612_v0 = vmul.f32 %v5427_v48, %v5425_v1 }
 0xffd   :  { %v7822_v15 = vsel %vm2620_vm15, %v4612_v0, %v7738_v40  ;;  %v4800_v40 = vld [vmem:[#allocation9 + $0x50] sm:$0xff] }
 0xffe   :  { %4684 = vmatmul.mubr.f32.vlgmr.msra.gmra.mxu0 %v7822_v15  ;;  %4755 = vmatmul.mubr.f32.vlgmr.msra.gmra.mxu1 %v7822_v15 }
 0xfff   :  { %5168 = vmatprep.mubr.msk.f32.mxu0 %vm5603_vm0, %v8477_v27  ;;  %5137 = vmatpush3.msra.mxu0 %v4805_v29 }
0x1000   :  { %5138 = vmatprep.subr.mxu0 %v8477_v27 }
0x1001   :  { %5139 = vmatpush3.msra.mxu0 %v4804_v19 }
0x1002   :  { %5140 = vmatprep.subr.mxu0 %v8477_v27 }
0x1003   :  { %5141 = vmatpush3.msra.mxu0 %v4803_v2 }
0x1004   :  { %5142 = vmatprep.subr.mxu0 %v8477_v27 }
0x1005   :  { %5143 = vmatpush3.msra.mxu0 %v4802_v45 }
0x1006   :  { %5144 = vmatprep.subr.mxu0 %v8477_v27 }
0x1007   :  { %5145 = vmatpush3.msra.mxu0 %v4801_v61 }
0x1008   :  { %5146 = vmatprep.subr.mxu0 %v8477_v27 }
0x1009   :  { %5147 = vmatpush3.msra.mxu0 %v4800_v40 }
0x100a   :  { %5148 = vmatprep.subr.mxu0 %v8477_v27 }
0x100b   :  { %5149 = vmatpush3.msra.mxu0 %v4799_v22 }
0x100c   :  { %5150 = vmatprep.subr.mxu0 %v8477_v27 }
0x100d   :  { %5151 = vmatpush3.msra.mxu0 %v4798_v37 }
0x100e   :  { %5152 = vmatprep.subr.mxu0 %v8477_v27 }
0x100f   :  { %5153 = vmatpush3.msra.mxu0 %v4797_v60 }
0x1010   :  { %5154 = vmatprep.subr.mxu0 %v8477_v27 }
0x1011   :  { %5155 = vmatpush3.msra.mxu0 %v4796_v16 }
0x1012   :  { %5156 = vmatprep.subr.mxu0 %v8477_v27 }
0x1013   :  { %5157 = vmatpush3.msra.mxu0 %v4795_v43 }
0x1014   :  { %5158 = vmatprep.subr.mxu0 %v8477_v27 }
0x1015   :  { %5159 = vmatpush3.msra.mxu0 %v4794_v57 }
0x1016   :  { %5160 = vmatprep.subr.mxu0 %v8477_v27 }
0x1017   :  { %5161 = vmatpush3.msra.mxu0 %v4793_v9 }
0x1018   :  { %5162 = vmatprep.subr.mxu0 %v8477_v27 }
0x1019   :  { %5163 = vmatpush3.msra.mxu0 %v4792_v13 }
0x101a   :  { %5164 = vmatprep.subr.mxu0 %v8477_v27 }
0x101b   :  { %5165 = vmatpush3.msra.mxu0 %v4791_v35 }
0x101c   :  { %5166 = vmatprep.subr.mxu0 %v8477_v27  ;;  %v8488_v27 = vld [vmem:[#allocation71_spill] sm:$0xff] }
0x101d   :  { %5167 = vmatpush3.msra.mxu0 %v4790_v6 }
0x10be   :  { %v4685_v24 = vpop.f32.mrf.mxu0  ;;  %v4756_v23 = vpop.f32.mrf.mxu1 }
0x10bf   :  { %v4761_v5 = vadd.f32 %v4685_v24, %v3169_v18  ;;  %v4763_v41 = vadd.f32 %v4756_v23, %v8488_v27 }
0x10c0   :  { %v4687_v17 = vpop.f32.mrf.mxu0  ;;  %v4758_v51 = vpop.f32.mrf.mxu1 }
0x10c1   :  { %v4983_v11 = vmul.f32 -1.442695, %v4761_v5  ;;  %v4762_v25 = vadd.f32 %v4687_v17, %v3171_v54  ;;  %v4764_v8 = vadd.f32 %v4758_v51, %v8487_v7 }
0x10c3   :  { %5428 = vpow2.f32 %v4983_v11  ;;  %v4984_v34 = vmul.f32 -1.442695, %v4762_v25  ;;  %v4985_v50 = vmul.f32 -1.442695, %v4764_v8 }
0x10c5   :  { %5430 = vpow2.f32 %v4984_v34 }
0x10c6   :  { %5432 = vtanh.f32 %v4763_v41 }
0x10c7   :  { %5434 = vpow2.f32 %v4985_v50 }
0x10d0   :  { %v5429_v26 = vpop.eup %5428 }
0x10d1   :  { %v4768_v53 = vadd.f32 1.0, %v5429_v26 }
0x10d2   :  { %v5431_v3 = vpop.eup %5430 }
0x10d3   :  { %5436 = vrcp.f32 %v4768_v53  ;;  %v4774_v21 = vadd.f32 1.0, %v5431_v3  ;;  %v5433_v30 = vpop.eup %5432 }
0x10d4   :  { %v5435_v31 = vpop.eup %5434 }
0x10d5   :  { %5438 = vrcp.f32 %v4774_v21  ;;  %v4781_v42 = vadd.f32 1.0, %v5435_v31 }
0x10d7   :  { %5440 = vrcp.f32 %v4781_v42 }
0x10e0   :  { %v5437_v10 = vpop.eup %5436 }
0x10e1   :  { %v4785_v39 = vmul.f32 %v5437_v10, %v5433_v30 }
0x10e2   :  { %v5439_v44 = vpop.eup %5438 }
0x10e3   :  { %v4784_v46 = vmul.f32 %v5439_v44, %v7817_v47 }
0x10e4   :  { %v5441_v58 = vpop.eup %5440 }
0x10e5   :  { %v4786_v55 = vadd.f32 %v4785_v39, %v4784_v46 }
0x10e7   :  { %5442 = vtanh.f32 %v4786_v55 }
0x10f4   :  { %v5443_v4 = vpop.eup %5442 }
0x10f5   :  { %v4788_v28 = vmul.f32 %v5443_v4, %v5441_v58 }
0x10f7   :  { %v4789_v38 = vsel %vm2867_vm1, %v4788_v28, %v7822_v15 }
0x10f8   :  { %5169 = vmatmul.mubr.f32.vlgmr.msra.gmra.mxu0 %v4789_v38 }
0x11b8   :  { %v4879_v20 = vpop.f32.mrf.mxu0 }
0x11b9   :  { %v4880_v59 = vadd.f32 %v4986_v14, %v4879_v20 }
0x11ba   :  { %v5170_v12 = vpop.f32.mrf.mxu0 }
0x11bb   :  { %4884 = vst [vmem:[#allocation10 + $0x8] sm:$0xff] %v4880_v59 }
0x11bc   :  { %5579 = shalt.err (!%p5576_p5)
}
0x11bd   :  { %4896 = dma.vmem_to_hbm [thread:$0]  %s4891_s22, 256, %s7871_s9, [#allocation6], %s5599_s5, %s5599_s5, %s5600_s24  }
0x11be   :  { %5592 = dma.done.wait [#allocation6], 256  }
0x11bf   :  { %5593 = vsyncadd [#allocation6], 4294967040 }
0x11c0   :  { %4900 = vsyncpa [#allocation5], 1 }
0x11c1   :  { %4901 = vsyncpa [#allocation8], 1 }
0x11c2   :  { %4902 = vsyncpa [#allocation6], 1 }

</bundles_post_ra>
